<compile_context>
chip_gen: v6e
topology: v6e:2x2x1
jax: 0.10.0
libtpu: 0.0.40
codegen_flags: <defaults>
</compile_context>

<pallas_src>
import functools

import jax
import jax.numpy as jnp
from jax.experimental import pallas as pl
from jax.experimental.pallas import tpu as pltpu


# ----------------------------- configuration --------------------------------
class Config:
    batch = 2
    in_channels = 3
    image_size = 16
    patch_size = 4
    image_embedding = 32          # D
    num_heads = 4
    num_layers = 2
    mlp_dim = 64
    eps = 1e-6


# ------------------------------- kernel --------------------------------------
def _encoder_kernel(tokens_ref, add_ref, pw_ref, wqkv_ref, wo_ref, w1_ref,
                    w2_ref, vec_ref, out_ref, o_scratch, *,
                    B, T, Np, D, mlp, num_layers, num_heads, eps):
    """Whole ViT encoder (all batches, all layers), fully VMEM resident.

    tokens_ref : (B*T, PD)  bf16   patches (+ zero CLS row per batch, appended last)
    add_ref    : (B*T, D)   f32    conv bias + pos emb (+ CLS token at last row)
    pw_ref     : (PD, D)    bf16   patch projection weight
    wqkv_ref   : (L, D, 3D) bf16   head-major [q_h|k_h|v_h] columns, q pre-scaled
    wo_ref     : (L, D, D)  bf16
    w1_ref     : (L, D, M)  bf16
    w2_ref     : (L, M, D)  bf16
    vec_ref    : (8L+2, vw) f32    packed LN params / biases, one row each
    out_ref    : (B, Np, D) f32
    o_scratch  : (B*T, D)   f32    per-head attention outputs gathered here
    """
    Dh = D // num_heads

    def ln(v, g, b):
        # f32 statistics (v5e has no bf16 elementwise path).
        mu = jnp.mean(v, axis=-1, keepdims=True)
        c = v - mu
        var = jnp.mean(c * c, axis=-1, keepdims=True)
        return c * jax.lax.rsqrt(var + eps) * g + b

    def bf(a):
        return a.astype(jnp.bfloat16)

    # ---- ImageEmbedding: patch projection (+ bias/CLS/pos folded into add) ----
    x = (jnp.dot(tokens_ref[...], pw_ref[...],
                 preferred_element_type=jnp.float32)
         + add_ref[...])                                           # (B*T, D) f32

    # ---- Transformer encoder: pre-LN blocks, Python-unrolled ------------------
    for l in range(num_layers):
        r = 8 * l
        g1   = vec_ref[r + 0:r + 1, :D]
        b1   = vec_ref[r + 1:r + 2, :D]
        bqkv = vec_ref[r + 2:r + 3, :3 * D]
        bo   = vec_ref[r + 3:r + 4, :D]
        g2   = vec_ref[r + 4:r + 5, :D]
        b2   = vec_ref[r + 5:r + 6, :D]
        bm1  = vec_ref[r + 6:r + 7, :mlp]
        bm2  = vec_ref[r + 7:r + 8, :D]

        # Attention: LN1 -> fused QKV (batch folded into rows) -> per-(batch,head)
        # softmax(QK^T)V -> heads written into lane slices of one VMEM tile ->
        # single out-projection matmul.
        h = ln(x, g1, b1)
        qkv = (jnp.dot(bf(h), wqkv_ref[l],
                       preferred_element_type=jnp.float32) + bqkv)  # (B*T, 3D) f32

        for b in range(B):
            qkv_b = bf(qkv[b * T:(b + 1) * T, :])                   # (T, 3D) bf16
            for hd in range(num_heads):
                c0 = 3 * Dh * hd                                    # head-major cols
                q = qkv_b[:, c0:c0 + Dh]       # 1/sqrt(Dh) already folded into wqkv
                k = qkv_b[:, c0 + Dh:c0 + 2 * Dh]
                v = qkv_b[:, c0 + 2 * Dh:c0 + 3 * Dh]
                # contract on the last dim directly (no explicit k.T pass).
                s = jax.lax.dot_general(
                    q, k, (((1,), (1,)), ((), ())),
                    preferred_element_type=jnp.float32)             # (T, T) f32
                s = s - jnp.max(s, axis=-1, keepdims=True)
                p = jnp.exp(s)
                p = p * pl.reciprocal(jnp.sum(p, axis=-1, keepdims=True),
                                      approx=True)
                o = jnp.dot(bf(p), v,
                            preferred_element_type=jnp.float32)     # (T, Dh) f32
                o_scratch[b * T:(b + 1) * T, hd * Dh:(hd + 1) * Dh] = o

        # One (B*T, D)@(D, D) out-projection (head merge + batch folded in).
        x = x + jnp.dot(bf(o_scratch[...]), wo_ref[l],
                        preferred_element_type=jnp.float32) + bo    # residual

        # MLP block: LN2 -> Linear+GELU -> Linear, residual fused.
        h = ln(x, g2, b2)
        h = jnp.dot(bf(h), w1_ref[l], preferred_element_type=jnp.float32) + bm1
        # TODO(synk): PyTorch nn.GELU defaults to exact erf; tanh approx used.
        h = jax.nn.gelu(h, approximate=True)
        h = jnp.dot(bf(h), w2_ref[l], preferred_element_type=jnp.float32) + bm2
        x = x + h                                                   # residual

    # ---- segment_encoder: LayerNorm over the Np patch tokens -----------------
    # CLS sits at the LAST index of each batch block, so the segment slice
    # starts at an 8-aligned sublane row (no leading shift).
    sg = vec_ref[8 * num_layers + 0:8 * num_layers + 1, :D]
    sb = vec_ref[8 * num_layers + 1:8 * num_layers + 2, :D]
    for b in range(B):
        seg = ln(x[b * T:b * T + Np, :], sg, sb)                    # (Np, D)
        out_ref[b] = seg.astype(out_ref.dtype)


# ----------------------------- parameters ------------------------------------
def init_params(key, cfg):
    """Logical (PyTorch-like) parameters."""
    D = cfg.image_embedding
    P = cfg.patch_size
    C = cfg.in_channels
    patch_dim = C * P * P
    n_patches = (cfg.image_size // P) ** 2

    def dense(k, fan_in, fan_out):
        w = jax.random.normal(k, (fan_in, fan_out), jnp.float32) / jnp.sqrt(
            jnp.float32(fan_in))
        b = jnp.zeros((fan_out,), jnp.float32)
        return w, b

    keys = jax.random.split(key, 3 + cfg.num_layers)
    params = {}
    # TODO(synk): to load real PyTorch Conv2d weights use conv_w.reshape(D, C*P*P).T
    params["patch_w"], params["patch_b"] = dense(keys[0], patch_dim, D)
    params["cls"] = 0.02 * jax.random.normal(keys[1], (1, D), jnp.float32)
    params["pos"] = 0.02 * jax.random.normal(
        keys[2], (n_patches + 1, D), jnp.float32)

    layers = []
    for i in range(cfg.num_layers):
        lk = jax.random.split(keys[3 + i], 6)
        layer = {
            "ln1_g": jnp.ones((D,), jnp.float32),
            "ln1_b": jnp.zeros((D,), jnp.float32),
            "ln2_g": jnp.ones((D,), jnp.float32),
            "ln2_b": jnp.zeros((D,), jnp.float32),
        }
        layer["wq"], layer["bq"] = dense(lk[0], D, D)
        layer["wk"], layer["bk"] = dense(lk[1], D, D)
        layer["wv"], layer["bv"] = dense(lk[2], D, D)
        layer["wo"], layer["bo"] = dense(lk[3], D, D)
        layer["w1"], layer["b1"] = dense(lk[4], D, cfg.mlp_dim)
        layer["w2"], layer["b2"] = dense(lk[5], cfg.mlp_dim, D)
        layers.append(layer)
    params["layers"] = layers

    params["seg_ln_g"] = jnp.ones((D,), jnp.float32)
    params["seg_ln_b"] = jnp.zeros((D,), jnp.float32)
    return params


def pack_params(params, cfg):
    """One-time packing: stacked bf16 matrices, one padded f32 vector table,
    head-major QKV columns with 1/sqrt(Dh) folded into Q, CLS moved to last."""
    D = cfg.image_embedding
    H = cfg.num_heads
    Dh = D // H
    mlp = cfg.mlp_dim
    scale = 1.0 / float(Dh) ** 0.5
    vw = max(3 * D, mlp)                       # packed vector-table width

    def row(v):
        v = v.reshape(-1).astype(jnp.float32)
        return jnp.pad(v, (0, vw - v.shape[0]))

    wqkv_l, wo_l, w1_l, w2_l, rows = [], [], [], [], []
    for lyr in params["layers"]:
        cols, bvals = [], []
        for hd in range(H):
            s = slice(hd * Dh, (hd + 1) * Dh)
            cols += [lyr["wq"][:, s] * scale, lyr["wk"][:, s], lyr["wv"][:, s]]
            bvals += [lyr["bq"][s] * scale, lyr["bk"][s], lyr["bv"][s]]
        wqkv_l.append(jnp.concatenate(cols, axis=1))                # (D, 3D)
        wo_l.append(lyr["wo"])
        w1_l.append(lyr["w1"])
        w2_l.append(lyr["w2"])
        rows += [row(lyr["ln1_g"]), row(lyr["ln1_b"]),
                 row(jnp.concatenate(bvals)), row(lyr["bo"]),
                 row(lyr["ln2_g"]), row(lyr["ln2_b"]),
                 row(lyr["b1"]), row(lyr["b2"])]
    rows += [row(params["seg_ln_g"]), row(params["seg_ln_b"])]

    # Per-token additive term: rows 0..Np-1 = pos[1:] + conv bias (patch tokens),
    # row Np (LAST) = pos[0] + CLS token (its matching token row is all zeros).
    add = jnp.concatenate(
        [params["pos"][1:] + params["patch_b"][None, :],
         params["pos"][0:1] + params["cls"]], axis=0)               # (T, D)

    return {
        "patch_w": params["patch_w"].astype(jnp.bfloat16),          # (PD, D)
        "wqkv": jnp.stack(wqkv_l).astype(jnp.bfloat16),             # (L, D, 3D)
        "wo":   jnp.stack(wo_l).astype(jnp.bfloat16),               # (L, D, D)
        "w1":   jnp.stack(w1_l).astype(jnp.bfloat16),               # (L, D, mlp)
        "w2":   jnp.stack(w2_l).astype(jnp.bfloat16),               # (L, mlp, D)
        "vecs": jnp.stack(rows),                                    # (8L+2, vw) f32
        "add":  add.astype(jnp.float32),                            # (T, D)
    }


# ------------------------------- forward --------------------------------------
def image_encoder_forward(packed, images, cfg):
    B, C, Himg, Wimg = images.shape
    P = cfg.patch_size
    D = cfg.image_embedding
    Hp, Wp = Himg // P, Wimg // P
    Np = Hp * Wp
    T = Np + 1
    PD = C * P * P

    # Patchify (== Conv2d(kernel=P, stride=P) unfold) as XLA glue; an all-zero
    # CLS row is appended LAST per batch element.
    patches = (images.reshape(B, C, Hp, P, Wp, P)
               .transpose(0, 2, 4, 1, 3, 5)
               .reshape(B, Np, PD))
    tokens = jnp.concatenate(
        [patches, jnp.zeros((B, 1, PD), patches.dtype)], axis=1)    # (B, T, PD)
    tokens_bt = tokens.reshape(B * T, PD).astype(jnp.bfloat16)      # batch -> rows
    add_bt = jnp.tile(packed["add"], (B, 1))                        # (B*T, D) f32

    kernel = functools.partial(
        _encoder_kernel, B=B, T=T, Np=Np, D=D, mlp=cfg.mlp_dim,
        num_layers=cfg.num_layers, num_heads=cfg.num_heads, eps=cfg.eps)

    vmem = pl.BlockSpec(memory_space=pltpu.MemorySpace.VMEM)
    out = pl.pallas_call(
        kernel,
        out_shape=jax.ShapeDtypeStruct((B, Np, D), jnp.float32),
        in_specs=[vmem] * 8,
        out_specs=vmem,
        scratch_shapes=[pltpu.VMEM((B * T, D), jnp.float32)],
    )(tokens_bt, add_bt, packed["patch_w"], packed["wqkv"], packed["wo"],
      packed["w1"], packed["w2"], packed["vecs"])
    return out


# --------------------------------- main ---------------------------------------
if __name__ == "__main__":
    cfg = Config()
    key = jax.random.PRNGKey(0)
    img_key, param_key = jax.random.split(key)

    images = jax.random.normal(
        img_key,
        (cfg.batch, cfg.in_channels, cfg.image_size, cfg.image_size),
        jnp.float32)
    params = init_params(param_key, cfg)
    packed = pack_params(params, cfg)          # one-time weight packing

    fwd = jax.jit(lambda p, im: image_encoder_forward(p, im, cfg))
    out = jax.block_until_ready(fwd(packed, images))

    n_patches = (cfg.image_size // cfg.patch_size) ** 2
    assert out.shape == (cfg.batch, n_patches, cfg.image_embedding), out.shape
    assert bool(jnp.all(jnp.isfinite(out)))
    print("KERNEL_OK")
</pallas_src>

<mosaic_0001>
module attributes {stable_mosaic.version = 11 : i64} {
  func.func @_encoder_kernel(%arg0: memref<34x48xbf16, #tpu.memory_space<vmem>>, %arg1: memref<34x32xf32, #tpu.memory_space<vmem>>, %arg2: memref<48x32xbf16, #tpu.memory_space<vmem>>, %arg3: memref<2x32x96xbf16, #tpu.memory_space<vmem>>, %arg4: memref<2x32x32xbf16, #tpu.memory_space<vmem>>, %arg5: memref<2x32x64xbf16, #tpu.memory_space<vmem>>, %arg6: memref<2x64x32xbf16, #tpu.memory_space<vmem>>, %arg7: memref<18x96xf32, #tpu.memory_space<vmem>>, %arg8: memref<2x16x32xf32, #tpu.memory_space<vmem>>, %arg9: memref<34x32xf32, #tpu.memory_space<vmem>>) attributes {dimension_semantics = [], scalar_prefetch = 0 : i64, scratch_operands = 1 : i64, tpu.core_type = #tpu.core_type<tc>} {
    %c0 = arith.constant 0 : index
    %c0_0 = arith.constant 0 : index
    %0 = vector.load %arg0[%c0, %c0_0] : memref<34x48xbf16, #tpu.memory_space<vmem>>, vector<34x48xbf16>
    %c0_1 = arith.constant 0 : index
    %c0_2 = arith.constant 0 : index
    %1 = vector.load %arg2[%c0_1, %c0_2] : memref<48x32xbf16, #tpu.memory_space<vmem>>, vector<48x32xbf16>
    %cst = arith.constant dense<0.000000e+00> : vector<34x32xf32>
    %2 = tpu.matmul %0, %1, %cst {dimension_numbers = #tpu.dot_dimension_numbers<[1], [0], [0], [1], [0, 0, 1, 1], [], []>} : vector<34x48xbf16>, vector<48x32xbf16>, vector<34x32xf32> -> vector<34x32xf32>
    %c0_3 = arith.constant 0 : index
    %c0_4 = arith.constant 0 : index
    %3 = vector.load %arg1[%c0_3, %c0_4] : memref<34x32xf32, #tpu.memory_space<vmem>>, vector<34x32xf32>
    %4 = arith.addf %2, %3 : vector<34x32xf32>
    %c0_5 = arith.constant 0 : index
    %c0_6 = arith.constant 0 : index
    %5 = vector.load %arg7[%c0_5, %c0_6] : memref<18x96xf32, #tpu.memory_space<vmem>>, vector<1x32xf32>
    %c1 = arith.constant 1 : index
    %c0_7 = arith.constant 0 : index
    %6 = vector.load %arg7[%c1, %c0_7] : memref<18x96xf32, #tpu.memory_space<vmem>>, vector<1x32xf32>
    %c2 = arith.constant 2 : index
    %c0_8 = arith.constant 0 : index
    %7 = vector.load %arg7[%c2, %c0_8] : memref<18x96xf32, #tpu.memory_space<vmem>>, vector<1x96xf32>
    %c3 = arith.constant 3 : index
    %c0_9 = arith.constant 0 : index
    %8 = vector.load %arg7[%c3, %c0_9] : memref<18x96xf32, #tpu.memory_space<vmem>>, vector<1x32xf32>
    %c4 = arith.constant 4 : index
    %c0_10 = arith.constant 0 : index
    %9 = vector.load %arg7[%c4, %c0_10] : memref<18x96xf32, #tpu.memory_space<vmem>>, vector<1x32xf32>
    %c5 = arith.constant 5 : index
    %c0_11 = arith.constant 0 : index
    %10 = vector.load %arg7[%c5, %c0_11] : memref<18x96xf32, #tpu.memory_space<vmem>>, vector<1x32xf32>
    %c6 = arith.constant 6 : index
    %c0_12 = arith.constant 0 : index
    %11 = vector.load %arg7[%c6, %c0_12] : memref<18x96xf32, #tpu.memory_space<vmem>>, vector<1x64xf32>
    %c7 = arith.constant 7 : index
    %c0_13 = arith.constant 0 : index
    %12 = vector.load %arg7[%c7, %c0_13] : memref<18x96xf32, #tpu.memory_space<vmem>>, vector<1x32xf32>
    %cst_14 = arith.constant dense<0.000000e+00> : vector<34xf32>
    %13 = vector.multi_reduction <add>, %4, %cst_14 [1] : vector<34x32xf32> to vector<34xf32>
    %14 = vector.shape_cast %13 : vector<34xf32> to vector<34x1xf32>
    %cst_15 = arith.constant 3.200000e+01 : f32
    %15 = vector.broadcast %cst_15 : f32 to vector<34x1xf32>
    %16 = arith.divf %14, %15 : vector<34x1xf32>
    %17 = vector.broadcast %16 : vector<34x1xf32> to vector<34x32xf32>
    %18 = arith.subf %4, %17 : vector<34x32xf32>
    %19 = arith.mulf %18, %18 : vector<34x32xf32>
    %cst_16 = arith.constant dense<0.000000e+00> : vector<34xf32>
    %20 = vector.multi_reduction <add>, %19, %cst_16 [1] : vector<34x32xf32> to vector<34xf32>
    %21 = vector.shape_cast %20 : vector<34xf32> to vector<34x1xf32>
    %cst_17 = arith.constant 3.200000e+01 : f32
    %22 = vector.broadcast %cst_17 : f32 to vector<34x1xf32>
    %23 = arith.divf %21, %22 : vector<34x1xf32>
    %cst_18 = arith.constant 9.99999997E-7 : f32
    %24 = vector.broadcast %cst_18 : f32 to vector<34x1xf32>
    %25 = arith.addf %23, %24 : vector<34x1xf32>
    %26 = math.rsqrt %25 : vector<34x1xf32>
    %27 = vector.broadcast %26 : vector<34x1xf32> to vector<34x32xf32>
    %28 = arith.mulf %18, %27 : vector<34x32xf32>
    %29 = vector.broadcast %5 : vector<1x32xf32> to vector<34x32xf32>
    %30 = arith.mulf %28, %29 : vector<34x32xf32>
    %31 = vector.broadcast %6 : vector<1x32xf32> to vector<34x32xf32>
    %32 = arith.addf %30, %31 : vector<34x32xf32>
    %33 = arith.truncf %32 : vector<34x32xf32> to vector<34x32xbf16>
    %c0_19 = arith.constant 0 : index
    %c0_20 = arith.constant 0 : index
    %c0_21 = arith.constant 0 : index
    %34 = vector.load %arg3[%c0_19, %c0_20, %c0_21] : memref<2x32x96xbf16, #tpu.memory_space<vmem>>, vector<1x32x96xbf16>
    %35 = vector.shape_cast %34 : vector<1x32x96xbf16> to vector<32x96xbf16>
    %cst_22 = arith.constant dense<0.000000e+00> : vector<34x96xf32>
    %36 = tpu.matmul %33, %35, %cst_22 {dimension_numbers = #tpu.dot_dimension_numbers<[1], [0], [0], [1], [0, 0, 1, 1], [], []>} : vector<34x32xbf16>, vector<32x96xbf16>, vector<34x96xf32> -> vector<34x96xf32>
    %37 = vector.broadcast %7 : vector<1x96xf32> to vector<34x96xf32>
    %38 = arith.addf %36, %37 : vector<34x96xf32>
    %39 = vector.extract_strided_slice %38 {offsets = [0, 0], sizes = [17, 96], strides = [1, 1]} : vector<34x96xf32> to vector<17x96xf32>
    %40 = arith.truncf %39 : vector<17x96xf32> to vector<17x96xbf16>
    %41 = vector.extract_strided_slice %40 {offsets = [0, 0], sizes = [17, 8], strides = [1, 1]} : vector<17x96xbf16> to vector<17x8xbf16>
    %42 = vector.extract_strided_slice %40 {offsets = [0, 8], sizes = [17, 8], strides = [1, 1]} : vector<17x96xbf16> to vector<17x8xbf16>
    %43 = vector.extract_strided_slice %40 {offsets = [0, 16], sizes = [17, 8], strides = [1, 1]} : vector<17x96xbf16> to vector<17x8xbf16>
    %cst_23 = arith.constant dense<0.000000e+00> : vector<17x17xf32>
    %44 = tpu.matmul %41, %42, %cst_23 {dimension_numbers = #tpu.dot_dimension_numbers<[1], [1], [0], [0], [0, 0, 1, 0], [], []>} : vector<17x8xbf16>, vector<17x8xbf16>, vector<17x17xf32> -> vector<17x17xf32>
    %cst_24 = arith.constant dense<0xFF800000> : vector<17xf32>
    %45 = vector.multi_reduction <maximumf>, %44, %cst_24 [1] : vector<17x17xf32> to vector<17xf32>
    %46 = vector.shape_cast %45 : vector<17xf32> to vector<17x1xf32>
    %47 = vector.broadcast %46 : vector<17x1xf32> to vector<17x17xf32>
    %48 = arith.subf %44, %47 : vector<17x17xf32>
    %49 = math.exp %48 : vector<17x17xf32>
    %cst_25 = arith.constant dense<0.000000e+00> : vector<17xf32>
    %50 = vector.multi_reduction <add>, %49, %cst_25 [1] : vector<17x17xf32> to vector<17xf32>
    %51 = vector.shape_cast %50 : vector<17xf32> to vector<17x1xf32>
    %52 = tpu.reciprocal %51 {approx = true} : vector<17x1xf32> -> vector<17x1xf32>
    %53 = vector.broadcast %52 : vector<17x1xf32> to vector<17x17xf32>
    %54 = arith.mulf %49, %53 : vector<17x17xf32>
    %55 = arith.truncf %54 : vector<17x17xf32> to vector<17x17xbf16>
    %cst_26 = arith.constant dense<0.000000e+00> : vector<17x8xf32>
    %56 = tpu.matmul %55, %43, %cst_26 {dimension_numbers = #tpu.dot_dimension_numbers<[1], [0], [0], [1], [0, 0, 1, 1], [], []>} : vector<17x17xbf16>, vector<17x8xbf16>, vector<17x8xf32> -> vector<17x8xf32>
    %c0_27 = arith.constant 0 : index
    %c0_28 = arith.constant 0 : index
    %57 = vector.load %arg9[%c0_27, %c0_28] : memref<34x32xf32, #tpu.memory_space<vmem>>, vector<17x8xf32>
    tpu.vector_store %arg9[%c0_27, %c0_28], %56 {strides = array<i32>} : memref<34x32xf32, #tpu.memory_space<vmem>>, vector<17x8xf32>,
    %58 = vector.extract_strided_slice %40 {offsets = [0, 24], sizes = [17, 8], strides = [1, 1]} : vector<17x96xbf16> to vector<17x8xbf16>
    %59 = vector.extract_strided_slice %40 {offsets = [0, 32], sizes = [17, 8], strides = [1, 1]} : vector<17x96xbf16> to vector<17x8xbf16>
    %60 = vector.extract_strided_slice %40 {offsets = [0, 40], sizes = [17, 8], strides = [1, 1]} : vector<17x96xbf16> to vector<17x8xbf16>
    %cst_29 = arith.constant dense<0.000000e+00> : vector<17x17xf32>
    %61 = tpu.matmul %58, %59, %cst_29 {dimension_numbers = #tpu.dot_dimension_numbers<[1], [1], [0], [0], [0, 0, 1, 0], [], []>} : vector<17x8xbf16>, vector<17x8xbf16>, vector<17x17xf32> -> vector<17x17xf32>
    %cst_30 = arith.constant dense<0xFF800000> : vector<17xf32>
    %62 = vector.multi_reduction <maximumf>, %61, %cst_30 [1] : vector<17x17xf32> to vector<17xf32>
    %63 = vector.shape_cast %62 : vector<17xf32> to vector<17x1xf32>
    %64 = vector.broadcast %63 : vector<17x1xf32> to vector<17x17xf32>
    %65 = arith.subf %61, %64 : vector<17x17xf32>
    %66 = math.exp %65 : vector<17x17xf32>
    %cst_31 = arith.constant dense<0.000000e+00> : vector<17xf32>
    %67 = vector.multi_reduction <add>, %66, %cst_31 [1] : vector<17x17xf32> to vector<17xf32>
    %68 = vector.shape_cast %67 : vector<17xf32> to vector<17x1xf32>
    %69 = tpu.reciprocal %68 {approx = true} : vector<17x1xf32> -> vector<17x1xf32>
    %70 = vector.broadcast %69 : vector<17x1xf32> to vector<17x17xf32>
    %71 = arith.mulf %66, %70 : vector<17x17xf32>
    %72 = arith.truncf %71 : vector<17x17xf32> to vector<17x17xbf16>
    %cst_32 = arith.constant dense<0.000000e+00> : vector<17x8xf32>
    %73 = tpu.matmul %72, %60, %cst_32 {dimension_numbers = #tpu.dot_dimension_numbers<[1], [0], [0], [1], [0, 0, 1, 1], [], []>} : vector<17x17xbf16>, vector<17x8xbf16>, vector<17x8xf32> -> vector<17x8xf32>
    %c0_33 = arith.constant 0 : index
    %c8 = arith.constant 8 : index
    %74 = vector.load %arg9[%c0_33, %c8] : memref<34x32xf32, #tpu.memory_space<vmem>>, vector<17x8xf32>
    tpu.vector_store %arg9[%c0_33, %c8], %73 {strides = array<i32>} : memref<34x32xf32, #tpu.memory_space<vmem>>, vector<17x8xf32>,
    %75 = vector.extract_strided_slice %40 {offsets = [0, 48], sizes = [17, 8], strides = [1, 1]} : vector<17x96xbf16> to vector<17x8xbf16>
    %76 = vector.extract_strided_slice %40 {offsets = [0, 56], sizes = [17, 8], strides = [1, 1]} : vector<17x96xbf16> to vector<17x8xbf16>
    %77 = vector.extract_strided_slice %40 {offsets = [0, 64], sizes = [17, 8], strides = [1, 1]} : vector<17x96xbf16> to vector<17x8xbf16>
    %cst_34 = arith.constant dense<0.000000e+00> : vector<17x17xf32>
    %78 = tpu.matmul %75, %76, %cst_34 {dimension_numbers = #tpu.dot_dimension_numbers<[1], [1], [0], [0], [0, 0, 1, 0], [], []>} : vector<17x8xbf16>, vector<17x8xbf16>, vector<17x17xf32> -> vector<17x17xf32>
    %cst_35 = arith.constant dense<0xFF800000> : vector<17xf32>
    %79 = vector.multi_reduction <maximumf>, %78, %cst_35 [1] : vector<17x17xf32> to vector<17xf32>
    %80 = vector.shape_cast %79 : vector<17xf32> to vector<17x1xf32>
    %81 = vector.broadcast %80 : vector<17x1xf32> to vector<17x17xf32>
    %82 = arith.subf %78, %81 : vector<17x17xf32>
    %83 = math.exp %82 : vector<17x17xf32>
    %cst_36 = arith.constant dense<0.000000e+00> : vector<17xf32>
    %84 = vector.multi_reduction <add>, %83, %cst_36 [1] : vector<17x17xf32> to vector<17xf32>
    %85 = vector.shape_cast %84 : vector<17xf32> to vector<17x1xf32>
    %86 = tpu.reciprocal %85 {approx = true} : vector<17x1xf32> -> vector<17x1xf32>
    %87 = vector.broadcast %86 : vector<17x1xf32> to vector<17x17xf32>
    %88 = arith.mulf %83, %87 : vector<17x17xf32>
    %89 = arith.truncf %88 : vector<17x17xf32> to vector<17x17xbf16>
    %cst_37 = arith.constant dense<0.000000e+00> : vector<17x8xf32>
    %90 = tpu.matmul %89, %77, %cst_37 {dimension_numbers = #tpu.dot_dimension_numbers<[1], [0], [0], [1], [0, 0, 1, 1], [], []>} : vector<17x17xbf16>, vector<17x8xbf16>, vector<17x8xf32> -> vector<17x8xf32>
    %c0_38 = arith.constant 0 : index
    %c16 = arith.constant 16 : index
    %91 = vector.load %arg9[%c0_38, %c16] : memref<34x32xf32, #tpu.memory_space<vmem>>, vector<17x8xf32>
    tpu.vector_store %arg9[%c0_38, %c16], %90 {strides = array<i32>} : memref<34x32xf32, #tpu.memory_space<vmem>>, vector<17x8xf32>,
    %92 = vector.extract_strided_slice %40 {offsets = [0, 72], sizes = [17, 8], strides = [1, 1]} : vector<17x96xbf16> to vector<17x8xbf16>
    %93 = vector.extract_strided_slice %40 {offsets = [0, 80], sizes = [17, 8], strides = [1, 1]} : vector<17x96xbf16> to vector<17x8xbf16>
    %94 = vector.extract_strided_slice %40 {offsets = [0, 88], sizes = [17, 8], strides = [1, 1]} : vector<17x96xbf16> to vector<17x8xbf16>
    %cst_39 = arith.constant dense<0.000000e+00> : vector<17x17xf32>
    %95 = tpu.matmul %92, %93, %cst_39 {dimension_numbers = #tpu.dot_dimension_numbers<[1], [1], [0], [0], [0, 0, 1, 0], [], []>} : vector<17x8xbf16>, vector<17x8xbf16>, vector<17x17xf32> -> vector<17x17xf32>
    %cst_40 = arith.constant dense<0xFF800000> : vector<17xf32>
    %96 = vector.multi_reduction <maximumf>, %95, %cst_40 [1] : vector<17x17xf32> to vector<17xf32>
    %97 = vector.shape_cast %96 : vector<17xf32> to vector<17x1xf32>
    %98 = vector.broadcast %97 : vector<17x1xf32> to vector<17x17xf32>
    %99 = arith.subf %95, %98 : vector<17x17xf32>
    %100 = math.exp %99 : vector<17x17xf32>
    %cst_41 = arith.constant dense<0.000000e+00> : vector<17xf32>
    %101 = vector.multi_reduction <add>, %100, %cst_41 [1] : vector<17x17xf32> to vector<17xf32>
    %102 = vector.shape_cast %101 : vector<17xf32> to vector<17x1xf32>
    %103 = tpu.reciprocal %102 {approx = true} : vector<17x1xf32> -> vector<17x1xf32>
    %104 = vector.broadcast %103 : vector<17x1xf32> to vector<17x17xf32>
    %105 = arith.mulf %100, %104 : vector<17x17xf32>
    %106 = arith.truncf %105 : vector<17x17xf32> to vector<17x17xbf16>
    %cst_42 = arith.constant dense<0.000000e+00> : vector<17x8xf32>
    %107 = tpu.matmul %106, %94, %cst_42 {dimension_numbers = #tpu.dot_dimension_numbers<[1], [0], [0], [1], [0, 0, 1, 1], [], []>} : vector<17x17xbf16>, vector<17x8xbf16>, vector<17x8xf32> -> vector<17x8xf32>
    %c0_43 = arith.constant 0 : index
    %c24 = arith.constant 24 : index
    %108 = vector.load %arg9[%c0_43, %c24] : memref<34x32xf32, #tpu.memory_space<vmem>>, vector<17x8xf32>
    tpu.vector_store %arg9[%c0_43, %c24], %107 {strides = array<i32>} : memref<34x32xf32, #tpu.memory_space<vmem>>, vector<17x8xf32>,
    %109 = vector.extract_strided_slice %38 {offsets = [17, 0], sizes = [17, 96], strides = [1, 1]} : vector<34x96xf32> to vector<17x96xf32>
    %110 = arith.truncf %109 : vector<17x96xf32> to vector<17x96xbf16>
    %111 = vector.extract_strided_slice %110 {offsets = [0, 0], sizes = [17, 8], strides = [1, 1]} : vector<17x96xbf16> to vector<17x8xbf16>
    %112 = vector.extract_strided_slice %110 {offsets = [0, 8], sizes = [17, 8], strides = [1, 1]} : vector<17x96xbf16> to vector<17x8xbf16>
    %113 = vector.extract_strided_slice %110 {offsets = [0, 16], sizes = [17, 8], strides = [1, 1]} : vector<17x96xbf16> to vector<17x8xbf16>
    %cst_44 = arith.constant dense<0.000000e+00> : vector<17x17xf32>
    %114 = tpu.matmul %111, %112, %cst_44 {dimension_numbers = #tpu.dot_dimension_numbers<[1], [1], [0], [0], [0, 0, 1, 0], [], []>} : vector<17x8xbf16>, vector<17x8xbf16>, vector<17x17xf32> -> vector<17x17xf32>
    %cst_45 = arith.constant dense<0xFF800000> : vector<17xf32>
    %115 = vector.multi_reduction <maximumf>, %114, %cst_45 [1] : vector<17x17xf32> to vector<17xf32>
    %116 = vector.shape_cast %115 : vector<17xf32> to vector<17x1xf32>
    %117 = vector.broadcast %116 : vector<17x1xf32> to vector<17x17xf32>
    %118 = arith.subf %114, %117 : vector<17x17xf32>
    %119 = math.exp %118 : vector<17x17xf32>
    %cst_46 = arith.constant dense<0.000000e+00> : vector<17xf32>
    %120 = vector.multi_reduction <add>, %119, %cst_46 [1] : vector<17x17xf32> to vector<17xf32>
    %121 = vector.shape_cast %120 : vector<17xf32> to vector<17x1xf32>
    %122 = tpu.reciprocal %121 {approx = true} : vector<17x1xf32> -> vector<17x1xf32>
    %123 = vector.broadcast %122 : vector<17x1xf32> to vector<17x17xf32>
    %124 = arith.mulf %119, %123 : vector<17x17xf32>
    %125 = arith.truncf %124 : vector<17x17xf32> to vector<17x17xbf16>
    %cst_47 = arith.constant dense<0.000000e+00> : vector<17x8xf32>
    %126 = tpu.matmul %125, %113, %cst_47 {dimension_numbers = #tpu.dot_dimension_numbers<[1], [0], [0], [1], [0, 0, 1, 1], [], []>} : vector<17x17xbf16>, vector<17x8xbf16>, vector<17x8xf32> -> vector<17x8xf32>
    %c17 = arith.constant 17 : index
    %c0_48 = arith.constant 0 : index
    %127 = vector.load %arg9[%c17, %c0_48] : memref<34x32xf32, #tpu.memory_space<vmem>>, vector<17x8xf32>
    tpu.vector_store %arg9[%c17, %c0_48], %126 {strides = array<i32>} : memref<34x32xf32, #tpu.memory_space<vmem>>, vector<17x8xf32>,
    %128 = vector.extract_strided_slice %110 {offsets = [0, 24], sizes = [17, 8], strides = [1, 1]} : vector<17x96xbf16> to vector<17x8xbf16>
    %129 = vector.extract_strided_slice %110 {offsets = [0, 32], sizes = [17, 8], strides = [1, 1]} : vector<17x96xbf16> to vector<17x8xbf16>
    %130 = vector.extract_strided_slice %110 {offsets = [0, 40], sizes = [17, 8], strides = [1, 1]} : vector<17x96xbf16> to vector<17x8xbf16>
    %cst_49 = arith.constant dense<0.000000e+00> : vector<17x17xf32>
    %131 = tpu.matmul %128, %129, %cst_49 {dimension_numbers = #tpu.dot_dimension_numbers<[1], [1], [0], [0], [0, 0, 1, 0], [], []>} : vector<17x8xbf16>, vector<17x8xbf16>, vector<17x17xf32> -> vector<17x17xf32>
    %cst_50 = arith.constant dense<0xFF800000> : vector<17xf32>
    %132 = vector.multi_reduction <maximumf>, %131, %cst_50 [1] : vector<17x17xf32> to vector<17xf32>
    %133 = vector.shape_cast %132 : vector<17xf32> to vector<17x1xf32>
    %134 = vector.broadcast %133 : vector<17x1xf32> to vector<17x17xf32>
    %135 = arith.subf %131, %134 : vector<17x17xf32>
    %136 = math.exp %135 : vector<17x17xf32>
    %cst_51 = arith.constant dense<0.000000e+00> : vector<17xf32>
    %137 = vector.multi_reduction <add>, %136, %cst_51 [1] : vector<17x17xf32> to vector<17xf32>
    %138 = vector.shape_cast %137 : vector<17xf32> to vector<17x1xf32>
    %139 = tpu.reciprocal %138 {approx = true} : vector<17x1xf32> -> vector<17x1xf32>
    %140 = vector.broadcast %139 : vector<17x1xf32> to vector<17x17xf32>
    %141 = arith.mulf %136, %140 : vector<17x17xf32>
    %142 = arith.truncf %141 : vector<17x17xf32> to vector<17x17xbf16>
    %cst_52 = arith.constant dense<0.000000e+00> : vector<17x8xf32>
    %143 = tpu.matmul %142, %130, %cst_52 {dimension_numbers = #tpu.dot_dimension_numbers<[1], [0], [0], [1], [0, 0, 1, 1], [], []>} : vector<17x17xbf16>, vector<17x8xbf16>, vector<17x8xf32> -> vector<17x8xf32>
    %c17_53 = arith.constant 17 : index
    %c8_54 = arith.constant 8 : index
    %144 = vector.load %arg9[%c17_53, %c8_54] : memref<34x32xf32, #tpu.memory_space<vmem>>, vector<17x8xf32>
    tpu.vector_store %arg9[%c17_53, %c8_54], %143 {strides = array<i32>} : memref<34x32xf32, #tpu.memory_space<vmem>>, vector<17x8xf32>,
    %145 = vector.extract_strided_slice %110 {offsets = [0, 48], sizes = [17, 8], strides = [1, 1]} : vector<17x96xbf16> to vector<17x8xbf16>
    %146 = vector.extract_strided_slice %110 {offsets = [0, 56], sizes = [17, 8], strides = [1, 1]} : vector<17x96xbf16> to vector<17x8xbf16>
    %147 = vector.extract_strided_slice %110 {offsets = [0, 64], sizes = [17, 8], strides = [1, 1]} : vector<17x96xbf16> to vector<17x8xbf16>
    %cst_55 = arith.constant dense<0.000000e+00> : vector<17x17xf32>
    %148 = tpu.matmul %145, %146, %cst_55 {dimension_numbers = #tpu.dot_dimension_numbers<[1], [1], [0], [0], [0, 0, 1, 0], [], []>} : vector<17x8xbf16>, vector<17x8xbf16>, vector<17x17xf32> -> vector<17x17xf32>
    %cst_56 = arith.constant dense<0xFF800000> : vector<17xf32>
    %149 = vector.multi_reduction <maximumf>, %148, %cst_56 [1] : vector<17x17xf32> to vector<17xf32>
    %150 = vector.shape_cast %149 : vector<17xf32> to vector<17x1xf32>
    %151 = vector.broadcast %150 : vector<17x1xf32> to vector<17x17xf32>
    %152 = arith.subf %148, %151 : vector<17x17xf32>
    %153 = math.exp %152 : vector<17x17xf32>
    %cst_57 = arith.constant dense<0.000000e+00> : vector<17xf32>
    %154 = vector.multi_reduction <add>, %153, %cst_57 [1] : vector<17x17xf32> to vector<17xf32>
    %155 = vector.shape_cast %154 : vector<17xf32> to vector<17x1xf32>
    %156 = tpu.reciprocal %155 {approx = true} : vector<17x1xf32> -> vector<17x1xf32>
    %157 = vector.broadcast %156 : vector<17x1xf32> to vector<17x17xf32>
    %158 = arith.mulf %153, %157 : vector<17x17xf32>
    %159 = arith.truncf %158 : vector<17x17xf32> to vector<17x17xbf16>
    %cst_58 = arith.constant dense<0.000000e+00> : vector<17x8xf32>
    %160 = tpu.matmul %159, %147, %cst_58 {dimension_numbers = #tpu.dot_dimension_numbers<[1], [0], [0], [1], [0, 0, 1, 1], [], []>} : vector<17x17xbf16>, vector<17x8xbf16>, vector<17x8xf32> -> vector<17x8xf32>
    %c17_59 = arith.constant 17 : index
    %c16_60 = arith.constant 16 : index
    %161 = vector.load %arg9[%c17_59, %c16_60] : memref<34x32xf32, #tpu.memory_space<vmem>>, vector<17x8xf32>
    tpu.vector_store %arg9[%c17_59, %c16_60], %160 {strides = array<i32>} : memref<34x32xf32, #tpu.memory_space<vmem>>, vector<17x8xf32>,
    %162 = vector.extract_strided_slice %110 {offsets = [0, 72], sizes = [17, 8], strides = [1, 1]} : vector<17x96xbf16> to vector<17x8xbf16>
    %163 = vector.extract_strided_slice %110 {offsets = [0, 80], sizes = [17, 8], strides = [1, 1]} : vector<17x96xbf16> to vector<17x8xbf16>
    %164 = vector.extract_strided_slice %110 {offsets = [0, 88], sizes = [17, 8], strides = [1, 1]} : vector<17x96xbf16> to vector<17x8xbf16>
    %cst_61 = arith.constant dense<0.000000e+00> : vector<17x17xf32>
    %165 = tpu.matmul %162, %163, %cst_61 {dimension_numbers = #tpu.dot_dimension_numbers<[1], [1], [0], [0], [0, 0, 1, 0], [], []>} : vector<17x8xbf16>, vector<17x8xbf16>, vector<17x17xf32> -> vector<17x17xf32>
    %cst_62 = arith.constant dense<0xFF800000> : vector<17xf32>
    %166 = vector.multi_reduction <maximumf>, %165, %cst_62 [1] : vector<17x17xf32> to vector<17xf32>
    %167 = vector.shape_cast %166 : vector<17xf32> to vector<17x1xf32>
    %168 = vector.broadcast %167 : vector<17x1xf32> to vector<17x17xf32>
    %169 = arith.subf %165, %168 : vector<17x17xf32>
    %170 = math.exp %169 : vector<17x17xf32>
    %cst_63 = arith.constant dense<0.000000e+00> : vector<17xf32>
    %171 = vector.multi_reduction <add>, %170, %cst_63 [1] : vector<17x17xf32> to vector<17xf32>
    %172 = vector.shape_cast %171 : vector<17xf32> to vector<17x1xf32>
    %173 = tpu.reciprocal %172 {approx = true} : vector<17x1xf32> -> vector<17x1xf32>
    %174 = vector.broadcast %173 : vector<17x1xf32> to vector<17x17xf32>
    %175 = arith.mulf %170, %174 : vector<17x17xf32>
    %176 = arith.truncf %175 : vector<17x17xf32> to vector<17x17xbf16>
    %cst_64 = arith.constant dense<0.000000e+00> : vector<17x8xf32>
    %177 = tpu.matmul %176, %164, %cst_64 {dimension_numbers = #tpu.dot_dimension_numbers<[1], [0], [0], [1], [0, 0, 1, 1], [], []>} : vector<17x17xbf16>, vector<17x8xbf16>, vector<17x8xf32> -> vector<17x8xf32>
    %c17_65 = arith.constant 17 : index
    %c24_66 = arith.constant 24 : index
    %178 = vector.load %arg9[%c17_65, %c24_66] : memref<34x32xf32, #tpu.memory_space<vmem>>, vector<17x8xf32>
    tpu.vector_store %arg9[%c17_65, %c24_66], %177 {strides = array<i32>} : memref<34x32xf32, #tpu.memory_space<vmem>>, vector<17x8xf32>,
    %c0_67 = arith.constant 0 : index
    %c0_68 = arith.constant 0 : index
    %179 = vector.load %arg9[%c0_67, %c0_68] : memref<34x32xf32, #tpu.memory_space<vmem>>, vector<34x32xf32>
    %180 = arith.truncf %179 : vector<34x32xf32> to vector<34x32xbf16>
    %c0_69 = arith.constant 0 : index
    %c0_70 = arith.constant 0 : index
    %c0_71 = arith.constant 0 : index
    %181 = vector.load %arg4[%c0_69, %c0_70, %c0_71] : memref<2x32x32xbf16, #tpu.memory_space<vmem>>, vector<1x32x32xbf16>
    %182 = vector.shape_cast %181 : vector<1x32x32xbf16> to vector<32x32xbf16>
    %cst_72 = arith.constant dense<0.000000e+00> : vector<34x32xf32>
    %183 = tpu.matmul %180, %182, %cst_72 {dimension_numbers = #tpu.dot_dimension_numbers<[1], [0], [0], [1], [0, 0, 1, 1], [], []>} : vector<34x32xbf16>, vector<32x32xbf16>, vector<34x32xf32> -> vector<34x32xf32>
    %184 = arith.addf %4, %183 : vector<34x32xf32>
    %185 = vector.broadcast %8 : vector<1x32xf32> to vector<34x32xf32>
    %186 = arith.addf %184, %185 : vector<34x32xf32>
    %cst_73 = arith.constant dense<0.000000e+00> : vector<34xf32>
    %187 = vector.multi_reduction <add>, %186, %cst_73 [1] : vector<34x32xf32> to vector<34xf32>
    %188 = vector.shape_cast %187 : vector<34xf32> to vector<34x1xf32>
    %cst_74 = arith.constant 3.200000e+01 : f32
    %189 = vector.broadcast %cst_74 : f32 to vector<34x1xf32>
    %190 = arith.divf %188, %189 : vector<34x1xf32>
    %191 = vector.broadcast %190 : vector<34x1xf32> to vector<34x32xf32>
    %192 = arith.subf %186, %191 : vector<34x32xf32>
    %193 = arith.mulf %192, %192 : vector<34x32xf32>
    %cst_75 = arith.constant dense<0.000000e+00> : vector<34xf32>
    %194 = vector.multi_reduction <add>, %193, %cst_75 [1] : vector<34x32xf32> to vector<34xf32>
    %195 = vector.shape_cast %194 : vector<34xf32> to vector<34x1xf32>
    %cst_76 = arith.constant 3.200000e+01 : f32
    %196 = vector.broadcast %cst_76 : f32 to vector<34x1xf32>
    %197 = arith.divf %195, %196 : vector<34x1xf32>
    %cst_77 = arith.constant 9.99999997E-7 : f32
    %198 = vector.broadcast %cst_77 : f32 to vector<34x1xf32>
    %199 = arith.addf %197, %198 : vector<34x1xf32>
    %200 = math.rsqrt %199 : vector<34x1xf32>
    %201 = vector.broadcast %200 : vector<34x1xf32> to vector<34x32xf32>
    %202 = arith.mulf %192, %201 : vector<34x32xf32>
    %203 = vector.broadcast %9 : vector<1x32xf32> to vector<34x32xf32>
    %204 = arith.mulf %202, %203 : vector<34x32xf32>
    %205 = vector.broadcast %10 : vector<1x32xf32> to vector<34x32xf32>
    %206 = arith.addf %204, %205 : vector<34x32xf32>
    %207 = arith.truncf %206 : vector<34x32xf32> to vector<34x32xbf16>
    %c0_78 = arith.constant 0 : index
    %c0_79 = arith.constant 0 : index
    %c0_80 = arith.constant 0 : index
    %208 = vector.load %arg5[%c0_78, %c0_79, %c0_80] : memref<2x32x64xbf16, #tpu.memory_space<vmem>>, vector<1x32x64xbf16>
    %209 = vector.shape_cast %208 : vector<1x32x64xbf16> to vector<32x64xbf16>
    %cst_81 = arith.constant dense<0.000000e+00> : vector<34x64xf32>
    %210 = tpu.matmul %207, %209, %cst_81 {dimension_numbers = #tpu.dot_dimension_numbers<[1], [0], [0], [1], [0, 0, 1, 1], [], []>} : vector<34x32xbf16>, vector<32x64xbf16>, vector<34x64xf32> -> vector<34x64xf32>
    %211 = vector.broadcast %11 : vector<1x64xf32> to vector<34x64xf32>
    %212 = arith.addf %210, %211 : vector<34x64xf32>
    %213 = arith.mulf %212, %212 : vector<34x64xf32>
    %214 = arith.mulf %212, %213 : vector<34x64xf32>
    %cst_82 = arith.constant 4.471500e-02 : f32
    %215 = vector.broadcast %cst_82 : f32 to vector<34x64xf32>
    %216 = arith.mulf %215, %214 : vector<34x64xf32>
    %217 = arith.addf %212, %216 : vector<34x64xf32>
    %cst_83 = arith.constant 0.797884583 : f32
    %218 = vector.broadcast %cst_83 : f32 to vector<34x64xf32>
    %219 = arith.mulf %218, %217 : vector<34x64xf32>
    %220 = math.tanh %219 : vector<34x64xf32>
    %cst_84 = arith.constant 1.000000e+00 : f32
    %221 = vector.broadcast %cst_84 : f32 to vector<34x64xf32>
    %222 = arith.addf %221, %220 : vector<34x64xf32>
    %cst_85 = arith.constant 5.000000e-01 : f32
    %223 = vector.broadcast %cst_85 : f32 to vector<34x64xf32>
    %224 = arith.mulf %223, %222 : vector<34x64xf32>
    %225 = arith.mulf %212, %224 : vector<34x64xf32>
    %226 = arith.truncf %225 : vector<34x64xf32> to vector<34x64xbf16>
    %c0_86 = arith.constant 0 : index
    %c0_87 = arith.constant 0 : index
    %c0_88 = arith.constant 0 : index
    %227 = vector.load %arg6[%c0_86, %c0_87, %c0_88] : memref<2x64x32xbf16, #tpu.memory_space<vmem>>, vector<1x64x32xbf16>
    %228 = vector.shape_cast %227 : vector<1x64x32xbf16> to vector<64x32xbf16>
    %cst_89 = arith.constant dense<0.000000e+00> : vector<34x32xf32>
    %229 = tpu.matmul %226, %228, %cst_89 {dimension_numbers = #tpu.dot_dimension_numbers<[1], [0], [0], [1], [0, 0, 1, 1], [], []>} : vector<34x64xbf16>, vector<64x32xbf16>, vector<34x32xf32> -> vector<34x32xf32>
    %230 = vector.broadcast %12 : vector<1x32xf32> to vector<34x32xf32>
    %231 = arith.addf %229, %230 : vector<34x32xf32>
    %232 = arith.addf %186, %231 : vector<34x32xf32>
    %c8_90 = arith.constant 8 : index
    %c0_91 = arith.constant 0 : index
    %233 = vector.load %arg7[%c8_90, %c0_91] : memref<18x96xf32, #tpu.memory_space<vmem>>, vector<1x32xf32>
    %c9 = arith.constant 9 : index
    %c0_92 = arith.constant 0 : index
    %234 = vector.load %arg7[%c9, %c0_92] : memref<18x96xf32, #tpu.memory_space<vmem>>, vector<1x32xf32>
    %c10 = arith.constant 10 : index
    %c0_93 = arith.constant 0 : index
    %235 = vector.load %arg7[%c10, %c0_93] : memref<18x96xf32, #tpu.memory_space<vmem>>, vector<1x96xf32>
    %c11 = arith.constant 11 : index
    %c0_94 = arith.constant 0 : index
    %236 = vector.load %arg7[%c11, %c0_94] : memref<18x96xf32, #tpu.memory_space<vmem>>, vector<1x32xf32>
    %c12 = arith.constant 12 : index
    %c0_95 = arith.constant 0 : index
    %237 = vector.load %arg7[%c12, %c0_95] : memref<18x96xf32, #tpu.memory_space<vmem>>, vector<1x32xf32>
    %c13 = arith.constant 13 : index
    %c0_96 = arith.constant 0 : index
    %238 = vector.load %arg7[%c13, %c0_96] : memref<18x96xf32, #tpu.memory_space<vmem>>, vector<1x32xf32>
    %c14 = arith.constant 14 : index
    %c0_97 = arith.constant 0 : index
    %239 = vector.load %arg7[%c14, %c0_97] : memref<18x96xf32, #tpu.memory_space<vmem>>, vector<1x64xf32>
    %c15 = arith.constant 15 : index
    %c0_98 = arith.constant 0 : index
    %240 = vector.load %arg7[%c15, %c0_98] : memref<18x96xf32, #tpu.memory_space<vmem>>, vector<1x32xf32>
    %cst_99 = arith.constant dense<0.000000e+00> : vector<34xf32>
    %241 = vector.multi_reduction <add>, %232, %cst_99 [1] : vector<34x32xf32> to vector<34xf32>
    %242 = vector.shape_cast %241 : vector<34xf32> to vector<34x1xf32>
    %cst_100 = arith.constant 3.200000e+01 : f32
    %243 = vector.broadcast %cst_100 : f32 to vector<34x1xf32>
    %244 = arith.divf %242, %243 : vector<34x1xf32>
    %245 = vector.broadcast %244 : vector<34x1xf32> to vector<34x32xf32>
    %246 = arith.subf %232, %245 : vector<34x32xf32>
    %247 = arith.mulf %246, %246 : vector<34x32xf32>
    %cst_101 = arith.constant dense<0.000000e+00> : vector<34xf32>
    %248 = vector.multi_reduction <add>, %247, %cst_101 [1] : vector<34x32xf32> to vector<34xf32>
    %249 = vector.shape_cast %248 : vector<34xf32> to vector<34x1xf32>
    %cst_102 = arith.constant 3.200000e+01 : f32
    %250 = vector.broadcast %cst_102 : f32 to vector<34x1xf32>
    %251 = arith.divf %249, %250 : vector<34x1xf32>
    %cst_103 = arith.constant 9.99999997E-7 : f32
    %252 = vector.broadcast %cst_103 : f32 to vector<34x1xf32>
    %253 = arith.addf %251, %252 : vector<34x1xf32>
    %254 = math.rsqrt %253 : vector<34x1xf32>
    %255 = vector.broadcast %254 : vector<34x1xf32> to vector<34x32xf32>
    %256 = arith.mulf %246, %255 : vector<34x32xf32>
    %257 = vector.broadcast %233 : vector<1x32xf32> to vector<34x32xf32>
    %258 = arith.mulf %256, %257 : vector<34x32xf32>
    %259 = vector.broadcast %234 : vector<1x32xf32> to vector<34x32xf32>
    %260 = arith.addf %258, %259 : vector<34x32xf32>
    %261 = arith.truncf %260 : vector<34x32xf32> to vector<34x32xbf16>
    %c1_104 = arith.constant 1 : index
    %c0_105 = arith.constant 0 : index
    %c0_106 = arith.constant 0 : index
    %262 = vector.load %arg3[%c1_104, %c0_105, %c0_106] : memref<2x32x96xbf16, #tpu.memory_space<vmem>>, vector<1x32x96xbf16>
    %263 = vector.shape_cast %262 : vector<1x32x96xbf16> to vector<32x96xbf16>
    %cst_107 = arith.constant dense<0.000000e+00> : vector<34x96xf32>
    %264 = tpu.matmul %261, %263, %cst_107 {dimension_numbers = #tpu.dot_dimension_numbers<[1], [0], [0], [1], [0, 0, 1, 1], [], []>} : vector<34x32xbf16>, vector<32x96xbf16>, vector<34x96xf32> -> vector<34x96xf32>
    %265 = vector.broadcast %235 : vector<1x96xf32> to vector<34x96xf32>
    %266 = arith.addf %264, %265 : vector<34x96xf32>
    %267 = vector.extract_strided_slice %266 {offsets = [0, 0], sizes = [17, 96], strides = [1, 1]} : vector<34x96xf32> to vector<17x96xf32>
    %268 = arith.truncf %267 : vector<17x96xf32> to vector<17x96xbf16>
    %269 = vector.extract_strided_slice %268 {offsets = [0, 0], sizes = [17, 8], strides = [1, 1]} : vector<17x96xbf16> to vector<17x8xbf16>
    %270 = vector.extract_strided_slice %268 {offsets = [0, 8], sizes = [17, 8], strides = [1, 1]} : vector<17x96xbf16> to vector<17x8xbf16>
    %271 = vector.extract_strided_slice %268 {offsets = [0, 16], sizes = [17, 8], strides = [1, 1]} : vector<17x96xbf16> to vector<17x8xbf16>
    %cst_108 = arith.constant dense<0.000000e+00> : vector<17x17xf32>
    %272 = tpu.matmul %269, %270, %cst_108 {dimension_numbers = #tpu.dot_dimension_numbers<[1], [1], [0], [0], [0, 0, 1, 0], [], []>} : vector<17x8xbf16>, vector<17x8xbf16>, vector<17x17xf32> -> vector<17x17xf32>
    %cst_109 = arith.constant dense<0xFF800000> : vector<17xf32>
    %273 = vector.multi_reduction <maximumf>, %272, %cst_109 [1] : vector<17x17xf32> to vector<17xf32>
    %274 = vector.shape_cast %273 : vector<17xf32> to vector<17x1xf32>
    %275 = vector.broadcast %274 : vector<17x1xf32> to vector<17x17xf32>
    %276 = arith.subf %272, %275 : vector<17x17xf32>
    %277 = math.exp %276 : vector<17x17xf32>
    %cst_110 = arith.constant dense<0.000000e+00> : vector<17xf32>
    %278 = vector.multi_reduction <add>, %277, %cst_110 [1] : vector<17x17xf32> to vector<17xf32>
    %279 = vector.shape_cast %278 : vector<17xf32> to vector<17x1xf32>
    %280 = tpu.reciprocal %279 {approx = true} : vector<17x1xf32> -> vector<17x1xf32>
    %281 = vector.broadcast %280 : vector<17x1xf32> to vector<17x17xf32>
    %282 = arith.mulf %277, %281 : vector<17x17xf32>
    %283 = arith.truncf %282 : vector<17x17xf32> to vector<17x17xbf16>
    %cst_111 = arith.constant dense<0.000000e+00> : vector<17x8xf32>
    %284 = tpu.matmul %283, %271, %cst_111 {dimension_numbers = #tpu.dot_dimension_numbers<[1], [0], [0], [1], [0, 0, 1, 1], [], []>} : vector<17x17xbf16>, vector<17x8xbf16>, vector<17x8xf32> -> vector<17x8xf32>
    %c0_112 = arith.constant 0 : index
    %c0_113 = arith.constant 0 : index
    %285 = vector.load %arg9[%c0_112, %c0_113] : memref<34x32xf32, #tpu.memory_space<vmem>>, vector<17x8xf32>
    tpu.vector_store %arg9[%c0_112, %c0_113], %284 {strides = array<i32>} : memref<34x32xf32, #tpu.memory_space<vmem>>, vector<17x8xf32>,
    %286 = vector.extract_strided_slice %268 {offsets = [0, 24], sizes = [17, 8], strides = [1, 1]} : vector<17x96xbf16> to vector<17x8xbf16>
    %287 = vector.extract_strided_slice %268 {offsets = [0, 32], sizes = [17, 8], strides = [1, 1]} : vector<17x96xbf16> to vector<17x8xbf16>
    %288 = vector.extract_strided_slice %268 {offsets = [0, 40], sizes = [17, 8], strides = [1, 1]} : vector<17x96xbf16> to vector<17x8xbf16>
    %cst_114 = arith.constant dense<0.000000e+00> : vector<17x17xf32>
    %289 = tpu.matmul %286, %287, %cst_114 {dimension_numbers = #tpu.dot_dimension_numbers<[1], [1], [0], [0], [0, 0, 1, 0], [], []>} : vector<17x8xbf16>, vector<17x8xbf16>, vector<17x17xf32> -> vector<17x17xf32>
    %cst_115 = arith.constant dense<0xFF800000> : vector<17xf32>
    %290 = vector.multi_reduction <maximumf>, %289, %cst_115 [1] : vector<17x17xf32> to vector<17xf32>
    %291 = vector.shape_cast %290 : vector<17xf32> to vector<17x1xf32>
    %292 = vector.broadcast %291 : vector<17x1xf32> to vector<17x17xf32>
    %293 = arith.subf %289, %292 : vector<17x17xf32>
    %294 = math.exp %293 : vector<17x17xf32>
    %cst_116 = arith.constant dense<0.000000e+00> : vector<17xf32>
    %295 = vector.multi_reduction <add>, %294, %cst_116 [1] : vector<17x17xf32> to vector<17xf32>
    %296 = vector.shape_cast %295 : vector<17xf32> to vector<17x1xf32>
    %297 = tpu.reciprocal %296 {approx = true} : vector<17x1xf32> -> vector<17x1xf32>
    %298 = vector.broadcast %297 : vector<17x1xf32> to vector<17x17xf32>
    %299 = arith.mulf %294, %298 : vector<17x17xf32>
    %300 = arith.truncf %299 : vector<17x17xf32> to vector<17x17xbf16>
    %cst_117 = arith.constant dense<0.000000e+00> : vector<17x8xf32>
    %301 = tpu.matmul %300, %288, %cst_117 {dimension_numbers = #tpu.dot_dimension_numbers<[1], [0], [0], [1], [0, 0, 1, 1], [], []>} : vector<17x17xbf16>, vector<17x8xbf16>, vector<17x8xf32> -> vector<17x8xf32>
    %c0_118 = arith.constant 0 : index
    %c8_119 = arith.constant 8 : index
    %302 = vector.load %arg9[%c0_118, %c8_119] : memref<34x32xf32, #tpu.memory_space<vmem>>, vector<17x8xf32>
    tpu.vector_store %arg9[%c0_118, %c8_119], %301 {strides = array<i32>} : memref<34x32xf32, #tpu.memory_space<vmem>>, vector<17x8xf32>,
    %303 = vector.extract_strided_slice %268 {offsets = [0, 48], sizes = [17, 8], strides = [1, 1]} : vector<17x96xbf16> to vector<17x8xbf16>
    %304 = vector.extract_strided_slice %268 {offsets = [0, 56], sizes = [17, 8], strides = [1, 1]} : vector<17x96xbf16> to vector<17x8xbf16>
    %305 = vector.extract_strided_slice %268 {offsets = [0, 64], sizes = [17, 8], strides = [1, 1]} : vector<17x96xbf16> to vector<17x8xbf16>
    %cst_120 = arith.constant dense<0.000000e+00> : vector<17x17xf32>
    %306 = tpu.matmul %303, %304, %cst_120 {dimension_numbers = #tpu.dot_dimension_numbers<[1], [1], [0], [0], [0, 0, 1, 0], [], []>} : vector<17x8xbf16>, vector<17x8xbf16>, vector<17x17xf32> -> vector<17x17xf32>
    %cst_121 = arith.constant dense<0xFF800000> : vector<17xf32>
    %307 = vector.multi_reduction <maximumf>, %306, %cst_121 [1] : vector<17x17xf32> to vector<17xf32>
    %308 = vector.shape_cast %307 : vector<17xf32> to vector<17x1xf32>
    %309 = vector.broadcast %308 : vector<17x1xf32> to vector<17x17xf32>
    %310 = arith.subf %306, %309 : vector<17x17xf32>
    %311 = math.exp %310 : vector<17x17xf32>
    %cst_122 = arith.constant dense<0.000000e+00> : vector<17xf32>
    %312 = vector.multi_reduction <add>, %311, %cst_122 [1] : vector<17x17xf32> to vector<17xf32>
    %313 = vector.shape_cast %312 : vector<17xf32> to vector<17x1xf32>
    %314 = tpu.reciprocal %313 {approx = true} : vector<17x1xf32> -> vector<17x1xf32>
    %315 = vector.broadcast %314 : vector<17x1xf32> to vector<17x17xf32>
    %316 = arith.mulf %311, %315 : vector<17x17xf32>
    %317 = arith.truncf %316 : vector<17x17xf32> to vector<17x17xbf16>
    %cst_123 = arith.constant dense<0.000000e+00> : vector<17x8xf32>
    %318 = tpu.matmul %317, %305, %cst_123 {dimension_numbers = #tpu.dot_dimension_numbers<[1], [0], [0], [1], [0, 0, 1, 1], [], []>} : vector<17x17xbf16>, vector<17x8xbf16>, vector<17x8xf32> -> vector<17x8xf32>
    %c0_124 = arith.constant 0 : index
    %c16_125 = arith.constant 16 : index
    %319 = vector.load %arg9[%c0_124, %c16_125] : memref<34x32xf32, #tpu.memory_space<vmem>>, vector<17x8xf32>
    tpu.vector_store %arg9[%c0_124, %c16_125], %318 {strides = array<i32>} : memref<34x32xf32, #tpu.memory_space<vmem>>, vector<17x8xf32>,
    %320 = vector.extract_strided_slice %268 {offsets = [0, 72], sizes = [17, 8], strides = [1, 1]} : vector<17x96xbf16> to vector<17x8xbf16>
    %321 = vector.extract_strided_slice %268 {offsets = [0, 80], sizes = [17, 8], strides = [1, 1]} : vector<17x96xbf16> to vector<17x8xbf16>
    %322 = vector.extract_strided_slice %268 {offsets = [0, 88], sizes = [17, 8], strides = [1, 1]} : vector<17x96xbf16> to vector<17x8xbf16>
    %cst_126 = arith.constant dense<0.000000e+00> : vector<17x17xf32>
    %323 = tpu.matmul %320, %321, %cst_126 {dimension_numbers = #tpu.dot_dimension_numbers<[1], [1], [0], [0], [0, 0, 1, 0], [], []>} : vector<17x8xbf16>, vector<17x8xbf16>, vector<17x17xf32> -> vector<17x17xf32>
    %cst_127 = arith.constant dense<0xFF800000> : vector<17xf32>
    %324 = vector.multi_reduction <maximumf>, %323, %cst_127 [1] : vector<17x17xf32> to vector<17xf32>
    %325 = vector.shape_cast %324 : vector<17xf32> to vector<17x1xf32>
    %326 = vector.broadcast %325 : vector<17x1xf32> to vector<17x17xf32>
    %327 = arith.subf %323, %326 : vector<17x17xf32>
    %328 = math.exp %327 : vector<17x17xf32>
    %cst_128 = arith.constant dense<0.000000e+00> : vector<17xf32>
    %329 = vector.multi_reduction <add>, %328, %cst_128 [1] : vector<17x17xf32> to vector<17xf32>
    %330 = vector.shape_cast %329 : vector<17xf32> to vector<17x1xf32>
    %331 = tpu.reciprocal %330 {approx = true} : vector<17x1xf32> -> vector<17x1xf32>
    %332 = vector.broadcast %331 : vector<17x1xf32> to vector<17x17xf32>
    %333 = arith.mulf %328, %332 : vector<17x17xf32>
    %334 = arith.truncf %333 : vector<17x17xf32> to vector<17x17xbf16>
    %cst_129 = arith.constant dense<0.000000e+00> : vector<17x8xf32>
    %335 = tpu.matmul %334, %322, %cst_129 {dimension_numbers = #tpu.dot_dimension_numbers<[1], [0], [0], [1], [0, 0, 1, 1], [], []>} : vector<17x17xbf16>, vector<17x8xbf16>, vector<17x8xf32> -> vector<17x8xf32>
    %c0_130 = arith.constant 0 : index
    %c24_131 = arith.constant 24 : index
    %336 = vector.load %arg9[%c0_130, %c24_131] : memref<34x32xf32, #tpu.memory_space<vmem>>, vector<17x8xf32>
    tpu.vector_store %arg9[%c0_130, %c24_131], %335 {strides = array<i32>} : memref<34x32xf32, #tpu.memory_space<vmem>>, vector<17x8xf32>,
    %337 = vector.extract_strided_slice %266 {offsets = [17, 0], sizes = [17, 96], strides = [1, 1]} : vector<34x96xf32> to vector<17x96xf32>
    %338 = arith.truncf %337 : vector<17x96xf32> to vector<17x96xbf16>
    %339 = vector.extract_strided_slice %338 {offsets = [0, 0], sizes = [17, 8], strides = [1, 1]} : vector<17x96xbf16> to vector<17x8xbf16>
    %340 = vector.extract_strided_slice %338 {offsets = [0, 8], sizes = [17, 8], strides = [1, 1]} : vector<17x96xbf16> to vector<17x8xbf16>
    %341 = vector.extract_strided_slice %338 {offsets = [0, 16], sizes = [17, 8], strides = [1, 1]} : vector<17x96xbf16> to vector<17x8xbf16>
    %cst_132 = arith.constant dense<0.000000e+00> : vector<17x17xf32>
    %342 = tpu.matmul %339, %340, %cst_132 {dimension_numbers = #tpu.dot_dimension_numbers<[1], [1], [0], [0], [0, 0, 1, 0], [], []>} : vector<17x8xbf16>, vector<17x8xbf16>, vector<17x17xf32> -> vector<17x17xf32>
    %cst_133 = arith.constant dense<0xFF800000> : vector<17xf32>
    %343 = vector.multi_reduction <maximumf>, %342, %cst_133 [1] : vector<17x17xf32> to vector<17xf32>
    %344 = vector.shape_cast %343 : vector<17xf32> to vector<17x1xf32>
    %345 = vector.broadcast %344 : vector<17x1xf32> to vector<17x17xf32>
    %346 = arith.subf %342, %345 : vector<17x17xf32>
    %347 = math.exp %346 : vector<17x17xf32>
    %cst_134 = arith.constant dense<0.000000e+00> : vector<17xf32>
    %348 = vector.multi_reduction <add>, %347, %cst_134 [1] : vector<17x17xf32> to vector<17xf32>
    %349 = vector.shape_cast %348 : vector<17xf32> to vector<17x1xf32>
    %350 = tpu.reciprocal %349 {approx = true} : vector<17x1xf32> -> vector<17x1xf32>
    %351 = vector.broadcast %350 : vector<17x1xf32> to vector<17x17xf32>
    %352 = arith.mulf %347, %351 : vector<17x17xf32>
    %353 = arith.truncf %352 : vector<17x17xf32> to vector<17x17xbf16>
    %cst_135 = arith.constant dense<0.000000e+00> : vector<17x8xf32>
    %354 = tpu.matmul %353, %341, %cst_135 {dimension_numbers = #tpu.dot_dimension_numbers<[1], [0], [0], [1], [0, 0, 1, 1], [], []>} : vector<17x17xbf16>, vector<17x8xbf16>, vector<17x8xf32> -> vector<17x8xf32>
    %c17_136 = arith.constant 17 : index
    %c0_137 = arith.constant 0 : index
    %355 = vector.load %arg9[%c17_136, %c0_137] : memref<34x32xf32, #tpu.memory_space<vmem>>, vector<17x8xf32>
    tpu.vector_store %arg9[%c17_136, %c0_137], %354 {strides = array<i32>} : memref<34x32xf32, #tpu.memory_space<vmem>>, vector<17x8xf32>,
    %356 = vector.extract_strided_slice %338 {offsets = [0, 24], sizes = [17, 8], strides = [1, 1]} : vector<17x96xbf16> to vector<17x8xbf16>
    %357 = vector.extract_strided_slice %338 {offsets = [0, 32], sizes = [17, 8], strides = [1, 1]} : vector<17x96xbf16> to vector<17x8xbf16>
    %358 = vector.extract_strided_slice %338 {offsets = [0, 40], sizes = [17, 8], strides = [1, 1]} : vector<17x96xbf16> to vector<17x8xbf16>
    %cst_138 = arith.constant dense<0.000000e+00> : vector<17x17xf32>
    %359 = tpu.matmul %356, %357, %cst_138 {dimension_numbers = #tpu.dot_dimension_numbers<[1], [1], [0], [0], [0, 0, 1, 0], [], []>} : vector<17x8xbf16>, vector<17x8xbf16>, vector<17x17xf32> -> vector<17x17xf32>
    %cst_139 = arith.constant dense<0xFF800000> : vector<17xf32>
    %360 = vector.multi_reduction <maximumf>, %359, %cst_139 [1] : vector<17x17xf32> to vector<17xf32>
    %361 = vector.shape_cast %360 : vector<17xf32> to vector<17x1xf32>
    %362 = vector.broadcast %361 : vector<17x1xf32> to vector<17x17xf32>
    %363 = arith.subf %359, %362 : vector<17x17xf32>
    %364 = math.exp %363 : vector<17x17xf32>
    %cst_140 = arith.constant dense<0.000000e+00> : vector<17xf32>
    %365 = vector.multi_reduction <add>, %364, %cst_140 [1] : vector<17x17xf32> to vector<17xf32>
    %366 = vector.shape_cast %365 : vector<17xf32> to vector<17x1xf32>
    %367 = tpu.reciprocal %366 {approx = true} : vector<17x1xf32> -> vector<17x1xf32>
    %368 = vector.broadcast %367 : vector<17x1xf32> to vector<17x17xf32>
    %369 = arith.mulf %364, %368 : vector<17x17xf32>
    %370 = arith.truncf %369 : vector<17x17xf32> to vector<17x17xbf16>
    %cst_141 = arith.constant dense<0.000000e+00> : vector<17x8xf32>
    %371 = tpu.matmul %370, %358, %cst_141 {dimension_numbers = #tpu.dot_dimension_numbers<[1], [0], [0], [1], [0, 0, 1, 1], [], []>} : vector<17x17xbf16>, vector<17x8xbf16>, vector<17x8xf32> -> vector<17x8xf32>
    %c17_142 = arith.constant 17 : index
    %c8_143 = arith.constant 8 : index
    %372 = vector.load %arg9[%c17_142, %c8_143] : memref<34x32xf32, #tpu.memory_space<vmem>>, vector<17x8xf32>
    tpu.vector_store %arg9[%c17_142, %c8_143], %371 {strides = array<i32>} : memref<34x32xf32, #tpu.memory_space<vmem>>, vector<17x8xf32>,
    %373 = vector.extract_strided_slice %338 {offsets = [0, 48], sizes = [17, 8], strides = [1, 1]} : vector<17x96xbf16> to vector<17x8xbf16>
    %374 = vector.extract_strided_slice %338 {offsets = [0, 56], sizes = [17, 8], strides = [1, 1]} : vector<17x96xbf16> to vector<17x8xbf16>
    %375 = vector.extract_strided_slice %338 {offsets = [0, 64], sizes = [17, 8], strides = [1, 1]} : vector<17x96xbf16> to vector<17x8xbf16>
    %cst_144 = arith.constant dense<0.000000e+00> : vector<17x17xf32>
    %376 = tpu.matmul %373, %374, %cst_144 {dimension_numbers = #tpu.dot_dimension_numbers<[1], [1], [0], [0], [0, 0, 1, 0], [], []>} : vector<17x8xbf16>, vector<17x8xbf16>, vector<17x17xf32> -> vector<17x17xf32>
    %cst_145 = arith.constant dense<0xFF800000> : vector<17xf32>
    %377 = vector.multi_reduction <maximumf>, %376, %cst_145 [1] : vector<17x17xf32> to vector<17xf32>
    %378 = vector.shape_cast %377 : vector<17xf32> to vector<17x1xf32>
    %379 = vector.broadcast %378 : vector<17x1xf32> to vector<17x17xf32>
    %380 = arith.subf %376, %379 : vector<17x17xf32>
    %381 = math.exp %380 : vector<17x17xf32>
    %cst_146 = arith.constant dense<0.000000e+00> : vector<17xf32>
    %382 = vector.multi_reduction <add>, %381, %cst_146 [1] : vector<17x17xf32> to vector<17xf32>
    %383 = vector.shape_cast %382 : vector<17xf32> to vector<17x1xf32>
    %384 = tpu.reciprocal %383 {approx = true} : vector<17x1xf32> -> vector<17x1xf32>
    %385 = vector.broadcast %384 : vector<17x1xf32> to vector<17x17xf32>
    %386 = arith.mulf %381, %385 : vector<17x17xf32>
    %387 = arith.truncf %386 : vector<17x17xf32> to vector<17x17xbf16>
    %cst_147 = arith.constant dense<0.000000e+00> : vector<17x8xf32>
    %388 = tpu.matmul %387, %375, %cst_147 {dimension_numbers = #tpu.dot_dimension_numbers<[1], [0], [0], [1], [0, 0, 1, 1], [], []>} : vector<17x17xbf16>, vector<17x8xbf16>, vector<17x8xf32> -> vector<17x8xf32>
    %c17_148 = arith.constant 17 : index
    %c16_149 = arith.constant 16 : index
    %389 = vector.load %arg9[%c17_148, %c16_149] : memref<34x32xf32, #tpu.memory_space<vmem>>, vector<17x8xf32>
    tpu.vector_store %arg9[%c17_148, %c16_149], %388 {strides = array<i32>} : memref<34x32xf32, #tpu.memory_space<vmem>>, vector<17x8xf32>,
    %390 = vector.extract_strided_slice %338 {offsets = [0, 72], sizes = [17, 8], strides = [1, 1]} : vector<17x96xbf16> to vector<17x8xbf16>
    %391 = vector.extract_strided_slice %338 {offsets = [0, 80], sizes = [17, 8], strides = [1, 1]} : vector<17x96xbf16> to vector<17x8xbf16>
    %392 = vector.extract_strided_slice %338 {offsets = [0, 88], sizes = [17, 8], strides = [1, 1]} : vector<17x96xbf16> to vector<17x8xbf16>
    %cst_150 = arith.constant dense<0.000000e+00> : vector<17x17xf32>
    %393 = tpu.matmul %390, %391, %cst_150 {dimension_numbers = #tpu.dot_dimension_numbers<[1], [1], [0], [0], [0, 0, 1, 0], [], []>} : vector<17x8xbf16>, vector<17x8xbf16>, vector<17x17xf32> -> vector<17x17xf32>
    %cst_151 = arith.constant dense<0xFF800000> : vector<17xf32>
    %394 = vector.multi_reduction <maximumf>, %393, %cst_151 [1] : vector<17x17xf32> to vector<17xf32>
    %395 = vector.shape_cast %394 : vector<17xf32> to vector<17x1xf32>
    %396 = vector.broadcast %395 : vector<17x1xf32> to vector<17x17xf32>
    %397 = arith.subf %393, %396 : vector<17x17xf32>
    %398 = math.exp %397 : vector<17x17xf32>
    %cst_152 = arith.constant dense<0.000000e+00> : vector<17xf32>
    %399 = vector.multi_reduction <add>, %398, %cst_152 [1] : vector<17x17xf32> to vector<17xf32>
    %400 = vector.shape_cast %399 : vector<17xf32> to vector<17x1xf32>
    %401 = tpu.reciprocal %400 {approx = true} : vector<17x1xf32> -> vector<17x1xf32>
    %402 = vector.broadcast %401 : vector<17x1xf32> to vector<17x17xf32>
    %403 = arith.mulf %398, %402 : vector<17x17xf32>
    %404 = arith.truncf %403 : vector<17x17xf32> to vector<17x17xbf16>
    %cst_153 = arith.constant dense<0.000000e+00> : vector<17x8xf32>
    %405 = tpu.matmul %404, %392, %cst_153 {dimension_numbers = #tpu.dot_dimension_numbers<[1], [0], [0], [1], [0, 0, 1, 1], [], []>} : vector<17x17xbf16>, vector<17x8xbf16>, vector<17x8xf32> -> vector<17x8xf32>
    %c17_154 = arith.constant 17 : index
    %c24_155 = arith.constant 24 : index
    %406 = vector.load %arg9[%c17_154, %c24_155] : memref<34x32xf32, #tpu.memory_space<vmem>>, vector<17x8xf32>
    tpu.vector_store %arg9[%c17_154, %c24_155], %405 {strides = array<i32>} : memref<34x32xf32, #tpu.memory_space<vmem>>, vector<17x8xf32>,
    %c0_156 = arith.constant 0 : index
    %c0_157 = arith.constant 0 : index
    %407 = vector.load %arg9[%c0_156, %c0_157] : memref<34x32xf32, #tpu.memory_space<vmem>>, vector<34x32xf32>
    %408 = arith.truncf %407 : vector<34x32xf32> to vector<34x32xbf16>
    %c1_158 = arith.constant 1 : index
    %c0_159 = arith.constant 0 : index
    %c0_160 = arith.constant 0 : index
    %409 = vector.load %arg4[%c1_158, %c0_159, %c0_160] : memref<2x32x32xbf16, #tpu.memory_space<vmem>>, vector<1x32x32xbf16>
    %410 = vector.shape_cast %409 : vector<1x32x32xbf16> to vector<32x32xbf16>
    %cst_161 = arith.constant dense<0.000000e+00> : vector<34x32xf32>
    %411 = tpu.matmul %408, %410, %cst_161 {dimension_numbers = #tpu.dot_dimension_numbers<[1], [0], [0], [1], [0, 0, 1, 1], [], []>} : vector<34x32xbf16>, vector<32x32xbf16>, vector<34x32xf32> -> vector<34x32xf32>
    %412 = arith.addf %232, %411 : vector<34x32xf32>
    %413 = vector.broadcast %236 : vector<1x32xf32> to vector<34x32xf32>
    %414 = arith.addf %412, %413 : vector<34x32xf32>
    %cst_162 = arith.constant dense<0.000000e+00> : vector<34xf32>
    %415 = vector.multi_reduction <add>, %414, %cst_162 [1] : vector<34x32xf32> to vector<34xf32>
    %416 = vector.shape_cast %415 : vector<34xf32> to vector<34x1xf32>
    %cst_163 = arith.constant 3.200000e+01 : f32
    %417 = vector.broadcast %cst_163 : f32 to vector<34x1xf32>
    %418 = arith.divf %416, %417 : vector<34x1xf32>
    %419 = vector.broadcast %418 : vector<34x1xf32> to vector<34x32xf32>
    %420 = arith.subf %414, %419 : vector<34x32xf32>
    %421 = arith.mulf %420, %420 : vector<34x32xf32>
    %cst_164 = arith.constant dense<0.000000e+00> : vector<34xf32>
    %422 = vector.multi_reduction <add>, %421, %cst_164 [1] : vector<34x32xf32> to vector<34xf32>
    %423 = vector.shape_cast %422 : vector<34xf32> to vector<34x1xf32>
    %cst_165 = arith.constant 3.200000e+01 : f32
    %424 = vector.broadcast %cst_165 : f32 to vector<34x1xf32>
    %425 = arith.divf %423, %424 : vector<34x1xf32>
    %cst_166 = arith.constant 9.99999997E-7 : f32
    %426 = vector.broadcast %cst_166 : f32 to vector<34x1xf32>
    %427 = arith.addf %425, %426 : vector<34x1xf32>
    %428 = math.rsqrt %427 : vector<34x1xf32>
    %429 = vector.broadcast %428 : vector<34x1xf32> to vector<34x32xf32>
    %430 = arith.mulf %420, %429 : vector<34x32xf32>
    %431 = vector.broadcast %237 : vector<1x32xf32> to vector<34x32xf32>
    %432 = arith.mulf %430, %431 : vector<34x32xf32>
    %433 = vector.broadcast %238 : vector<1x32xf32> to vector<34x32xf32>
    %434 = arith.addf %432, %433 : vector<34x32xf32>
    %435 = arith.truncf %434 : vector<34x32xf32> to vector<34x32xbf16>
    %c1_167 = arith.constant 1 : index
    %c0_168 = arith.constant 0 : index
    %c0_169 = arith.constant 0 : index
    %436 = vector.load %arg5[%c1_167, %c0_168, %c0_169] : memref<2x32x64xbf16, #tpu.memory_space<vmem>>, vector<1x32x64xbf16>
    %437 = vector.shape_cast %436 : vector<1x32x64xbf16> to vector<32x64xbf16>
    %cst_170 = arith.constant dense<0.000000e+00> : vector<34x64xf32>
    %438 = tpu.matmul %435, %437, %cst_170 {dimension_numbers = #tpu.dot_dimension_numbers<[1], [0], [0], [1], [0, 0, 1, 1], [], []>} : vector<34x32xbf16>, vector<32x64xbf16>, vector<34x64xf32> -> vector<34x64xf32>
    %439 = vector.broadcast %239 : vector<1x64xf32> to vector<34x64xf32>
    %440 = arith.addf %438, %439 : vector<34x64xf32>
    %441 = arith.mulf %440, %440 : vector<34x64xf32>
    %442 = arith.mulf %440, %441 : vector<34x64xf32>
    %cst_171 = arith.constant 4.471500e-02 : f32
    %443 = vector.broadcast %cst_171 : f32 to vector<34x64xf32>
    %444 = arith.mulf %443, %442 : vector<34x64xf32>
    %445 = arith.addf %440, %444 : vector<34x64xf32>
    %cst_172 = arith.constant 0.797884583 : f32
    %446 = vector.broadcast %cst_172 : f32 to vector<34x64xf32>
    %447 = arith.mulf %446, %445 : vector<34x64xf32>
    %448 = math.tanh %447 : vector<34x64xf32>
    %cst_173 = arith.constant 1.000000e+00 : f32
    %449 = vector.broadcast %cst_173 : f32 to vector<34x64xf32>
    %450 = arith.addf %449, %448 : vector<34x64xf32>
    %cst_174 = arith.constant 5.000000e-01 : f32
    %451 = vector.broadcast %cst_174 : f32 to vector<34x64xf32>
    %452 = arith.mulf %451, %450 : vector<34x64xf32>
    %453 = arith.mulf %440, %452 : vector<34x64xf32>
    %454 = arith.truncf %453 : vector<34x64xf32> to vector<34x64xbf16>
    %c1_175 = arith.constant 1 : index
    %c0_176 = arith.constant 0 : index
    %c0_177 = arith.constant 0 : index
    %455 = vector.load %arg6[%c1_175, %c0_176, %c0_177] : memref<2x64x32xbf16, #tpu.memory_space<vmem>>, vector<1x64x32xbf16>
    %456 = vector.shape_cast %455 : vector<1x64x32xbf16> to vector<64x32xbf16>
    %cst_178 = arith.constant dense<0.000000e+00> : vector<34x32xf32>
    %457 = tpu.matmul %454, %456, %cst_178 {dimension_numbers = #tpu.dot_dimension_numbers<[1], [0], [0], [1], [0, 0, 1, 1], [], []>} : vector<34x64xbf16>, vector<64x32xbf16>, vector<34x32xf32> -> vector<34x32xf32>
    %458 = vector.broadcast %240 : vector<1x32xf32> to vector<34x32xf32>
    %459 = arith.addf %457, %458 : vector<34x32xf32>
    %460 = arith.addf %414, %459 : vector<34x32xf32>
    %c16_179 = arith.constant 16 : index
    %c0_180 = arith.constant 0 : index
    %461 = vector.load %arg7[%c16_179, %c0_180] : memref<18x96xf32, #tpu.memory_space<vmem>>, vector<1x32xf32>
    %c17_181 = arith.constant 17 : index
    %c0_182 = arith.constant 0 : index
    %462 = vector.load %arg7[%c17_181, %c0_182] : memref<18x96xf32, #tpu.memory_space<vmem>>, vector<1x32xf32>
    %463 = vector.extract_strided_slice %460 {offsets = [0, 0], sizes = [16, 32], strides = [1, 1]} : vector<34x32xf32> to vector<16x32xf32>
    %cst_183 = arith.constant dense<0.000000e+00> : vector<16xf32>
    %464 = vector.multi_reduction <add>, %463, %cst_183 [1] : vector<16x32xf32> to vector<16xf32>
    %465 = vector.shape_cast %464 : vector<16xf32> to vector<16x1xf32>
    %cst_184 = arith.constant 3.200000e+01 : f32
    %466 = vector.broadcast %cst_184 : f32 to vector<16x1xf32>
    %467 = arith.divf %465, %466 : vector<16x1xf32>
    %468 = vector.broadcast %467 : vector<16x1xf32> to vector<16x32xf32>
    %469 = arith.subf %463, %468 : vector<16x32xf32>
    %470 = arith.mulf %469, %469 : vector<16x32xf32>
    %cst_185 = arith.constant dense<0.000000e+00> : vector<16xf32>
    %471 = vector.multi_reduction <add>, %470, %cst_185 [1] : vector<16x32xf32> to vector<16xf32>
    %472 = vector.shape_cast %471 : vector<16xf32> to vector<16x1xf32>
    %cst_186 = arith.constant 3.200000e+01 : f32
    %473 = vector.broadcast %cst_186 : f32 to vector<16x1xf32>
    %474 = arith.divf %472, %473 : vector<16x1xf32>
    %cst_187 = arith.constant 9.99999997E-7 : f32
    %475 = vector.broadcast %cst_187 : f32 to vector<16x1xf32>
    %476 = arith.addf %474, %475 : vector<16x1xf32>
    %477 = math.rsqrt %476 : vector<16x1xf32>
    %478 = vector.broadcast %477 : vector<16x1xf32> to vector<16x32xf32>
    %479 = arith.mulf %469, %478 : vector<16x32xf32>
    %480 = vector.broadcast %461 : vector<1x32xf32> to vector<16x32xf32>
    %481 = arith.mulf %479, %480 : vector<16x32xf32>
    %482 = vector.broadcast %462 : vector<1x32xf32> to vector<16x32xf32>
    %483 = arith.addf %481, %482 : vector<16x32xf32>
    %c0_188 = arith.constant 0 : index
    %c0_189 = arith.constant 0 : index
    %c0_190 = arith.constant 0 : index
    %484 = vector.load %arg8[%c0_188, %c0_189, %c0_190] : memref<2x16x32xf32, #tpu.memory_space<vmem>>, vector<1x16x32xf32>
    %485 = vector.shape_cast %484 : vector<1x16x32xf32> to vector<16x32xf32>
    %486 = vector.shape_cast %483 : vector<16x32xf32> to vector<1x16x32xf32>
    tpu.vector_store %arg8[%c0_188, %c0_189, %c0_190], %486 {strides = array<i32>} : memref<2x16x32xf32, #tpu.memory_space<vmem>>, vector<1x16x32xf32>,
    %487 = vector.extract_strided_slice %460 {offsets = [17, 0], sizes = [16, 32], strides = [1, 1]} : vector<34x32xf32> to vector<16x32xf32>
    %cst_191 = arith.constant dense<0.000000e+00> : vector<16xf32>
    %488 = vector.multi_reduction <add>, %487, %cst_191 [1] : vector<16x32xf32> to vector<16xf32>
    %489 = vector.shape_cast %488 : vector<16xf32> to vector<16x1xf32>
    %cst_192 = arith.constant 3.200000e+01 : f32
    %490 = vector.broadcast %cst_192 : f32 to vector<16x1xf32>
    %491 = arith.divf %489, %490 : vector<16x1xf32>
    %492 = vector.broadcast %491 : vector<16x1xf32> to vector<16x32xf32>
    %493 = arith.subf %487, %492 : vector<16x32xf32>
    %494 = arith.mulf %493, %493 : vector<16x32xf32>
    %cst_193 = arith.constant dense<0.000000e+00> : vector<16xf32>
    %495 = vector.multi_reduction <add>, %494, %cst_193 [1] : vector<16x32xf32> to vector<16xf32>
    %496 = vector.shape_cast %495 : vector<16xf32> to vector<16x1xf32>
    %cst_194 = arith.constant 3.200000e+01 : f32
    %497 = vector.broadcast %cst_194 : f32 to vector<16x1xf32>
    %498 = arith.divf %496, %497 : vector<16x1xf32>
    %cst_195 = arith.constant 9.99999997E-7 : f32
    %499 = vector.broadcast %cst_195 : f32 to vector<16x1xf32>
    %500 = arith.addf %498, %499 : vector<16x1xf32>
    %501 = math.rsqrt %500 : vector<16x1xf32>
    %502 = vector.broadcast %501 : vector<16x1xf32> to vector<16x32xf32>
    %503 = arith.mulf %493, %502 : vector<16x32xf32>
    %504 = vector.broadcast %461 : vector<1x32xf32> to vector<16x32xf32>
    %505 = arith.mulf %503, %504 : vector<16x32xf32>
    %506 = vector.broadcast %462 : vector<1x32xf32> to vector<16x32xf32>
    %507 = arith.addf %505, %506 : vector<16x32xf32>
    %c1_196 = arith.constant 1 : index
    %c0_197 = arith.constant 0 : index
    %c0_198 = arith.constant 0 : index
    %508 = vector.load %arg8[%c1_196, %c0_197, %c0_198] : memref<2x16x32xf32, #tpu.memory_space<vmem>>, vector<1x16x32xf32>
    %509 = vector.shape_cast %508 : vector<1x16x32xf32> to vector<16x32xf32>
    %510 = vector.shape_cast %507 : vector<16x32xf32> to vector<1x16x32xf32>
    tpu.vector_store %arg8[%c1_196, %c0_197, %c0_198], %510 {strides = array<i32>} : memref<2x16x32xf32, #tpu.memory_space<vmem>>, vector<1x16x32xf32>,
    return
  }
}

</mosaic_0001>

<bundles_post_ra>
// kernel: tile.9
= control target key start
LH: loop header
LB: loop body
LE: loop exit
PB: predicated region body
PF: predicated region fallthrough
CT: control target
= control target key end

     0   :  { %vm3_vm0 = vcmask 261120   ;;  %s11_s6 = smov 3  ;;  %s74_s0 = inlined_call_operand.vmem [shape: f32[2,17,32], index: 0, kind: input, shape index: {}]   ;;  %s75_s1 = inlined_call_operand.vmem [shape: f32[34,32], index: 1, kind: output, shape index: {}]  }
   0x1   :  { %v2_v0 = vld [vmem:[%s74_s0] sm:$0xff]   ;;  %v26_v1 = vld [vmem:[%s74_s0 + $0x8] sm:$0xff]  }
   0x2   :  { %v28_v2 = vld [vmem:[%s74_s0 + $0x10] ss:$8 sm:%s11_s6]   ;;  %4 = vst.msk [vmem:[%s75_s1] sm:$0xff] %vm3_vm0, %v2_v0   ;;  %27 = vst.msk [vmem:[%s75_s1 + $0x8] sm:$0xff] %vm3_vm0, %v26_v1  }
   0x3   :  { %29 = vst.msk [vmem:[%s75_s1 + $0x10] sm:$0x3] %vm3_vm0, %v28_v2   ;;  %v30_v3 = vld [vmem:[%s74_s0 + $0x19] sm:$0xff]   ;;  %v32_v4 = vld [vmem:[%s74_s0 + $0x21] sm:$0xff]  }
   0x4   :  { %31 = vst.msk [vmem:[%s75_s1 + $0x12] sm:$0xff] %vm3_vm0, %v30_v3   ;;  %33 = vst.msk [vmem:[%s75_s1 + $0x1a] sm:$0xff] %vm3_vm0, %v32_v4  }

// kernel: _lambda_.1
= control target key start
LH: loop header
LB: loop body
LE: loop exit
PB: predicated region body
PF: predicated region fallthrough
CT: control target
= control target key end

     0   :  { %v5449_v1 = vmov 0.0   ;;  %vm5450_vm0 = vmmov 0   ;;  %vm78_vm1 = vcmask 392192   ;;  %s6621_s0 = inlined_call_operand.vmem [shape: bf16[34,48], index: 0, kind: input, shape index: {}]   ;;  %s6622_s1 = inlined_call_operand.vmem [shape: f32[34,32], index: 1, kind: input, shape index: {}]   ;;  %s6623_s2 = inlined_call_operand.vmem [shape: bf16[48,32], index: 2, kind: input, shape index: {}]   ;;  %s6624_s3 = inlined_call_operand.vmem [shape: bf16[2,32,96], index: 3, kind: input, shape index: {}]   ;;  %s6625_s4 = inlined_call_operand.vmem [shape: bf16[2,32,32], index: 4, kind: input, shape index: {}]   ;;  %s6626_s5 = inlined_call_operand.vmem [shape: bf16[2,32,64], index: 5, kind: input, shape index: {}]   ;;  %s6627_s6 = inlined_call_operand.vmem [shape: bf16[2,64,32], index: 6, kind: input, shape index: {}]   ;;  %s6628_s7 = inlined_call_operand.vmem [shape: f32[18,96], index: 7, kind: input, shape index: {}]   ;;  %s6629_s8 = inlined_call_operand.hbm [shape: f32[2,16,32], index: 8, kind: output, shape index: {}]  }
   0x1   :  { %v5139_v0 = vld [vmem:[%s6623_s2 + $0x10] sm:$0xff]   ;;  %4678 = vmatprep.subr.bf16.mxu0 %v5449_v1  ;;  %4696 = vmatprep.subr.bf16.mxu1 %v5449_v1  ;;  %v5140_v2 = vld [vmem:[%s6623_s2 + $0x8] sm:$0xff]   ;;  %v5141_v3 = vld [vmem:[%s6623_s2] sm:$0xff]  }
   0x2   :  { %4679 = vmatpush3.bf16.msra.mxu0 %v5139_v0  ;;  %4684 = vmatprep.mubr.msk.bf16.mxu0 %vm5450_vm0, %v5449_v1  ;;  %v5142_v4 = vld [vmem:[%s6621_s0] sm:$0xff]   ;;  %v5143_v5 = vld [vmem:[%s6621_s0 + $0x8] sm:$0xff]  }
   0x3   :  { %4680 = vmatprep.subr.bf16.mxu0 %v5449_v1  ;;  %4700 = vmatprep.mubr.msk.bf16.mxu1 %vm5450_vm0, %v5449_v1 }
   0x6   :  { %4681 = vmatpush3.bf16.msra.mxu0 %v5140_v2 }
   0x7   :  { %4682 = vmatprep.subr.bf16.mxu0 %v5449_v1 }
   0xa   :  { %4683 = vmatpush3.bf16.msra.mxu0 %v5141_v3 }
   0xd   :  { %4685 = vmatmul.mubr.msk.bf16.vlgmr.msra.gmra.mxu0 %vm78_vm1, %v5142_v4 }
   0xe   :  { %4688 = vmatprep.mubr.msk.bf16.mxu0 %vm5450_vm0, %v5449_v1 }
   0xf   :  { %13 = vsyncpa [#allocation4], 0  ;;  %v5144_v6 = vld [vmem:[%s6621_s0 + $0x10] ss:$0 sps:$4 sm:$0x11]   ;;  %v42_v7 = vld [vmem:[%s6622_s1] sm:$0xff] }
  0x10   :  { %vm152_vm2 = vcmask 261120   ;;  %v43_v11 = vld [vmem:[%s6622_s1 + $0x8] sm:$0xff]  ;;  %v44_v16 = vld [vmem:[%s6622_s1 + $0x10] sm:$0xff]  ;;  %v45_v21 = vld [vmem:[%s6622_s1 + $0x18] sm:$0xff]  ;;  %vm165_vm3 = vcmask 254976   ;;  %vm334_vm4 = vcmask 64512  }
  0x11   :  { %v46_v42 = vld [vmem:[%s6622_s1 + $0x20] sm:$0x3]  ;;  %v5145_v54 = vld [vmem:[%s6624_s3 + $0x8] sm:$0xff]   ;;  %s5451_s12 = smov 120   ;;  %s5452_s13 = smov 96   ;;  %vm395_vm6 = vcmask 138240  }
  0x12   :  { %4697 = vmatpush3.bf16.msra.mxu1 %v5145_v54  ;;  %v5146_v55 = vld [vmem:[%s6624_s3] sm:$0xff]   ;;  %s5453_s14 = smov 104   ;;  %vm1049_vm5 = vsmask.f32 7424  ;;  %vm402_vm7 = vcmask 131072   ;;  %s5454_s2 = smov 112  }
  0x13   :  { %4698 = vmatprep.subr.bf16.mxu1 %v5449_v1  ;;  %s5455_s15 = smov 88   ;;  %s5456_s16 = smov 72   ;;  %vm443_vm8 = vcmask 1040384   ;;  %vm499_vm9 = vcmask 57344   ;;  %vm678_vm10 = vcmask 130112   ;;  %vm860_vm11 = vcmask 195712  }
  0x14   :  { %s5457_s17 = smov 80   ;;  %s5459_s18 = smov 64   ;;  %vm1042_vm12 = vcmask 261312   ;;  %vm681_vm13 = vcmask 122944   ;;  %vm863_vm14 = vcmask 188544   ;;  %vm1045_vm15 = vcmask 254144  }
  0x15   :  { %4689 = vmatmul.mubr.msk.bf16.gmra.mxu0 %vm78_vm1, %v5143_v5  ;;  %s5460_s19 = smov 48   ;;  %s5461_s0 = smov 56  }
  0x16   :  { %4692 = vmatprep.mubr.msk.bf16.mxu0 %vm5450_vm0, %v5449_v1  ;;  %4699 = vmatpush3.bf16.msra.mxu1 %v5146_v55  ;;  %s5462_s20 = smov 40   ;;  %s5463_s21 = smov 8  }
  0x17   :  { %s5464_s22 = smov 16   ;;  %s5465_s23 = smov 24  }
  0x1d   :  { %4693 = vmatmul.mubr.msk.bf16.gmra.mxu0 %vm78_vm1, %v5144_v6  ;;  %vm2126_vm1 = vcmask 523264  }
  0xcd   :  { %v122_v8 = vpop.f32.mrf.mxu0 }
  0xce   :  { %v5546_v9 = vadd.f32 %v122_v8, %v42_v7 }
  0xcf   :  { %v4686_v10 = vpop.f32.mrf.mxu0 }
  0xd0   :  { %v153_v12 = vsel %vm152_vm2, %v5546_v9, 0.0 }
  0xd1   :  { %154 = vadd.xlane.f32.xlu0 %v153_v12  ;;  %v125_v13 = vpop.f32.mrf.mxu0 }
  0xd2   :  { %v5553_v14 = vadd.f32 %v125_v13, %v43_v11  ;;  %v4354_v13 = vld [vmem:[%s6628_s7] ss:$0 sm:$0xff] }
  0xd3   :  { %v4687_v15 = vpop.f32.mrf.mxu0 }
  0xd4   :  { %v156_v17 = vsel %vm152_vm2, %v5553_v14, 0.0 }
  0xd5   :  { %157 = vadd.xlane.f32.xlu0 %v156_v17  ;;  %v130_v18 = vpop.f32.mrf.mxu0 }
  0xd6   :  { %v5560_v19 = vadd.f32 %v130_v18, %v44_v16  ;;  %v4355_v18 = vld [vmem:[%s6628_s7 + $0x1] ss:$0 sm:$0xff] }
  0xd7   :  { %v4690_v20 = vpop.f32.mrf.mxu0 }
  0xd8   :  { %v159_v22 = vsel %vm152_vm2, %v5560_v19, 0.0 }
  0xd9   :  { %160 = vadd.xlane.f32.xlu1 %v159_v22  ;;  %v133_v23 = vpop.f32.mrf.mxu0 }
  0xda   :  { %v5567_v24 = vadd.f32 %v133_v23, %v45_v21 }
  0xdb   :  { %v4691_v25 = vpop.f32.mrf.mxu0 }
  0xdc   :  { %v162_v26 = vsel %vm152_vm2, %v5567_v24, 0.0 }
  0xdd   :  { %163 = vadd.xlane.f32.xlu1 %v162_v26  ;;  %v138_v27 = vpop.f32.mrf.mxu0 }
  0xde   :  { %v5579_v48 = vadd.f32 %v138_v27, %v46_v42 }
  0xdf   :  { %v4694_v28 = vpop.f32.mrf.mxu0 }
  0xe0   :  { %v166_v52 = vsel %vm165_vm3, %v5579_v48, 0.0 }
  0xe1   :  { %v141_v29 = vpop.f32.mrf.mxu0 }
  0xe3   :  { %v4695_v30 = vpop.f32.mrf.mxu0 }
 0x15a   :  { %v155_v31 = vpop.xlane.xlu0 %154 }
 0x15b   :  { %v170_v32 = vmul.f32 0.03125, %v155_v31 }
 0x15d   :  { %v175_v33 = vsub.f32 %v5546_v9, %v170_v32 }
 0x15e   :  { %v158_v34 = vpop.xlane.xlu0 %157 }
 0x15f   :  { %v171_v35 = vmul.f32 0.03125, %v158_v34  ;;  %v180_v36 = vmul.f32 %v175_v33, %v175_v33 }
 0x161   :  { %v176_v37 = vsub.f32 %v5553_v14, %v171_v35  ;;  %v185_v38 = vsel %vm152_vm2, %v180_v36, 0.0 }
 0x162   :  { %186 = vadd.xlane.f32.xlu0 %v185_v38  ;;  %v161_v39 = vpop.xlane.xlu1 %160 }
 0x163   :  { %v172_v40 = vmul.f32 0.03125, %v161_v39  ;;  %v181_v41 = vmul.f32 %v176_v37, %v176_v37 }
 0x165   :  { %v177_v43 = vsub.f32 %v5560_v19, %v172_v40  ;;  %v188_v44 = vsel %vm152_vm2, %v181_v41, 0.0 }
 0x166   :  { %189 = vadd.xlane.f32.xlu1 %v188_v44  ;;  %v164_v45 = vpop.xlane.xlu1 %163 }
 0x167   :  { %v173_v46 = vmul.f32 0.03125, %v164_v45  ;;  %v182_v47 = vmul.f32 %v177_v43, %v177_v43 }
 0x169   :  { %v178_v49 = vsub.f32 %v5567_v24, %v173_v46  ;;  %v191_v50 = vsel %vm152_vm2, %v182_v47, 0.0 }
 0x16a   :  { %192 = vadd.xlane.f32.xlu0 %v191_v50 }
 0x16b   :  { %v183_v51 = vmul.f32 %v178_v49, %v178_v49 }
 0x16d   :  { %v194_v53 = vsel %vm152_vm2, %v183_v51, 0.0 }
 0x16e   :  { %195 = vadd.xlane.f32.xlu1 %v194_v53  ;;  %167 = vadd.xlane.f32.xlu0 %v166_v52 }
 0x1eb   :  { %v187_v56 = vpop.xlane.xlu0 %186 }
 0x1ec   :  { %v200_v57 = vmul.f32 0.03125, %v187_v56 }
 0x1ee   :  { %v205_v58 = vadd.f32 1e-06, %v200_v57 }
 0x1ef   :  { %v190_v59 = vpop.xlane.xlu1 %189 }
 0x1f0   :  { %5165 = vrsqrt.f32 %v205_v58  ;;  %v201_v60 = vmul.f32 0.03125, %v190_v59 }
 0x1f2   :  { %v206_v61 = vadd.f32 1e-06, %v201_v60 }
 0x1f3   :  { %v193_v62 = vpop.xlane.xlu0 %192 }
 0x1f4   :  { %5167 = vrsqrt.f32 %v206_v61  ;;  %v202_v63 = vmul.f32 0.03125, %v193_v62 }
 0x1f6   :  { %v207_v0 = vadd.f32 1e-06, %v202_v63 }
 0x1f7   :  { %v196_v2 = vpop.xlane.xlu1 %195  ;;  %v168_v3 = vpop.xlane.xlu0 %167 }
 0x1f8   :  { %5169 = vrsqrt.f32 %v207_v0  ;;  %v203_v4 = vmul.f32 0.03125, %v196_v2  ;;  %v174_v5 = vmul.f32 0.03125, %v168_v3 }
 0x1fa   :  { %v208_v6 = vadd.f32 1e-06, %v203_v4  ;;  %v179_v7 = vsub.f32 %v5579_v48, %v174_v5 }
 0x1fc   :  { %5171 = vrsqrt.f32 %v208_v6  ;;  %v184_v8 = vmul.f32 %v179_v7, %v179_v7 }
 0x1fd   :  { %v5166_v10 = vpop.eup %5165 }
 0x1fe   :  { %v197_v11 = vsel %vm165_vm3, %v184_v8, 0.0  ;;  %v215_v12 = vmul.f32 %v5166_v10, %v175_v33 }
 0x1ff   :  { %198 = vadd.xlane.f32.xlu1 %v197_v11 }
 0x200   :  { %v224_v17 = vmul.f32 %v4354_v13, %v215_v12 }
 0x201   :  { %v5168_v15 = vpop.eup %5167 }
 0x202   :  { %v216_v16 = vmul.f32 %v5168_v15, %v176_v37  ;;  %v233_v22 = vadd.f32 %v4355_v18, %v224_v17 }
 0x204   :  { %v225_v20 = vmul.f32 %v4354_v13, %v216_v16 }
 0x205   :  { %v5170_v21 = vpop.eup %5169 }
 0x206   :  { %v234_v23 = vadd.f32 %v4355_v18, %v225_v20  ;;  %v217_v25 = vmul.f32 %v5170_v21, %v177_v43  ;;  %v4356_v43 = vld [vmem:[%s6628_s7 + $0x2] ss:$0 sm:$0xff] }
 0x208   :  { %v238_v26 = vpack.c.bf16 %v234_v23, %v233_v22  ;;  %v226_v29 = vmul.f32 %v4354_v13, %v217_v25 }
 0x209   :  { %v5172_v27 = vpop.eup %5171 }
 0x20a   :  { %4701 = vmatmul.mubr.msk.bf16.vlgmr.msra.gmra.mxu1 %vm152_vm2, %v238_v26  ;;  %v218_v28 = vmul.f32 %v5172_v27, %v178_v49  ;;  %v235_v31 = vadd.f32 %v4355_v18, %v226_v29 }
 0x20b   :  { %4704 = vmatprep.mubr.msk.bf16.mxu1 %vm5450_vm0, %v5449_v1 }
 0x20c   :  { %v227_v30 = vmul.f32 %v4354_v13, %v218_v28 }
 0x20e   :  { %v236_v32 = vadd.f32 %v4355_v18, %v227_v30 }
 0x210   :  { %v239_v33 = vpack.c.bf16 %v236_v32, %v235_v31 }
 0x212   :  { %4705 = vmatmul.mubr.msk.bf16.gmra.mxu1 %vm152_vm2, %v239_v33 }
 0x213   :  { %4708 = vmatprep.mubr.msk.bf16.mxu1 %vm5450_vm0, %v5449_v1 }
 0x288   :  { %v199_v34 = vpop.xlane.xlu1 %198 }
 0x289   :  { %v204_v35 = vmul.f32 0.03125, %v199_v34 }
 0x28b   :  { %v209_v36 = vadd.f32 1e-06, %v204_v35 }
 0x28d   :  { %5173 = vrsqrt.f32 %v209_v36 }
 0x29a   :  { %v5174_v37 = vpop.eup %5173 }
 0x29b   :  { %v219_v38 = vmul.f32 %v5174_v37, %v179_v7 }
 0x29d   :  { %v228_v39 = vmul.f32 %v4354_v13, %v219_v38 }
 0x29f   :  { %v237_v40 = vadd.f32 %v4355_v18, %v228_v39 }
 0x2a1   :  { %v240_v41 = vpack.c.bf16 %v237_v40, %v237_v40 }
 0x2a3   :  { %4709 = vmatmul.mubr.msk.bf16.gmra.mxu1 %vm152_vm2, %v240_v41 }
 0x2ca   :  { %v304_v42 = vpop.f32.mrf.mxu1 }
 0x2cb   :  { %v305_v46 = vadd.f32 %v4356_v43, %v304_v42 }
 0x2cc   :  { %v4702_v44 = vpop.f32.mrf.mxu1 }
 0x2ce   :  { %v307_v45 = vpop.f32.mrf.mxu1 }
 0x2cf   :  { %v308_v47 = vadd.f32 %v4356_v43, %v307_v45 }
 0x2d0   :  { %v4703_v49 = vpop.f32.mrf.mxu1 }
 0x2d1   :  { %v5611_v50 = vpack.c.bf16 %v308_v47, %v305_v46 }
 0x2d2   :  { %v312_v51 = vpop.f32.mrf.mxu1 }
 0x2d3   :  { %v313_v52 = vadd.f32 %v4356_v43, %v312_v51  ;;  %4716 = vmatprep.mubr.msk.bf16.mxu0 %vm334_vm4, %v5611_v50  ;;  %330 = vrot.lane.b32.xlu1 %v5611_v50, %s5451_s12 }
 0x2d4   :  { %v4706_v53 = vpop.f32.mrf.mxu1 }
 0x2d5   :  { %v5617_v54 = vpack.c.bf16 %v313_v52, %v313_v52 }
 0x2d6   :  { %v315_v55 = vpop.f32.mrf.mxu1 }
 0x2d7   :  { %v316_v56 = vadd.f32 %v4356_v43, %v315_v55  ;;  %332 = vrot.lane.b32.xlu0 %v5617_v54, %s5451_s12  ;;  %507 = vrot.lane.b32.xlu1 %v5617_v54, %s5452_s13 }
 0x2d8   :  { %v4707_v57 = vpop.f32.mrf.mxu1 }
 0x2d9   :  { %v1047_v58 = vpack.c.bf16 %v316_v56, %v313_v52 }
 0x2db   :  { %501 = vrot.lane.b32.xlu0 %v5611_v50, %s5453_s14  ;;  %505 = vrot.lane.b32.xlu1 %v5611_v50, %s5452_s13  ;;  %v1053_v6 = vshll.u32 %v1047_v58, 16  ;;  %v1051_v15 = vshrl.u32 %v1047_v58, 16 }
 0x2dd   :  { %v1055_v11 = vrot.slane %v1053_v6, 1 }
 0x2df   :  { %503 = vrot.lane.b32.xlu1 %v5617_v54, %s5453_s14  ;;  %v1056_v18 = vor.u32 %v1055_v11, %v1051_v15  ;;  %v5458_v11 = vmov 0  }
 0x345   :  { %v331_v59 = vpop.permute.xlu1 %330 }
 0x346   :  { %v342_v3 = vsel %vm334_vm4, %v331_v59, 0 }
 0x349   :  { %v508_v60 = vpop.permute.xlu1 %507  ;;  %v333_v61 = vpop.permute.xlu0 %332 }
 0x34a   :  { %5088 = vmatprep.subr.msk.bf16.mxu0 %vm334_vm4, %v333_v61  ;;  %5090 = vmatprep.subr.msk.bf16.mxu1 %vm334_vm4, %v508_v60  ;;  %v345_v62 = vsel %vm334_vm4, %v333_v61, 0  ;;  %v519_v63 = vsel %vm334_vm4, %v508_v60, 0 }
 0x34b   :  { %4713 = vmatpush3.bf16.xpose.msra.mxu0 %v345_v62  ;;  %4729 = vmatpush3.bf16.xpose.msra.mxu1 %v519_v63 }
 0x34c   :  { %5089 = vmatprep.subr.msk.bf16.mxu0 %vm334_vm4, %v331_v59 }
 0x34d   :  { %v506_v0 = vpop.permute.xlu1 %505  ;;  %v502_v2 = vpop.permute.xlu0 %501 }
 0x34e   :  { %5091 = vmatprep.subr.msk.bf16.mxu1 %vm334_vm4, %v506_v0  ;;  %4732 = vmatprep.mubr.msk.bf16.mxu1 %vm334_vm4, %v502_v2  ;;  %v516_v4 = vsel %vm334_vm4, %v506_v0, 0 }
 0x351   :  { %v504_v5 = vpop.permute.xlu1 %503 }
 0x353   :  { %4715 = vmatpush3.bf16.xpose.msra.mxu0 %v342_v3  ;;  %4731 = vmatpush3.bf16.xpose.msra.mxu1 %v516_v4 }
 0x35a   :  { %4717 = vmatmul.mubr.msk.bf16.vlgmr.msra.gmra.mxu0 %vm334_vm4, %v5617_v54  ;;  %4733 = vmatmul.mubr.msk.bf16.vlgmr.msra.gmra.mxu1 %vm334_vm4, %v504_v5 }
 0x363   :  { %v320_v7 = vpop.f32.mrf.mxu1 }
 0x364   :  { %v321_v8 = vadd.f32 %v4356_v43, %v320_v7 }
 0x365   :  { %v4710_v10 = vpop.f32.mrf.mxu1 }
 0x366   :  { %v5641_v12 = vpack.c.bf16 %v321_v8, %v321_v8 }
 0x367   :  { %v323_v13 = vpop.f32.mrf.mxu1 }
 0x368   :  { %v1058_v16 = vshll.u32 %v5641_v12, 16  ;;  %v5684_v13 = vsel %vm443_vm8, 65535, %v5458_v11 }
 0x369   :  { %v4711_v17 = vpop.f32.mrf.mxu1 }
 0x36a   :  { %v1060_v20 = vrot.slane %v1058_v16, 1 }
 0x36c   :  { %v5645_v21 = vsel %vm1049_vm5, %v1056_v18, %v1060_v20 }
 0x41a   :  { %v4718_v22 = vpop.f32.mrf.mxu0  ;;  %v4734_v23 = vpop.f32.mrf.mxu1 }
 0x41b   :  { %v403_v31 = vsel %vm402_vm7, %v4718_v22, -inf  ;;  %v575_v34 = vsel %vm402_vm7, %v4734_v23, -inf }
 0x41c   :  { %v381_v25 = vpop.f32.mrf.mxu0  ;;  %v555_v26 = vpop.f32.mrf.mxu1 }
 0x41d   :  { %v396_v27 = vsel %vm395_vm6, %v381_v25, -inf  ;;  %v569_v33 = vsel %vm395_vm6, %v555_v26, -inf }
 0x41e   :  { %v4735_v28 = vpop.f32.mrf.mxu1  ;;  %397 = vmax.xlane.f32.xlu0 %v396_v27  ;;  %v4719_v29 = vpop.f32.mrf.mxu0 }
 0x420   :  { %v384_v30 = vpop.f32.mrf.mxu0  ;;  %v558_v35 = vpop.f32.mrf.mxu1 }
 0x421   :  { %v399_v32 = vsel %vm395_vm6, %v384_v30, -inf  ;;  %v572_v36 = vsel %vm395_vm6, %v558_v35, -inf }
 0x422   :  { %404 = vmax.xlane.f32.xlu0 %v403_v31  ;;  %400 = vmax.xlane.f32.xlu1 %v399_v32 }
 0x426   :  { %570 = vmax.xlane.f32.xlu0 %v569_v33  ;;  %576 = vmax.xlane.f32.xlu1 %v575_v34 }
 0x42a   :  { %573 = vmax.xlane.f32.xlu0 %v572_v36 }
 0x4a7   :  { %v398_v37 = vpop.xlane.xlu0 %397 }
 0x4a8   :  { %v406_v38 = vsub.f32 %v381_v25, %v398_v37 }
 0x4aa   :  { %v409_v42 = vmul.f32 1.442695, %v406_v38 }
 0x4ab   :  { %v405_v39 = vpop.xlane.xlu0 %404  ;;  %v401_v40 = vpop.xlane.xlu1 %400 }
 0x4ac   :  { %v408_v41 = vsub.f32 %v4718_v22, %v405_v39  ;;  %v407_v61 = vsub.f32 %v384_v30, %v401_v40 }
 0x4ae   :  { %v413_v43 = vmul.f32 1.442695, %v408_v41  ;;  %v411_v63 = vmul.f32 1.442695, %v407_v61 }
 0x4af   :  { %v577_v44 = vpop.xlane.xlu1 %576  ;;  %v571_v56 = vpop.xlane.xlu0 %570 }
 0x4b0   :  { %5175 = vpow2.f32 %v413_v43  ;;  %v580_v45 = vsub.f32 %v4734_v23, %v577_v44  ;;  %v578_v60 = vsub.f32 %v555_v26, %v571_v56 }
 0x4b1   :  { %5177 = vpow2.f32 %v409_v42 }
 0x4b2   :  { %v585_v46 = vmul.f32 1.442695, %v580_v45  ;;  %v581_v62 = vmul.f32 1.442695, %v578_v60 }
 0x4b3   :  { %v574_v57 = vpop.xlane.xlu0 %573 }
 0x4b4   :  { %5179 = vpow2.f32 %v585_v46  ;;  %v579_v58 = vsub.f32 %v558_v35, %v574_v57 }
 0x4b6   :  { %v583_v59 = vmul.f32 1.442695, %v579_v58 }
 0x4b8   :  { %5181 = vpow2.f32 %v583_v59 }
 0x4b9   :  { %5183 = vpow2.f32 %v581_v62 }
 0x4ba   :  { %5185 = vpow2.f32 %v411_v63 }
 0x4bd   :  { %v5653_v47 = vpop.eup %5175 }
 0x4be   :  { %v421_v49 = vsel %vm402_vm7, %v5653_v47, 0.0  ;;  %v5657_v51 = vpop.eup %5177 }
 0x4bf   :  { %422 = vadd.xlane.f32.xlu0 %v421_v49  ;;  %v415_v53 = vsel %vm395_vm6, %v5657_v51, 0.0 }
 0x4c1   :  { %v5659_v52 = vpop.eup %5179 }
 0x4c2   :  { %v593_v55 = vsel %vm402_vm7, %v5659_v52, 0.0 }
 0x4c3   :  { %416 = vadd.xlane.f32.xlu0 %v415_v53  ;;  %594 = vadd.xlane.f32.xlu1 %v593_v55 }
 0x4c5   :  { %v5182_v0 = vpop.eup %5181 }
 0x4c6   :  { %v590_v2 = vsel %vm395_vm6, %v5182_v0, 0.0  ;;  %v5184_v3 = vpop.eup %5183 }
 0x4c7   :  { %v587_v4 = vsel %vm395_vm6, %v5184_v3, 0.0  ;;  %v5186_v5 = vpop.eup %5185 }
 0x4c8   :  { %v418_v6 = vsel %vm395_vm6, %v5186_v5, 0.0 }
 0x4d4   :  { %432 = vrot.lane.b32.xlu1 %v5611_v50, %s5454_s2 }
 0x4d8   :  { %606 = vrot.lane.b32.xlu1 %v5617_v54, %s5455_s15 }
 0x4d9   :  { %434 = vrot.lane.b32.xlu0 %v5617_v54, %s5454_s2 }
 0x4f8   :  { %591 = vadd.xlane.f32.xlu0 %v590_v2 }
 0x4fc   :  { %588 = vadd.xlane.f32.xlu1 %v587_v4 }
 0x500   :  { %419 = vadd.xlane.f32.xlu1 %v418_v6 }
 0x50e   :  { %689 = vrot.lane.b32.xlu0 %v5617_v54, %s5456_s16 }
 0x511   :  { %604 = vrot.lane.b32.xlu1 %v5611_v50, %s5455_s15 }
 0x512   :  { %683 = vrot.lane.b32.xlu0 %v5611_v50, %s5457_s17 }
 0x515   :  { %687 = vrot.lane.b32.xlu1 %v5611_v50, %s5456_s16 }
 0x519   :  { %685 = vrot.lane.b32.xlu1 %v5617_v54, %s5457_s17 }
 0x548   :  { %v423_v7 = vpop.xlane.xlu0 %422 }
 0x549   :  { %5187 = vrcp.f32 %v423_v7 }
 0x54c   :  { %v417_v8 = vpop.xlane.xlu0 %416  ;;  %v595_v10 = vpop.xlane.xlu1 %594 }
 0x54d   :  { %5189 = vrcp.f32 %v417_v8 }
 0x550   :  { %v435_v15 = vpop.permute.xlu0 %434  ;;  %v433_v17 = vpop.permute.xlu1 %432 }
 0x551   :  { %v447_v16 = vand.u32 %v5684_v13, %v435_v15 }
 0x553   :  { %4720 = vmatprep.subr.bf16.mxu0 %v447_v16 }
 0x554   :  { %4721 = vmatpush3.bf16.msra.mxu0 %v447_v16  ;;  %v607_v18 = vpop.permute.xlu1 %606 }
 0x555   :  { %4722 = vmatprep.subr.bf16.mxu0 %v433_v17  ;;  %v616_v20 = vand.u32 %v607_v18, %v5684_v13 }
 0x556   :  { %v5188_v26 = vpop.eup %5187 }
 0x557   :  { %v429_v31 = vmul.f32 %v5188_v26, %v5653_v47 }
 0x558   :  { %4723 = vmatpush3.bf16.msra.mxu0 %v433_v17 }
 0x559   :  { %4736 = vmatprep.subr.bf16.mxu0 %v616_v20  ;;  %v431_v37 = vpack.c.bf16 %v429_v31, %v429_v31 }
 0x55a   :  { %v5190_v27 = vpop.eup %5189 }
 0x55b   :  { %v427_v32 = vmul.f32 %v5190_v27, %v5657_v51 }
 0x581   :  { %v592_v23 = vpop.xlane.xlu0 %591 }
 0x585   :  { %v589_v22 = vpop.xlane.xlu1 %588  ;;  %v690_v41 = vpop.permute.xlu0 %689 }
 0x586   :  { %5191 = vrcp.f32 %v589_v22  ;;  %v701_v45 = vsel %vm334_vm4, %v690_v41, 0 }
 0x587   :  { %5193 = vrcp.f32 %v592_v23 }
 0x589   :  { %v420_v25 = vpop.xlane.xlu1 %419  ;;  %v684_v44 = vpop.permute.xlu0 %683 }
 0x58a   :  { %5195 = vrcp.f32 %v420_v25 }
 0x58b   :  { %5197 = vrcp.f32 %v595_v10 }
 0x58d   :  { %v605_v40 = vpop.permute.xlu1 %604 }
 0x591   :  { %v688_v46 = vpop.permute.xlu1 %687 }
 0x592   :  { %v698_v47 = vsel %vm334_vm4, %v688_v46, 0 }
 0x593   :  { %v5192_v28 = vpop.eup %5191 }
 0x594   :  { %v5194_v29 = vpop.eup %5193  ;;  %v599_v34 = vmul.f32 %v5192_v28, %v5184_v3 }
 0x595   :  { %v600_v36 = vmul.f32 %v5194_v29, %v5182_v0  ;;  %v686_v49 = vpop.permute.xlu1 %685 }
 0x597   :  { %v5196_v30 = vpop.eup %5195  ;;  %v602_v39 = vpack.c.bf16 %v600_v36, %v599_v34 }
 0x598   :  { %v428_v33 = vmul.f32 %v5196_v30, %v5186_v5  ;;  %v5198_v38 = vpop.eup %5197 }
 0x599   :  { %v601_v42 = vmul.f32 %v5198_v38, %v5659_v52 }
 0x59a   :  { %v430_v35 = vpack.c.bf16 %v428_v33, %v427_v32 }
 0x59b   :  { %v603_v43 = vpack.c.bf16 %v601_v42, %v601_v42 }
 0x59c   :  { %4724 = vmatprep.mubr.msk.bf16.mxu0 %vm395_vm6, %v430_v35 }
 0x59d   :  { %4725 = vmatmul.mubr.msk.bf16.vlgmr.msra.gmra.mxu0 %vm395_vm6, %v431_v37 }
 0x59e   :  { %4737 = vmatpush3.bf16.msra.mxu0 %v616_v20  ;;  %4740 = vmatprep.mubr.msk.bf16.mxu0 %vm395_vm6, %v602_v39 }
 0x59f   :  { %4738 = vmatprep.subr.bf16.mxu0 %v605_v40 }
 0x5a2   :  { %4739 = vmatpush3.bf16.msra.mxu0 %v605_v40 }
 0x5a3   :  { %5092 = vmatprep.subr.msk.bf16.mxu0 %vm334_vm4, %v690_v41 }
 0x5a5   :  { %4741 = vmatmul.mubr.msk.bf16.vlgmr.msra.gmra.mxu0 %vm395_vm6, %v603_v43 }
 0x5a6   :  { %4745 = vmatpush3.bf16.xpose.msra.mxu0 %v701_v45  ;;  %4748 = vmatprep.mubr.msk.bf16.mxu0 %vm334_vm4, %v684_v44 }
 0x5a7   :  { %5093 = vmatprep.subr.msk.bf16.mxu0 %vm334_vm4, %v688_v46 }
 0x5ae   :  { %4747 = vmatpush3.bf16.xpose.msra.mxu0 %v698_v47 }
 0x5b5   :  { %4749 = vmatmul.mubr.msk.bf16.vlgmr.msra.gmra.mxu0 %vm334_vm4, %v686_v49 }
 0x65d   :  { %v4726_v51 = vpop.f32.mrf.mxu0 }
 0x65e   :  { %500 = vst.msk [vmem:[#allocation2 + $0x10] sm:$0x1] %vm499_vm9, %v4726_v51 }
 0x65f   :  { %v483_v52 = vpop.f32.mrf.mxu0 }
 0x660   :  { %497 = vst.msk [vmem:[#allocation2] sm:$0xff] %vm334_vm4, %v483_v52 }
 0x661   :  { %v4727_v53 = vpop.f32.mrf.mxu0 }
 0x663   :  { %v486_v55 = vpop.f32.mrf.mxu0 }
 0x664   :  { %498 = vst.msk [vmem:[#allocation2 + $0x8] sm:$0xff] %vm334_vm4, %v486_v55 }
 0x665   :  { %v5704_v56 = vpop.f32.mrf.mxu0 }
 0x667   :  { %v5706_v57 = vpop.f32.mrf.mxu0 }
 0x669   :  { %v4743_v58 = vpop.f32.mrf.mxu0 }
 0x66b   :  { %v5708_v59 = vpop.f32.mrf.mxu0 }
 0x675   :  { %v4750_v60 = vpop.f32.mrf.mxu0 }
 0x676   :  { %v757_v2 = vsel %vm402_vm7, %v4750_v60, -inf }
 0x677   :  { %v737_v61 = vpop.f32.mrf.mxu0 }
 0x678   :  { %v751_v62 = vsel %vm395_vm6, %v737_v61, -inf }
 0x679   :  { %752 = vmax.xlane.f32.xlu0 %v751_v62  ;;  %v4751_v63 = vpop.f32.mrf.mxu0 }
 0x67b   :  { %v740_v0 = vpop.f32.mrf.mxu0 }
 0x67c   :  { %v754_v3 = vsel %vm395_vm6, %v740_v0, -inf }
 0x67d   :  { %758 = vmax.xlane.f32.xlu0 %v757_v2  ;;  %755 = vmax.xlane.f32.xlu1 %v754_v3 }
 0x702   :  { %v753_v4 = vpop.xlane.xlu0 %752 }
 0x703   :  { %v760_v5 = vsub.f32 %v737_v61, %v753_v4 }
 0x705   :  { %v763_v6 = vmul.f32 1.442695, %v760_v5 }
 0x706   :  { %v759_v7 = vpop.xlane.xlu0 %758  ;;  %v756_v8 = vpop.xlane.xlu1 %755 }
 0x707   :  { %5199 = vpow2.f32 %v763_v6  ;;  %v762_v10 = vsub.f32 %v4750_v60, %v759_v7  ;;  %v761_v11 = vsub.f32 %v740_v0, %v756_v8 }
 0x709   :  { %v767_v15 = vmul.f32 1.442695, %v762_v10  ;;  %v765_v16 = vmul.f32 1.442695, %v761_v11 }
 0x70b   :  { %5201 = vpow2.f32 %v767_v15 }
 0x70c   :  { %5203 = vpow2.f32 %v765_v16 }
 0x714   :  { %v5200_v17 = vpop.eup %5199 }
 0x715   :  { %v769_v18 = vsel %vm395_vm6, %v5200_v17, 0.0 }
 0x716   :  { %770 = vadd.xlane.f32.xlu0 %v769_v18 }
 0x718   :  { %v5202_v20 = vpop.eup %5201 }
 0x719   :  { %v5204_v22 = vpop.eup %5203  ;;  %v775_v23 = vsel %vm402_vm7, %v5202_v20, 0.0 }
 0x71a   :  { %776 = vadd.xlane.f32.xlu1 %v775_v23  ;;  %v772_v25 = vsel %vm395_vm6, %v5204_v22, 0.0 }
 0x71b   :  { %773 = vadd.xlane.f32.xlu0 %v772_v25 }
 0x72b   :  { %786 = vrot.lane.b32.xlu1 %v5611_v50, %s5459_s18 }
 0x72f   :  { %871 = vrot.lane.b32.xlu1 %v5617_v54, %s5460_s19 }
 0x731   :  { %788 = vrot.lane.b32.xlu0 %v5617_v54, %s5459_s18 }
 0x733   :  { %869 = vrot.lane.b32.xlu1 %v5611_v50, %s5460_s19 }
 0x735   :  { %865 = vrot.lane.b32.xlu0 %v5611_v50, %s5461_s0 }
 0x737   :  { %867 = vrot.lane.b32.xlu1 %v5617_v54, %s5461_s0 }
 0x79f   :  { %v771_v26 = vpop.xlane.xlu0 %770 }
 0x7a0   :  { %5205 = vrcp.f32 %v771_v26 }
 0x7a3   :  { %v777_v27 = vpop.xlane.xlu1 %776 }
 0x7a4   :  { %v774_v28 = vpop.xlane.xlu0 %773  ;;  %5207 = vrcp.f32 %v777_v27 }
 0x7a5   :  { %5209 = vrcp.f32 %v774_v28 }
 0x7a7   :  { %v787_v31 = vpop.permute.xlu1 %786 }
 0x7a8   :  { %v789_v29 = vpop.permute.xlu0 %788 }
 0x7a9   :  { %v798_v30 = vand.u32 %v789_v29, %v5684_v13 }
 0x7ab   :  { %4752 = vmatprep.subr.bf16.mxu1 %v798_v30  ;;  %v872_v33 = vpop.permute.xlu1 %871 }
 0x7ac   :  { %4753 = vmatpush3.bf16.msra.mxu1 %v798_v30  ;;  %v866_v41 = vpop.permute.xlu0 %865  ;;  %v883_v42 = vsel %vm334_vm4, %v872_v33, 0 }
 0x7ad   :  { %4754 = vmatprep.subr.bf16.mxu1 %v787_v31  ;;  %v5206_v32 = vpop.eup %5205 }
 0x7ae   :  { %v781_v37 = vmul.f32 %v5206_v32, %v5200_v17 }
 0x7af   :  { %v870_v43 = vpop.permute.xlu1 %869 }
 0x7b0   :  { %4755 = vmatpush3.bf16.msra.mxu1 %v787_v31  ;;  %v880_v44 = vsel %vm334_vm4, %v870_v43, 0 }
 0x7b1   :  { %v5208_v34 = vpop.eup %5207  ;;  %5094 = vmatprep.subr.msk.bf16.mxu1 %vm334_vm4, %v872_v33 }
 0x7b2   :  { %v5210_v35 = vpop.eup %5209  ;;  %v783_v36 = vmul.f32 %v5208_v34, %v5202_v20  ;;  %v5752_v20 = vshrl.u32 %v5641_v12, 16 }
 0x7b3   :  { %v782_v38 = vmul.f32 %v5210_v35, %v5204_v22  ;;  %v868_v45 = vpop.permute.xlu1 %867 }
 0x7b4   :  { %v785_v39 = vpack.c.bf16 %v783_v36, %v783_v36 }
 0x7b5   :  { %v784_v40 = vpack.c.bf16 %v782_v38, %v781_v37 }
 0x7b7   :  { %4756 = vmatprep.mubr.msk.bf16.mxu1 %vm395_vm6, %v784_v40 }
 0x7b8   :  { %4757 = vmatmul.mubr.msk.bf16.vlgmr.msra.gmra.mxu1 %vm395_vm6, %v785_v39 }
 0x7b9   :  { %4761 = vmatpush3.bf16.xpose.msra.mxu1 %v883_v42  ;;  %4764 = vmatprep.mubr.msk.bf16.mxu1 %vm334_vm4, %v866_v41 }
 0x7ba   :  { %5095 = vmatprep.subr.msk.bf16.mxu1 %vm334_vm4, %v870_v43 }
 0x7c1   :  { %4763 = vmatpush3.bf16.xpose.msra.mxu1 %v880_v44 }
 0x7c8   :  { %4765 = vmatmul.mubr.msk.bf16.vlgmr.msra.gmra.mxu1 %vm334_vm4, %v868_v45 }
 0x878   :  { %v5737_v46 = vpop.f32.mrf.mxu1 }
 0x87a   :  { %v5739_v47 = vpop.f32.mrf.mxu1 }
 0x87c   :  { %v4759_v49 = vpop.f32.mrf.mxu1 }
 0x87e   :  { %v5741_v51 = vpop.f32.mrf.mxu1 }
 0x888   :  { %v4766_v52 = vpop.f32.mrf.mxu1 }
 0x889   :  { %v939_v61 = vsel %vm402_vm7, %v4766_v52, -inf }
 0x88a   :  { %v919_v53 = vpop.f32.mrf.mxu1 }
 0x88b   :  { %v933_v55 = vsel %vm395_vm6, %v919_v53, -inf }
 0x88c   :  { %934 = vmax.xlane.f32.xlu0 %v933_v55  ;;  %v4767_v58 = vpop.f32.mrf.mxu1 }
 0x88e   :  { %v922_v60 = vpop.f32.mrf.mxu1 }
 0x88f   :  { %v936_v62 = vsel %vm395_vm6, %v922_v60, -inf }
 0x890   :  { %940 = vmax.xlane.f32.xlu0 %v939_v61  ;;  %937 = vmax.xlane.f32.xlu1 %v936_v62 }
 0x915   :  { %v935_v63 = vpop.xlane.xlu0 %934 }
 0x916   :  { %v942_v0 = vsub.f32 %v919_v53, %v935_v63 }
 0x918   :  { %v945_v2 = vmul.f32 1.442695, %v942_v0 }
 0x919   :  { %v941_v3 = vpop.xlane.xlu0 %940  ;;  %v938_v4 = vpop.xlane.xlu1 %937 }
 0x91a   :  { %5211 = vpow2.f32 %v945_v2  ;;  %v944_v5 = vsub.f32 %v4766_v52, %v941_v3  ;;  %v943_v6 = vsub.f32 %v922_v60, %v938_v4 }
 0x91c   :  { %v949_v7 = vmul.f32 1.442695, %v944_v5  ;;  %v947_v8 = vmul.f32 1.442695, %v943_v6 }
 0x91e   :  { %5213 = vpow2.f32 %v949_v7 }
 0x91f   :  { %5215 = vpow2.f32 %v947_v8 }
 0x927   :  { %v5212_v10 = vpop.eup %5211 }
 0x928   :  { %v951_v11 = vsel %vm395_vm6, %v5212_v10, 0.0 }
 0x929   :  { %952 = vadd.xlane.f32.xlu0 %v951_v11 }
 0x92b   :  { %v5214_v15 = vpop.eup %5213 }
 0x92c   :  { %v5216_v16 = vpop.eup %5215  ;;  %v957_v17 = vsel %vm402_vm7, %v5214_v15, 0.0 }
 0x92d   :  { %958 = vadd.xlane.f32.xlu1 %v957_v17  ;;  %v954_v18 = vsel %vm395_vm6, %v5216_v16, 0.0 }
 0x92e   :  { %955 = vadd.xlane.f32.xlu0 %v954_v18 }
 0x93e   :  { %968 = vrot.lane.b32.xlu1 %v5611_v50, %s5462_s20 }
 0x942   :  { %1066 = vrot.lane.b32.xlu1 %v5752_v20, %s5451_s12 }
 0x944   :  { %970 = vrot.lane.b32.xlu0 %v5617_v54, %s5462_s20 }
 0x946   :  { %1064 = vrot.lane.b32.xlu1 %v5645_v21, %s5451_s12 }
 0x9b2   :  { %v953_v22 = vpop.xlane.xlu0 %952 }
 0x9b3   :  { %5217 = vrcp.f32 %v953_v22 }
 0x9b6   :  { %v959_v23 = vpop.xlane.xlu1 %958 }
 0x9b7   :  { %v956_v25 = vpop.xlane.xlu0 %955  ;;  %5219 = vrcp.f32 %v959_v23 }
 0x9b8   :  { %5221 = vrcp.f32 %v956_v25 }
 0x9ba   :  { %v969_v12 = vpop.permute.xlu1 %968 }
 0x9bb   :  { %v971_v26 = vpop.permute.xlu0 %970 }
 0x9bc   :  { %v980_v50 = vand.u32 %v971_v26, %v5684_v13 }
 0x9be   :  { %4768 = vmatprep.subr.bf16.mxu0 %v980_v50  ;;  %v1067_v28 = vpop.permute.xlu1 %1066 }
 0x9bf   :  { %4769 = vmatpush3.bf16.msra.mxu0 %v980_v50  ;;  %v1078_v35 = vsel %vm334_vm4, %v1067_v28, 0 }
 0x9c0   :  { %4770 = vmatprep.subr.bf16.mxu0 %v969_v12  ;;  %v5218_v27 = vpop.eup %5217 }
 0x9c1   :  { %v963_v31 = vmul.f32 %v5218_v27, %v5212_v10 }
 0x9c2   :  { %v1065_v36 = vpop.permute.xlu1 %1064 }
 0x9c3   :  { %4771 = vmatpush3.bf16.msra.mxu0 %v969_v12  ;;  %v1075_v37 = vsel %vm334_vm4, %v1065_v36, 0 }
 0x9c4   :  { %v5220_v54 = vpop.eup %5219  ;;  %5096 = vmatprep.subr.msk.bf16.mxu0 %vm334_vm4, %v1067_v28 }
 0x9c5   :  { %v5222_v29 = vpop.eup %5221  ;;  %v965_v30 = vmul.f32 %v5220_v54, %v5214_v15 }
 0x9c6   :  { %v964_v32 = vmul.f32 %v5222_v29, %v5216_v16 }
 0x9c7   :  { %v967_v33 = vpack.c.bf16 %v965_v30, %v965_v30 }
 0x9c8   :  { %v966_v34 = vpack.c.bf16 %v964_v32, %v963_v31 }
 0x9ca   :  { %4772 = vmatprep.mubr.msk.bf16.mxu0 %vm395_vm6, %v966_v34 }
 0x9cb   :  { %4773 = vmatmul.mubr.msk.bf16.vlgmr.msra.gmra.mxu0 %vm395_vm6, %v967_v33 }
 0x9cc   :  { %4777 = vmatpush3.bf16.xpose.msra.mxu0 %v1078_v35  ;;  %4780 = vmatprep.mubr.msk.bf16.mxu0 %vm334_vm4, %v5645_v21 }
 0x9cd   :  { %5097 = vmatprep.subr.msk.bf16.mxu0 %vm334_vm4, %v1065_v36 }
 0x9d4   :  { %4779 = vmatpush3.bf16.xpose.msra.mxu0 %v1075_v37 }
 0x9db   :  { %4781 = vmatmul.mubr.msk.bf16.vlgmr.msra.gmra.mxu0 %vm334_vm4, %v5752_v20 }
 0xa8b   :  { %v5771_v38 = vpop.f32.mrf.mxu0 }
 0xa8d   :  { %v5773_v39 = vpop.f32.mrf.mxu0 }
 0xa8f   :  { %v4775_v40 = vpop.f32.mrf.mxu0 }
 0xa91   :  { %v5775_v41 = vpop.f32.mrf.mxu0 }
 0xa9b   :  { %v4782_v42 = vpop.f32.mrf.mxu0 }
 0xa9c   :  { %v1134_v52 = vsel %vm402_vm7, %v4782_v42, -inf }
 0xa9d   :  { %v1114_v43 = vpop.f32.mrf.mxu0 }
 0xa9e   :  { %v1128_v44 = vsel %vm395_vm6, %v1114_v43, -inf }
 0xa9f   :  { %1129 = vmax.xlane.f32.xlu0 %v1128_v44  ;;  %v4783_v45 = vpop.f32.mrf.mxu0 }
 0xaa1   :  { %v1117_v49 = vpop.f32.mrf.mxu0 }
 0xaa2   :  { %v1131_v53 = vsel %vm395_vm6, %v1117_v49, -inf }
 0xaa3   :  { %1135 = vmax.xlane.f32.xlu0 %v1134_v52  ;;  %1132 = vmax.xlane.f32.xlu1 %v1131_v53 }
 0xb28   :  { %v1130_v55 = vpop.xlane.xlu0 %1129 }
 0xb29   :  { %v1137_v58 = vsub.f32 %v1114_v43, %v1130_v55 }
 0xb2b   :  { %v1140_v60 = vmul.f32 1.442695, %v1137_v58 }
 0xb2c   :  { %v1136_v61 = vpop.xlane.xlu0 %1135  ;;  %v1133_v62 = vpop.xlane.xlu1 %1132 }
 0xb2d   :  { %5223 = vpow2.f32 %v1140_v60  ;;  %v1139_v63 = vsub.f32 %v4782_v42, %v1136_v61  ;;  %v1138_v0 = vsub.f32 %v1117_v49, %v1133_v62 }
 0xb2f   :  { %v1144_v2 = vmul.f32 1.442695, %v1139_v63  ;;  %v1142_v3 = vmul.f32 1.442695, %v1138_v0 }
 0xb31   :  { %5225 = vpow2.f32 %v1144_v2 }
 0xb32   :  { %5227 = vpow2.f32 %v1142_v3 }
 0xb3a   :  { %v5224_v4 = vpop.eup %5223 }
 0xb3b   :  { %v1146_v5 = vsel %vm395_vm6, %v5224_v4, 0.0 }
 0xb3c   :  { %1147 = vadd.xlane.f32.xlu0 %v1146_v5 }
 0xb3e   :  { %v5226_v6 = vpop.eup %5225 }
 0xb3f   :  { %v5228_v7 = vpop.eup %5227  ;;  %v1152_v8 = vsel %vm402_vm7, %v5226_v6, 0.0 }
 0xb40   :  { %1153 = vadd.xlane.f32.xlu1 %v1152_v8  ;;  %v1149_v10 = vsel %vm395_vm6, %v5228_v7, 0.0 }
 0xb41   :  { %1150 = vadd.xlane.f32.xlu0 %v1149_v10 }
 0xb51   :  { %1163 = vrot.lane.b32.xlu1 %v5645_v21, %s5454_s2 }
 0xb55   :  { %1234 = vrot.lane.b32.xlu1 %v5752_v20, %s5452_s13 }
 0xb57   :  { %1165 = vrot.lane.b32.xlu0 %v5752_v20, %s5454_s2 }
 0xb59   :  { %1232 = vrot.lane.b32.xlu1 %v5645_v21, %s5452_s13 }
 0xb5b   :  { %1228 = vrot.lane.b32.xlu0 %v5645_v21, %s5453_s14 }
 0xb5d   :  { %1230 = vrot.lane.b32.xlu1 %v5752_v20, %s5453_s14 }
 0xbc5   :  { %v1148_v11 = vpop.xlane.xlu0 %1147 }
 0xbc6   :  { %5229 = vrcp.f32 %v1148_v11 }
 0xbc9   :  { %v1154_v15 = vpop.xlane.xlu1 %1153 }
 0xbca   :  { %v1151_v16 = vpop.xlane.xlu0 %1150  ;;  %5231 = vrcp.f32 %v1154_v15 }
 0xbcb   :  { %5233 = vrcp.f32 %v1151_v16 }
 0xbcd   :  { %v1164_v22 = vpop.permute.xlu1 %1163 }
 0xbce   :  { %v1166_v17 = vpop.permute.xlu0 %1165 }
 0xbcf   :  { %v1175_v18 = vand.u32 %v1166_v17, %v5684_v13 }
 0xbd1   :  { %4784 = vmatprep.subr.bf16.mxu1 %v1175_v18  ;;  %v1235_v25 = vpop.permute.xlu1 %1234 }
 0xbd2   :  { %4785 = vmatpush3.bf16.msra.mxu1 %v1175_v18  ;;  %v1229_v30 = vpop.permute.xlu0 %1228  ;;  %v1246_v31 = vsel %vm334_vm4, %v1235_v25, 0 }
 0xbd3   :  { %4786 = vmatprep.subr.bf16.mxu1 %v1164_v22  ;;  %v5230_v23 = vpop.eup %5229 }
 0xbd4   :  { %v1158_v27 = vmul.f32 %v5230_v23, %v5224_v4 }
 0xbd5   :  { %v1233_v32 = vpop.permute.xlu1 %1232 }
 0xbd6   :  { %4787 = vmatpush3.bf16.msra.mxu1 %v1164_v22  ;;  %v1243_v33 = vsel %vm334_vm4, %v1233_v32, 0 }
 0xbd7   :  { %v5232_v26 = vpop.eup %5231  ;;  %5098 = vmatprep.subr.msk.bf16.mxu1 %vm334_vm4, %v1235_v25 }
 0xbd8   :  { %v5234_v50 = vpop.eup %5233  ;;  %v1160_v12 = vmul.f32 %v5232_v26, %v5226_v6 }
 0xbd9   :  { %v1159_v28 = vmul.f32 %v5234_v50, %v5228_v7  ;;  %v1231_v34 = vpop.permute.xlu1 %1230 }
 0xbda   :  { %v1162_v54 = vpack.c.bf16 %v1160_v12, %v1160_v12 }
 0xbdb   :  { %v1161_v29 = vpack.c.bf16 %v1159_v28, %v1158_v27 }
 0xbdd   :  { %4788 = vmatprep.mubr.msk.bf16.mxu1 %vm395_vm6, %v1161_v29 }
 0xbde   :  { %4789 = vmatmul.mubr.msk.bf16.vlgmr.msra.gmra.mxu1 %vm395_vm6, %v1162_v54 }
 0xbdf   :  { %4793 = vmatpush3.bf16.xpose.msra.mxu1 %v1246_v31  ;;  %4796 = vmatprep.mubr.msk.bf16.mxu1 %vm334_vm4, %v1229_v30 }
 0xbe0   :  { %5099 = vmatprep.subr.msk.bf16.mxu1 %vm334_vm4, %v1233_v32 }
 0xbe7   :  { %4795 = vmatpush3.bf16.xpose.msra.mxu1 %v1243_v33 }
 0xbee   :  { %4797 = vmatmul.mubr.msk.bf16.vlgmr.msra.gmra.mxu1 %vm334_vm4, %v1231_v34 }
 0xc9e   :  { %v4790_v35 = vpop.f32.mrf.mxu1 }
 0xc9f   :  { %1227 = vst.msk [vmem:[#allocation2 + $0x21] sm:$0x1] %vm499_vm9, %v4790_v35 }
 0xca0   :  { %v1211_v36 = vpop.f32.mrf.mxu1 }
 0xca1   :  { %1225 = vst.msk [vmem:[#allocation2 + $0x11] sm:$0xff] %vm334_vm4, %v1211_v36 }
 0xca2   :  { %v4791_v37 = vpop.f32.mrf.mxu1 }
 0xca4   :  { %v1214_v40 = vpop.f32.mrf.mxu1 }
 0xca5   :  { %1226 = vst.msk [vmem:[#allocation2 + $0x19] sm:$0xff] %vm334_vm4, %v1214_v40 }
 0xcae   :  { %v4798_v42 = vpop.f32.mrf.mxu1 }
 0xcaf   :  { %v1302_v52 = vsel %vm402_vm7, %v4798_v42, -inf }
 0xcb0   :  { %v1282_v43 = vpop.f32.mrf.mxu1 }
 0xcb1   :  { %v1296_v44 = vsel %vm395_vm6, %v1282_v43, -inf }
 0xcb2   :  { %1297 = vmax.xlane.f32.xlu0 %v1296_v44  ;;  %v4799_v45 = vpop.f32.mrf.mxu1 }
 0xcb4   :  { %v1285_v49 = vpop.f32.mrf.mxu1 }
 0xcb5   :  { %v1299_v53 = vsel %vm395_vm6, %v1285_v49, -inf }
 0xcb6   :  { %1303 = vmax.xlane.f32.xlu0 %v1302_v52  ;;  %1300 = vmax.xlane.f32.xlu1 %v1299_v53 }
 0xd3b   :  { %v1298_v55 = vpop.xlane.xlu0 %1297 }
 0xd3c   :  { %v1305_v58 = vsub.f32 %v1282_v43, %v1298_v55 }
 0xd3e   :  { %v1308_v60 = vmul.f32 1.442695, %v1305_v58 }
 0xd3f   :  { %v1304_v61 = vpop.xlane.xlu0 %1303  ;;  %v1301_v62 = vpop.xlane.xlu1 %1300 }
 0xd40   :  { %5235 = vpow2.f32 %v1308_v60  ;;  %v1307_v63 = vsub.f32 %v4798_v42, %v1304_v61  ;;  %v1306_v0 = vsub.f32 %v1285_v49, %v1301_v62 }
 0xd42   :  { %v1312_v2 = vmul.f32 1.442695, %v1307_v63  ;;  %v1310_v3 = vmul.f32 1.442695, %v1306_v0 }
 0xd44   :  { %5237 = vpow2.f32 %v1312_v2 }
 0xd45   :  { %5239 = vpow2.f32 %v1310_v3 }
 0xd4d   :  { %v5236_v4 = vpop.eup %5235 }
 0xd4e   :  { %v1314_v5 = vsel %vm395_vm6, %v5236_v4, 0.0 }
 0xd4f   :  { %1315 = vadd.xlane.f32.xlu0 %v1314_v5 }
 0xd51   :  { %v5238_v6 = vpop.eup %5237 }
 0xd52   :  { %v5240_v7 = vpop.eup %5239  ;;  %v1320_v8 = vsel %vm402_vm7, %v5238_v6, 0.0 }
 0xd53   :  { %1321 = vadd.xlane.f32.xlu1 %v1320_v8  ;;  %v1317_v10 = vsel %vm395_vm6, %v5240_v7, 0.0 }
 0xd54   :  { %1318 = vadd.xlane.f32.xlu0 %v1317_v10 }
 0xd64   :  { %1331 = vrot.lane.b32.xlu1 %v5645_v21, %s5455_s15 }
 0xd68   :  { %1414 = vrot.lane.b32.xlu1 %v5752_v20, %s5456_s16 }
 0xd6a   :  { %1333 = vrot.lane.b32.xlu0 %v5752_v20, %s5455_s15 }
 0xd6c   :  { %1412 = vrot.lane.b32.xlu1 %v5645_v21, %s5456_s16 }
 0xd6e   :  { %1408 = vrot.lane.b32.xlu0 %v5645_v21, %s5457_s17 }
 0xd70   :  { %1410 = vrot.lane.b32.xlu1 %v5752_v20, %s5457_s17 }
 0xdd8   :  { %v1316_v11 = vpop.xlane.xlu0 %1315 }
 0xdd9   :  { %5241 = vrcp.f32 %v1316_v11 }
 0xddc   :  { %v1322_v15 = vpop.xlane.xlu1 %1321 }
 0xddd   :  { %v1319_v16 = vpop.xlane.xlu0 %1318  ;;  %5243 = vrcp.f32 %v1322_v15 }
 0xdde   :  { %5245 = vrcp.f32 %v1319_v16 }
 0xde0   :  { %v1332_v22 = vpop.permute.xlu1 %1331 }
 0xde1   :  { %v1334_v17 = vpop.permute.xlu0 %1333 }
 0xde2   :  { %v1343_v18 = vand.u32 %v1334_v17, %v5684_v13 }
 0xde4   :  { %4800 = vmatprep.subr.bf16.mxu0 %v1343_v18  ;;  %v1415_v25 = vpop.permute.xlu1 %1414 }
 0xde5   :  { %4801 = vmatpush3.bf16.msra.mxu0 %v1343_v18  ;;  %v1409_v30 = vpop.permute.xlu0 %1408  ;;  %v1426_v31 = vsel %vm334_vm4, %v1415_v25, 0 }
 0xde6   :  { %4802 = vmatprep.subr.bf16.mxu0 %v1332_v22  ;;  %v5242_v23 = vpop.eup %5241 }
 0xde7   :  { %v1326_v27 = vmul.f32 %v5242_v23, %v5236_v4 }
 0xde8   :  { %v1413_v32 = vpop.permute.xlu1 %1412 }
 0xde9   :  { %4803 = vmatpush3.bf16.msra.mxu0 %v1332_v22  ;;  %v1423_v33 = vsel %vm334_vm4, %v1413_v32, 0 }
 0xdea   :  { %v5244_v26 = vpop.eup %5243  ;;  %5100 = vmatprep.subr.msk.bf16.mxu0 %vm334_vm4, %v1415_v25 }
 0xdeb   :  { %v5246_v50 = vpop.eup %5245  ;;  %v1328_v12 = vmul.f32 %v5244_v26, %v5238_v6 }
 0xdec   :  { %v1327_v28 = vmul.f32 %v5246_v50, %v5240_v7  ;;  %v1411_v34 = vpop.permute.xlu1 %1410 }
 0xded   :  { %v1330_v54 = vpack.c.bf16 %v1328_v12, %v1328_v12 }
 0xdee   :  { %v1329_v29 = vpack.c.bf16 %v1327_v28, %v1326_v27 }
 0xdf0   :  { %4804 = vmatprep.mubr.msk.bf16.mxu0 %vm395_vm6, %v1329_v29 }
 0xdf1   :  { %4805 = vmatmul.mubr.msk.bf16.vlgmr.msra.gmra.mxu0 %vm395_vm6, %v1330_v54 }
 0xdf2   :  { %4809 = vmatpush3.bf16.xpose.msra.mxu0 %v1426_v31  ;;  %4812 = vmatprep.mubr.msk.bf16.mxu0 %vm334_vm4, %v1409_v30 }
 0xdf3   :  { %5101 = vmatprep.subr.msk.bf16.mxu0 %vm334_vm4, %v1413_v32 }
 0xdfa   :  { %4811 = vmatpush3.bf16.xpose.msra.mxu0 %v1423_v33 }
 0xe01   :  { %4813 = vmatmul.mubr.msk.bf16.vlgmr.msra.gmra.mxu0 %vm334_vm4, %v1411_v34 }
 0xeb1   :  { %v5834_v35 = vpop.f32.mrf.mxu0 }
 0xeb3   :  { %v5836_v36 = vpop.f32.mrf.mxu0 }
 0xeb5   :  { %v4807_v37 = vpop.f32.mrf.mxu0 }
 0xeb7   :  { %v5838_v40 = vpop.f32.mrf.mxu0 }
 0xec1   :  { %v4814_v42 = vpop.f32.mrf.mxu0 }
 0xec2   :  { %v1482_v52 = vsel %vm402_vm7, %v4814_v42, -inf }
 0xec3   :  { %v1462_v43 = vpop.f32.mrf.mxu0 }
 0xec4   :  { %v1476_v44 = vsel %vm395_vm6, %v1462_v43, -inf }
 0xec5   :  { %1477 = vmax.xlane.f32.xlu0 %v1476_v44  ;;  %v4815_v45 = vpop.f32.mrf.mxu0 }
 0xec7   :  { %v1465_v49 = vpop.f32.mrf.mxu0 }
 0xec8   :  { %v1479_v53 = vsel %vm395_vm6, %v1465_v49, -inf }
 0xec9   :  { %1483 = vmax.xlane.f32.xlu0 %v1482_v52  ;;  %1480 = vmax.xlane.f32.xlu1 %v1479_v53 }
 0xf4e   :  { %v1478_v55 = vpop.xlane.xlu0 %1477 }
 0xf4f   :  { %v1485_v58 = vsub.f32 %v1462_v43, %v1478_v55 }
 0xf51   :  { %v1488_v60 = vmul.f32 1.442695, %v1485_v58 }
 0xf52   :  { %v1484_v61 = vpop.xlane.xlu0 %1483  ;;  %v1481_v62 = vpop.xlane.xlu1 %1480 }
 0xf53   :  { %5247 = vpow2.f32 %v1488_v60  ;;  %v1487_v63 = vsub.f32 %v4814_v42, %v1484_v61  ;;  %v1486_v0 = vsub.f32 %v1465_v49, %v1481_v62 }
 0xf55   :  { %v1492_v2 = vmul.f32 1.442695, %v1487_v63  ;;  %v1490_v3 = vmul.f32 1.442695, %v1486_v0 }
 0xf57   :  { %5249 = vpow2.f32 %v1492_v2 }
 0xf58   :  { %5251 = vpow2.f32 %v1490_v3 }
 0xf60   :  { %v5248_v4 = vpop.eup %5247 }
 0xf61   :  { %v1494_v5 = vsel %vm395_vm6, %v5248_v4, 0.0 }
 0xf62   :  { %1495 = vadd.xlane.f32.xlu0 %v1494_v5 }
 0xf64   :  { %v5250_v6 = vpop.eup %5249 }
 0xf65   :  { %v5252_v7 = vpop.eup %5251  ;;  %v1500_v8 = vsel %vm402_vm7, %v5250_v6, 0.0 }
 0xf66   :  { %1501 = vadd.xlane.f32.xlu1 %v1500_v8  ;;  %v1497_v10 = vsel %vm395_vm6, %v5252_v7, 0.0 }
 0xf67   :  { %1498 = vadd.xlane.f32.xlu0 %v1497_v10 }
 0xf77   :  { %1511 = vrot.lane.b32.xlu1 %v5645_v21, %s5459_s18 }
 0xf7b   :  { %1594 = vrot.lane.b32.xlu1 %v5752_v20, %s5460_s19 }
 0xf7d   :  { %1513 = vrot.lane.b32.xlu0 %v5752_v20, %s5459_s18 }
 0xf7f   :  { %1592 = vrot.lane.b32.xlu1 %v5645_v21, %s5460_s19 }
 0xf81   :  { %1588 = vrot.lane.b32.xlu0 %v5645_v21, %s5461_s0 }
 0xf83   :  { %1590 = vrot.lane.b32.xlu1 %v5752_v20, %s5461_s0 }
 0xfeb   :  { %v1496_v11 = vpop.xlane.xlu0 %1495 }
 0xfec   :  { %5253 = vrcp.f32 %v1496_v11 }
 0xfef   :  { %v1502_v15 = vpop.xlane.xlu1 %1501 }
 0xff0   :  { %v1499_v16 = vpop.xlane.xlu0 %1498  ;;  %5255 = vrcp.f32 %v1502_v15 }
 0xff1   :  { %5257 = vrcp.f32 %v1499_v16 }
 0xff3   :  { %v1512_v22 = vpop.permute.xlu1 %1511 }
 0xff4   :  { %v1514_v17 = vpop.permute.xlu0 %1513 }
 0xff5   :  { %v1523_v18 = vand.u32 %v1514_v17, %v5684_v13 }
 0xff7   :  { %4816 = vmatprep.subr.bf16.mxu1 %v1523_v18  ;;  %v1595_v25 = vpop.permute.xlu1 %1594 }
 0xff8   :  { %4817 = vmatpush3.bf16.msra.mxu1 %v1523_v18  ;;  %v1589_v30 = vpop.permute.xlu0 %1588  ;;  %v1606_v31 = vsel %vm334_vm4, %v1595_v25, 0 }
 0xff9   :  { %4818 = vmatprep.subr.bf16.mxu1 %v1512_v22  ;;  %v5254_v23 = vpop.eup %5253 }
 0xffa   :  { %v1506_v27 = vmul.f32 %v5254_v23, %v5248_v4 }
 0xffb   :  { %v1593_v32 = vpop.permute.xlu1 %1592 }
 0xffc   :  { %4819 = vmatpush3.bf16.msra.mxu1 %v1512_v22  ;;  %v1603_v33 = vsel %vm334_vm4, %v1593_v32, 0 }
 0xffd   :  { %v5256_v26 = vpop.eup %5255  ;;  %5102 = vmatprep.subr.msk.bf16.mxu1 %vm334_vm4, %v1595_v25 }
 0xffe   :  { %v5258_v50 = vpop.eup %5257  ;;  %v1508_v12 = vmul.f32 %v5256_v26, %v5250_v6 }
 0xfff   :  { %v1507_v28 = vmul.f32 %v5258_v50, %v5252_v7  ;;  %v1591_v34 = vpop.permute.xlu1 %1590 }
0x1000   :  { %v1510_v54 = vpack.c.bf16 %v1508_v12, %v1508_v12  ;;  %v5147_v12 = vld [vmem:[%s6625_s4 + $0x8] sm:$0xff]  }
0x1001   :  { %v1509_v29 = vpack.c.bf16 %v1507_v28, %v1506_v27 }
0x1003   :  { %4820 = vmatprep.mubr.msk.bf16.mxu1 %vm395_vm6, %v1509_v29 }
0x1004   :  { %4821 = vmatmul.mubr.msk.bf16.vlgmr.msra.gmra.mxu1 %vm395_vm6, %v1510_v54  ;;  %v5148_v54 = vld [vmem:[%s6625_s4] sm:$0xff]  }
0x1005   :  { %4825 = vmatpush3.bf16.xpose.msra.mxu1 %v1606_v31  ;;  %4828 = vmatprep.mubr.msk.bf16.mxu1 %vm334_vm4, %v1589_v30 }
0x1006   :  { %5103 = vmatprep.subr.msk.bf16.mxu1 %vm334_vm4, %v1593_v32 }
0x100d   :  { %4827 = vmatpush3.bf16.xpose.msra.mxu1 %v1603_v33 }
0x100e   :  { %4856 = vmatprep.subr.bf16.mxu1 %v5449_v1 }
0x1014   :  { %4829 = vmatmul.mubr.msk.bf16.vlgmr.msra.gmra.mxu1 %vm334_vm4, %v1591_v34 }
0x1015   :  { %4860 = vmatprep.mubr.msk.bf16.mxu1 %vm5450_vm0, %v5449_v1 }
0x10c4   :  { %v5870_v37 = vpop.f32.mrf.mxu1 }
0x10c6   :  { %v1559_v42 = vpop.f32.mrf.mxu1 }
0x10c8   :  { %v4823_v43 = vpop.f32.mrf.mxu1 }
0x10ca   :  { %v1562_v44 = vpop.f32.mrf.mxu1 }
0x10d4   :  { %v4830_v45 = vpop.f32.mrf.mxu1 }
0x10d5   :  { %v1662_v58 = vsel %vm402_vm7, %v4830_v45, -inf }
0x10d6   :  { %v1642_v49 = vpop.f32.mrf.mxu1 }
0x10d7   :  { %v1656_v52 = vsel %vm395_vm6, %v1642_v49, -inf }
0x10d8   :  { %1657 = vmax.xlane.f32.xlu0 %v1656_v52  ;;  %v4831_v53 = vpop.f32.mrf.mxu1 }
0x10da   :  { %v1645_v55 = vpop.f32.mrf.mxu1 }
0x10db   :  { %v1659_v60 = vsel %vm395_vm6, %v1645_v55, -inf }
0x10dc   :  { %1663 = vmax.xlane.f32.xlu0 %v1662_v58  ;;  %1660 = vmax.xlane.f32.xlu1 %v1659_v60 }
0x1161   :  { %v1658_v61 = vpop.xlane.xlu0 %1657 }
0x1162   :  { %v1665_v62 = vsub.f32 %v1642_v49, %v1658_v61 }
0x1164   :  { %v1668_v63 = vmul.f32 1.442695, %v1665_v62 }
0x1165   :  { %v1664_v0 = vpop.xlane.xlu0 %1663  ;;  %v1661_v2 = vpop.xlane.xlu1 %1660 }
0x1166   :  { %5259 = vpow2.f32 %v1668_v63  ;;  %v1667_v3 = vsub.f32 %v4830_v45, %v1664_v0  ;;  %v1666_v4 = vsub.f32 %v1645_v55, %v1661_v2  ;;  %v5945_v63 = vld [vmem:[%s6628_s7 + $0x3] ss:$0 sm:$0xff] }
0x1168   :  { %v1672_v5 = vmul.f32 1.442695, %v1667_v3  ;;  %v1670_v6 = vmul.f32 1.442695, %v1666_v4 }
0x116a   :  { %5261 = vpow2.f32 %v1672_v5 }
0x116b   :  { %5263 = vpow2.f32 %v1670_v6 }
0x1173   :  { %v5260_v7 = vpop.eup %5259 }
0x1174   :  { %v1674_v8 = vsel %vm395_vm6, %v5260_v7, 0.0 }
0x1175   :  { %1675 = vadd.xlane.f32.xlu0 %v1674_v8 }
0x1177   :  { %v5262_v10 = vpop.eup %5261 }
0x1178   :  { %v5264_v11 = vpop.eup %5263  ;;  %v1680_v15 = vsel %vm402_vm7, %v5262_v10, 0.0 }
0x1179   :  { %1681 = vadd.xlane.f32.xlu1 %v1680_v15  ;;  %v1677_v16 = vsel %vm395_vm6, %v5264_v11, 0.0 }
0x117a   :  { %1678 = vadd.xlane.f32.xlu0 %v1677_v16 }
0x118a   :  { %1691 = vrot.lane.b32.xlu1 %v5645_v21, %s5462_s20 }
0x118e   :  { %669 = vrot.lane.b32.xlu1 %v5706_v57, %s5463_s21 }
0x1190   :  { %1693 = vrot.lane.b32.xlu0 %v5752_v20, %s5462_s20 }
0x1192   :  { %671 = vrot.lane.b32.xlu1 %v5708_v59, %s5463_s21 }
0x1194   :  { %851 = vrot.lane.b32.xlu0 %v5739_v47, %s5464_s22 }
0x1196   :  { %853 = vrot.lane.b32.xlu1 %v5741_v51, %s5464_s22 }
0x1198   :  { %1033 = vrot.lane.b32.xlu0 %v5773_v39, %s5465_s23 }
0x119a   :  { %1035 = vrot.lane.b32.xlu1 %v5775_v41, %s5465_s23 }
0x119c   :  { %673 = vrot.lane.b32.xlu0 %v5704_v56, %s5463_s21 }
0x119e   :  { %1396 = vrot.lane.b32.xlu1 %v5836_v36, %s5463_s21 }
0x11a0   :  { %1398 = vrot.lane.b32.xlu0 %v5838_v40, %s5463_s21 }
0x11a2   :  { %855 = vrot.lane.b32.xlu1 %v5737_v46, %s5464_s22 }
0x11a4   :  { %1576 = vrot.lane.b32.xlu0 %v1559_v42, %s5464_s22 }
0x11a6   :  { %1578 = vrot.lane.b32.xlu1 %v1562_v44, %s5464_s22 }
0x11a8   :  { %1037 = vrot.lane.b32.xlu0 %v5771_v38, %s5465_s23 }
0x11fe   :  { %v1676_v21 = vpop.xlane.xlu0 %1675 }
0x11ff   :  { %5265 = vrcp.f32 %v1676_v21 }
0x1202   :  { %v1682_v57 = vpop.xlane.xlu1 %1681 }
0x1203   :  { %v1679_v56 = vpop.xlane.xlu0 %1678  ;;  %5267 = vrcp.f32 %v1682_v57 }
0x1204   :  { %5269 = vrcp.f32 %v1679_v56 }
0x1206   :  { %v1692_v59 = vpop.permute.xlu1 %1691 }
0x1207   :  { %v1694_v47 = vpop.permute.xlu0 %1693 }
0x1208   :  { %v1703_v51 = vand.u32 %v1694_v47, %v5684_v13 }
0x120a   :  { %4832 = vmatprep.subr.bf16.mxu0 %v1703_v51  ;;  %v670_v46 = vpop.permute.xlu1 %669 }
0x120b   :  { %4833 = vmatpush3.bf16.msra.mxu0 %v1703_v51  ;;  %v852_v20 = vpop.permute.xlu0 %851  ;;  %679 = vst.msk [vmem:[#allocation2] sm:$0xff] %vm678_vm10, %v670_v46 }
0x120c   :  { %4834 = vmatprep.subr.bf16.mxu0 %v1692_v59  ;;  %861 = vst.msk [vmem:[#allocation2] sm:$0xff] %vm860_vm11, %v852_v20  ;;  %v5266_v39 = vpop.eup %5265 }
0x120d   :  { %v1686_v22 = vmul.f32 %v5266_v39, %v5260_v7 }
0x120e   :  { %v672_v38 = vpop.permute.xlu1 %671 }
0x120f   :  { %v1034_v41 = vpop.permute.xlu0 %1033  ;;  %4835 = vmatpush3.bf16.msra.mxu0 %v1692_v59  ;;  %680 = vst.msk [vmem:[#allocation2 + $0x8] sm:$0xff] %vm678_vm10, %v672_v38 }
0x1210   :  { %v5268_v36 = vpop.eup %5267  ;;  %1043 = vst.msk [vmem:[#allocation2] sm:$0xff] %vm1042_vm12, %v1034_v41  ;;  %4840 = vmatprep.subr.bf16.mxu0 %v5449_v1 }
0x1211   :  { %v5270_v40 = vpop.eup %5269  ;;  %v1688_v17 = vmul.f32 %v5268_v36, %v5262_v10 }
0x1212   :  { %v854_v18 = vpop.permute.xlu1 %853  ;;  %v1687_v23 = vmul.f32 %v5270_v40, %v5264_v11 }
0x1213   :  { %v674_v25 = vpop.permute.xlu0 %673  ;;  %862 = vst.msk [vmem:[#allocation2 + $0x8] sm:$0xff] %vm860_vm11, %v854_v18  ;;  %v1690_v26 = vpack.c.bf16 %v1688_v17, %v1688_v17  ;;  %v5150_v18 = vld [vmem:[%s6626_s5] sm:$0xff]  }
0x1214   :  { %682 = vst.msk [vmem:[#allocation2 + $0x10] sm:$0x1] %vm681_vm13, %v674_v25  ;;  %v1689_v50 = vpack.c.bf16 %v1687_v23, %v1686_v22 }
0x1216   :  { %4836 = vmatprep.mubr.msk.bf16.mxu0 %vm395_vm6, %v1689_v50  ;;  %v1036_v27 = vpop.permute.xlu1 %1035 }
0x1217   :  { %v1399_v28 = vpop.permute.xlu0 %1398  ;;  %4837 = vmatmul.mubr.msk.bf16.vlgmr.msra.gmra.mxu0 %vm395_vm6, %v1690_v26  ;;  %1044 = vst.msk [vmem:[#allocation2 + $0x8] sm:$0xff] %vm1042_vm12, %v1036_v27  ;;  %v1768_v32 = vld [vmem:[#allocation2] sm:$0xff] }
0x1218   :  { %1406 = vst.msk [vmem:[#allocation2 + $0x19] sm:$0xff] %vm678_vm10, %v1399_v28  ;;  %4841 = vmatpush3.bf16.msra.mxu0 %v5147_v12  ;;  %4844 = vmatprep.mubr.msk.bf16.mxu0 %vm5450_vm0, %v5449_v1 }
0x1219   :  { %4842 = vmatprep.subr.bf16.mxu0 %v5449_v1 }
0x121a   :  { %v1397_v29 = vpop.permute.xlu1 %1396 }
0x121b   :  { %v1577_v30 = vpop.permute.xlu0 %1576  ;;  %1405 = vst.msk [vmem:[#allocation2 + $0x11] sm:$0xff] %vm678_vm10, %v1397_v29 }
0x121c   :  { %1585 = vst.msk [vmem:[#allocation2 + $0x11] sm:$0xff] %vm860_vm11, %v1577_v30  ;;  %4843 = vmatpush3.bf16.msra.mxu0 %v5148_v54 }
0x121d   :  { %4872 = vmatprep.subr.bf16.mxu0 %v5449_v1 }
0x121e   :  { %v856_v31 = vpop.permute.xlu1 %855  ;;  %v1769_v33 = vld [vmem:[#allocation2 + $0x8] sm:$0xff] }
0x121f   :  { %v1038_v34 = vpop.permute.xlu0 %1037  ;;  %864 = vst.msk [vmem:[#allocation2 + $0x10] sm:$0x1] %vm863_vm14, %v856_v31  ;;  %v1773_v42 = vpack.c.bf16 %v1769_v33, %v1768_v32 }
0x1220   :  { %1046 = vst.msk [vmem:[#allocation2 + $0x10] sm:$0x1] %vm1045_vm15, %v1038_v34 }
0x1221   :  { %4845 = vmatmul.mubr.msk.bf16.vlgmr.msra.gmra.mxu0 %vm152_vm2, %v1773_v42 }
0x1222   :  { %v1579_v43 = vpop.permute.xlu1 %1578  ;;  %4848 = vmatprep.mubr.msk.bf16.mxu0 %vm5450_vm0, %v5449_v1 }
0x1223   :  { %1586 = vst.msk [vmem:[#allocation2 + $0x19] sm:$0xff] %vm860_vm11, %v1579_v43 }
0x12d7   :  { %v5936_v44 = vpop.f32.mrf.mxu0 }
0x12d9   :  { %v1739_v45 = vpop.f32.mrf.mxu0 }
0x12da   :  { %1756 = vrot.lane.b32.xlu1 %v1739_v45, %s5465_s23 }
0x12db   :  { %v4839_v49 = vpop.f32.mrf.mxu0 }
0x12dc   :  { %v5993_v49 = vld [vmem:[%s6628_s7 + $0x4] ss:$0 sm:$0xff] }
0x12dd   :  { %v1742_v52 = vpop.f32.mrf.mxu0 }
0x12de   :  { %1758 = vrot.lane.b32.xlu0 %v1742_v52, %s5465_s23 }
0x12e1   :  { %v1835_v53 = vpop.f32.mrf.mxu0 }
0x12e2   :  { %v1857_v62 = vadd.f32 %v1835_v53, %v5546_v9 }
0x12e3   :  { %v4846_v55 = vpop.f32.mrf.mxu0 }
0x12e4   :  { %v5951_v2 = vadd.f32 %v5945_v63, %v1857_v62 }
0x12e5   :  { %v1838_v58 = vpop.f32.mrf.mxu0 }
0x12e6   :  { %v1858_v61 = vadd.f32 %v1838_v58, %v5553_v14  ;;  %v1871_v14 = vsel %vm152_vm2, %v5951_v2, 0.0  ;;  %v6001_v58 = vld [vmem:[%s6628_s7 + $0x5] ss:$0 sm:$0xff] }
0x12e7   :  { %v4847_v60 = vpop.f32.mrf.mxu0 }
0x12e8   :  { %v5948_v0 = vadd.f32 %v5945_v63, %v1858_v61 }
0x12ea   :  { %v1874_v3 = vsel %vm152_vm2, %v5948_v0, 0.0 }
0x12fd   :  { %1875 = vadd.xlane.f32.xlu0 %v1874_v3 }
0x12fe   :  { %1872 = vadd.xlane.f32.xlu1 %v1871_v14  ;;  %v5154_v14 = vld [vmem:[%s6627_s6] sm:$0xff]  }
0x134c   :  { %v1757_v9 = vpop.permute.xlu1 %1756 }
0x134d   :  { %1765 = vst.msk [vmem:[#allocation2 + $0x11] sm:$0xff] %vm1042_vm12, %v1757_v9 }
0x1350   :  { %v1759_v4 = vpop.permute.xlu0 %1758 }
0x1351   :  { %1766 = vst.msk [vmem:[#allocation2 + $0x19] sm:$0xff] %vm1042_vm12, %v1759_v4 }
0x1354   :  { %v1770_v5 = vld [vmem:[#allocation2 + $0x10] sm:$0xff] }
0x1358   :  { %v1771_v6 = vld [vmem:[#allocation2 + $0x18] sm:$0xff] }
0x1359   :  { %v1774_v7 = vpack.c.bf16 %v1771_v6, %v1770_v5 }
0x135b   :  { %4849 = vmatmul.mubr.msk.bf16.gmra.mxu0 %vm152_vm2, %v1774_v7 }
0x135c   :  { %4852 = vmatprep.mubr.msk.bf16.mxu0 %vm5450_vm0, %v5449_v1 }
0x1386   :  { %v1876_v21 = vpop.xlane.xlu0 %1875 }
0x1387   :  { %v1873_v8 = vpop.xlane.xlu1 %1872  ;;  %v1887_v56 = vmul.f32 0.03125, %v1876_v21 }
0x1388   :  { %v1886_v10 = vmul.f32 0.03125, %v1873_v8 }
0x1389   :  { %v1892_v20 = vsub.f32 %v5948_v0, %v1887_v56 }
0x138a   :  { %v1891_v11 = vsub.f32 %v5951_v2, %v1886_v10 }
0x138b   :  { %v1897_v40 = vmul.f32 %v1892_v20, %v1892_v20 }
0x138c   :  { %v1896_v15 = vmul.f32 %v1891_v11, %v1891_v11 }
0x138d   :  { %v1904_v17 = vsel %vm152_vm2, %v1897_v40, 0.0 }
0x138e   :  { %v1901_v16 = vsel %vm152_vm2, %v1896_v15, 0.0 }
0x138f   :  { %1902 = vadd.xlane.f32.xlu1 %v1901_v16 }
0x1418   :  { %v1903_v22 = vpop.xlane.xlu1 %1902 }
0x1419   :  { %v1916_v23 = vmul.f32 0.03125, %v1903_v22 }
0x141b   :  { %v1843_v57 = vpop.f32.mrf.mxu0  ;;  %v1921_v50 = vadd.f32 1e-06, %v1916_v23 }
0x141c   :  { %v1859_v59 = vadd.f32 %v1843_v57, %v5560_v19 }
0x141d   :  { %v4850_v47 = vpop.f32.mrf.mxu0  ;;  %5271 = vrsqrt.f32 %v1921_v50 }
0x141e   :  { %v5966_v51 = vadd.f32 %v5945_v63, %v1859_v59 }
0x141f   :  { %v1846_v46 = vpop.f32.mrf.mxu0 }
0x1420   :  { %v1860_v38 = vadd.f32 %v1846_v46, %v5567_v24  ;;  %v1877_v39 = vsel %vm152_vm2, %v5966_v51, 0.0  ;;  %v5149_v24 = vld [vmem:[%s6626_s5 + $0x8] sm:$0xff]  }
0x1421   :  { %1878 = vadd.xlane.f32.xlu0 %v1877_v39  ;;  %v4851_v41 = vpop.f32.mrf.mxu0  ;;  %4857 = vmatpush3.bf16.msra.mxu1 %v5149_v24 }
0x1422   :  { %v5973_v36 = vadd.f32 %v5945_v63, %v1860_v38  ;;  %4858 = vmatprep.subr.bf16.mxu1 %v5449_v1 }
0x1424   :  { %v1880_v19 = vsel %vm152_vm2, %v5973_v36, 0.0 }
0x1425   :  { %1881 = vadd.xlane.f32.xlu0 %v1880_v19  ;;  %4859 = vmatpush3.bf16.msra.mxu1 %v5150_v18  ;;  %v6044_v19 = vld [vmem:[%s6628_s7 + $0x6] ss:$0 sm:$0xff] }
0x1426   :  { %4892 = vmatprep.subr.bf16.mxu1 %v5449_v1 }
0x1429   :  { %1905 = vadd.xlane.f32.xlu0 %v1904_v17 }
0x142a   :  { %v5272_v43 = vpop.eup %5271 }
0x142b   :  { %v1931_v45 = vmul.f32 %v5272_v43, %v1891_v11 }
0x142d   :  { %v1940_v55 = vmul.f32 %v5993_v49, %v1931_v45 }
0x142f   :  { %v1949_v61 = vadd.f32 %v6001_v58, %v1940_v55 }
0x14aa   :  { %v1879_v25 = vpop.xlane.xlu0 %1878 }
0x14ab   :  { %v1888_v26 = vmul.f32 0.03125, %v1879_v25 }
0x14ad   :  { %v1893_v12 = vsub.f32 %v5966_v51, %v1888_v26 }
0x14ae   :  { %v1882_v27 = vpop.xlane.xlu0 %1881 }
0x14af   :  { %v1889_v28 = vmul.f32 0.03125, %v1882_v27  ;;  %v1898_v54 = vmul.f32 %v1893_v12, %v1893_v12 }
0x14b1   :  { %v1894_v29 = vsub.f32 %v5973_v36, %v1889_v28  ;;  %v1907_v30 = vsel %vm152_vm2, %v1898_v54, 0.0 }
0x14b2   :  { %v1906_v31 = vpop.xlane.xlu0 %1905  ;;  %1908 = vadd.xlane.f32.xlu1 %v1907_v30 }
0x14b3   :  { %v1917_v32 = vmul.f32 0.03125, %v1906_v31  ;;  %v1899_v33 = vmul.f32 %v1894_v29, %v1894_v29 }
0x14b5   :  { %v1922_v34 = vadd.f32 1e-06, %v1917_v32  ;;  %v1910_v42 = vsel %vm152_vm2, %v1899_v33, 0.0 }
0x14b6   :  { %1911 = vadd.xlane.f32.xlu0 %v1910_v42 }
0x14b7   :  { %5273 = vrsqrt.f32 %v1922_v34 }
0x14c3   :  { %1400 = vrot.lane.b32.xlu1 %v5834_v35, %s5463_s21  ;;  %v5151_v35 = vld [vmem:[%s6627_s6 + $0x18] sm:$0xff]  }
0x14c4   :  { %v5274_v52 = vpop.eup %5273  ;;  %4873 = vmatpush3.bf16.msra.mxu0 %v5151_v35 }
0x14c5   :  { %v1932_v53 = vmul.f32 %v5274_v52, %v1892_v20  ;;  %4874 = vmatprep.subr.bf16.mxu0 %v5449_v1 }
0x14c7   :  { %1760 = vrot.lane.b32.xlu1 %v5936_v44, %s5465_s23  ;;  %v1941_v60 = vmul.f32 %v5993_v49, %v1932_v53  ;;  %v5152_v44 = vld [vmem:[%s6627_s6 + $0x10] sm:$0xff]  }
0x14c8   :  { %4875 = vmatpush3.bf16.msra.mxu0 %v5152_v44 }
0x14c9   :  { %v1950_v62 = vadd.f32 %v6001_v58, %v1941_v60  ;;  %4876 = vmatprep.subr.bf16.mxu0 %v5449_v1 }
0x14cb   :  { %v1954_v3 = vpack.c.bf16 %v1950_v62, %v1949_v61 }
0x14cc   :  { %1580 = vrot.lane.b32.xlu0 %v5870_v37, %s5464_s22  ;;  %v5153_v37 = vld [vmem:[%s6627_s6 + $0x8] sm:$0xff]  }
0x14cd   :  { %4861 = vmatmul.mubr.msk.bf16.vlgmr.msra.gmra.mxu1 %vm152_vm2, %v1954_v3  ;;  %4877 = vmatpush3.bf16.msra.mxu0 %v5153_v37 }
0x14ce   :  { %4864 = vmatprep.mubr.msk.bf16.mxu1 %vm5450_vm0, %v5449_v1  ;;  %4878 = vmatprep.subr.bf16.mxu0 %v5449_v1 }
0x14d1   :  { %4879 = vmatpush3.bf16.msra.mxu0 %v5154_v14 }
0x153b   :  { %v1909_v9 = vpop.xlane.xlu1 %1908 }
0x153c   :  { %v1918_v4 = vmul.f32 0.03125, %v1909_v9 }
0x153e   :  { %v1923_v5 = vadd.f32 1e-06, %v1918_v4 }
0x153f   :  { %v1912_v6 = vpop.xlane.xlu0 %1911  ;;  %v1401_v7 = vpop.permute.xlu1 %1400 }
0x1540   :  { %5275 = vrsqrt.f32 %v1923_v5  ;;  %v1919_v8 = vmul.f32 0.03125, %v1912_v6  ;;  %1407 = vst.msk [vmem:[#allocation2 + $0x21] sm:$0x1] %vm681_vm13, %v1401_v7 }
0x1542   :  { %v1924_v10 = vadd.f32 1e-06, %v1919_v8 }
0x1543   :  { %v1581_v11 = vpop.permute.xlu0 %1580  ;;  %v1761_v15 = vpop.permute.xlu1 %1760 }
0x1544   :  { %5277 = vrsqrt.f32 %v1924_v10  ;;  %1587 = vst.msk [vmem:[#allocation2 + $0x21] sm:$0x1] %vm863_vm14, %v1581_v11 }
0x1545   :  { %1767 = vst.msk [vmem:[#allocation2 + $0x21] sm:$0x1] %vm1045_vm15, %v1761_v15 }
0x154c   :  { %v1772_v16 = vld [vmem:[#allocation2 + $0x20] sm:$0x3] }
0x154d   :  { %v5276_v21 = vpop.eup %5275  ;;  %v1775_v57 = vpack.c.bf16 %v1772_v16, %v1772_v16 }
0x154e   :  { %v1933_v56 = vmul.f32 %v5276_v21, %v1893_v12 }
0x154f   :  { %4853 = vmatmul.mubr.msk.bf16.gmra.mxu0 %vm152_vm2, %v1775_v57 }
0x1550   :  { %4880 = vmatprep.mubr.msk.bf16.mxu0 %vm5450_vm0, %v5449_v1  ;;  %v1942_v46 = vmul.f32 %v5993_v49, %v1933_v56 }
0x1551   :  { %v5278_v59 = vpop.eup %5277 }
0x1552   :  { %v1934_v47 = vmul.f32 %v5278_v59, %v1894_v29  ;;  %v1951_v38 = vadd.f32 %v6001_v58, %v1942_v46 }
0x1554   :  { %v1943_v20 = vmul.f32 %v5993_v49, %v1934_v47 }
0x1556   :  { %v1952_v39 = vadd.f32 %v6001_v58, %v1943_v20 }
0x1558   :  { %v1955_v41 = vpack.c.bf16 %v1952_v39, %v1951_v38 }
0x155a   :  { %4865 = vmatmul.mubr.msk.bf16.gmra.mxu1 %vm152_vm2, %v1955_v41 }
0x155b   :  { %4868 = vmatprep.mubr.msk.bf16.mxu1 %vm5450_vm0, %v5449_v1 }
0x158d   :  { %v2020_v40 = vpop.f32.mrf.mxu1 }
0x158e   :  { %v2021_v17 = vadd.f32 %v6044_v19, %v2020_v40 }
0x158f   :  { %v4862_v24 = vpop.f32.mrf.mxu1 }
0x1590   :  { %v2042_v18 = vmul.f32 %v2021_v17, %v2021_v17  ;;  %v6065_v24 = vld [vmem:[%s6628_s7 + $0x7] ss:$0 sm:$0xff] }
0x1591   :  { %v2023_v22 = vpop.f32.mrf.mxu1 }
0x1592   :  { %v2047_v23 = vmul.f32 %v2042_v18, %v2021_v17  ;;  %v2024_v25 = vadd.f32 %v6044_v19, %v2023_v22 }
0x1593   :  { %v4863_v26 = vpop.f32.mrf.mxu1 }
0x1594   :  { %v2052_v50 = vmul.f32 0.044715, %v2047_v23  ;;  %v2043_v12 = vmul.f32 %v2024_v25, %v2024_v25 }
0x1596   :  { %v2057_v27 = vadd.f32 %v2052_v50, %v2021_v17  ;;  %v2048_v28 = vmul.f32 %v2043_v12, %v2024_v25 }
0x1598   :  { %v2062_v54 = vmul.f32 0.7978846, %v2057_v27  ;;  %v2053_v29 = vmul.f32 0.044715, %v2048_v28 }
0x159a   :  { %5279 = vtanh.f32 %v2062_v54  ;;  %v2058_v30 = vadd.f32 %v2053_v29, %v2024_v25 }
0x159c   :  { %v2063_v31 = vmul.f32 0.7978846, %v2058_v30 }
0x159e   :  { %5281 = vtanh.f32 %v2063_v31 }
0x15a7   :  { %v5280_v32 = vpop.eup %5279 }
0x15a8   :  { %v2072_v33 = vadd.f32 1.0, %v5280_v32 }
0x15aa   :  { %v2077_v42 = vmul.f32 0.5, %v2072_v33 }
0x15ab   :  { %v5282_v34 = vpop.eup %5281 }
0x15ac   :  { %v2073_v43 = vadd.f32 1.0, %v5282_v34  ;;  %v2082_v52 = vmul.f32 %v2077_v42, %v2021_v17 }
0x15ae   :  { %v2078_v45 = vmul.f32 0.5, %v2073_v43 }
0x15b0   :  { %v2083_v53 = vmul.f32 %v2078_v45, %v2024_v25 }
0x15b2   :  { %v2087_v55 = vpack.c.bf16 %v2083_v53, %v2082_v52 }
0x15b4   :  { %4881 = vmatmul.mubr.msk.bf16.vlgmr.msra.gmra.mxu0 %vm2126_vm1, %v2087_v55 }
0x15b5   :  { %4884 = vmatprep.mubr.msk.bf16.mxu0 %vm5450_vm0, %v5449_v1 }
0x160f   :  { %v1851_v60 = vpop.f32.mrf.mxu0 }
0x1610   :  { %v1861_v61 = vadd.f32 %v1851_v60, %v5579_v48 }
0x1611   :  { %v4854_v62 = vpop.f32.mrf.mxu0 }
0x1612   :  { %v6053_v3 = vadd.f32 %v5945_v63, %v1861_v61 }
0x1613   :  { %v1854_v35 = vpop.f32.mrf.mxu0 }
0x1614   :  { %v1883_v44 = vsel %vm165_vm3, %v6053_v3, 0.0 }
0x1615   :  { %1884 = vadd.xlane.f32.xlu1 %v1883_v44  ;;  %v4855_v37 = vpop.f32.mrf.mxu0 }
0x161a   :  { %v2028_v14 = vpop.f32.mrf.mxu1 }
0x161b   :  { %v2029_v9 = vadd.f32 %v6044_v19, %v2028_v14 }
0x161c   :  { %v4866_v4 = vpop.f32.mrf.mxu1 }
0x161d   :  { %v2044_v5 = vmul.f32 %v2029_v9, %v2029_v9 }
0x161e   :  { %v2031_v6 = vpop.f32.mrf.mxu1 }
0x161f   :  { %v2049_v7 = vmul.f32 %v2044_v5, %v2029_v9  ;;  %v2032_v8 = vadd.f32 %v6044_v19, %v2031_v6  ;;  %v5156_v6 = vld [vmem:[%s6624_s3 + $0x10] sm:$0xff]  }
0x1620   :  { %v4867_v48 = vpop.f32.mrf.mxu1 }
0x1621   :  { %v2054_v10 = vmul.f32 0.044715, %v2049_v7  ;;  %v2045_v11 = vmul.f32 %v2032_v8, %v2032_v8 }
0x1623   :  { %v2059_v63 = vadd.f32 %v2054_v10, %v2029_v9  ;;  %v2050_v15 = vmul.f32 %v2045_v11, %v2032_v8 }
0x1625   :  { %v2064_v16 = vmul.f32 0.7978846, %v2059_v63  ;;  %v2055_v21 = vmul.f32 0.044715, %v2050_v15 }
0x1627   :  { %5283 = vtanh.f32 %v2064_v16  ;;  %v2060_v57 = vadd.f32 %v2055_v21, %v2032_v8 }
0x1629   :  { %v2065_v56 = vmul.f32 0.7978846, %v2060_v57 }
0x162b   :  { %5285 = vtanh.f32 %v2065_v56 }
0x1634   :  { %v5284_v59 = vpop.eup %5283 }
0x1635   :  { %v2074_v47 = vadd.f32 1.0, %v5284_v59 }
0x1637   :  { %v2079_v20 = vmul.f32 0.5, %v2074_v47 }
0x1638   :  { %v5286_v46 = vpop.eup %5285 }
0x1639   :  { %v2075_v38 = vadd.f32 1.0, %v5286_v46  ;;  %v2084_v41 = vmul.f32 %v2079_v20, %v2029_v9 }
0x163b   :  { %v2080_v39 = vmul.f32 0.5, %v2075_v38 }
0x163d   :  { %v2085_v40 = vmul.f32 %v2080_v39, %v2032_v8 }
0x163f   :  { %v2088_v17 = vpack.c.bf16 %v2085_v40, %v2084_v41 }
0x1641   :  { %4885 = vmatmul.mubr.msk.bf16.gmra.mxu0 %vm2126_vm1, %v2088_v17 }
0x1642   :  { %4888 = vmatprep.mubr.msk.bf16.mxu0 %vm5450_vm0, %v5449_v1 }
0x1674   :  { %v2170_v18 = vpop.f32.mrf.mxu0 }
0x1675   :  { %v2171_v22 = vadd.f32 %v6065_v24, %v2170_v18 }
0x1676   :  { %v4882_v23 = vpop.f32.mrf.mxu0 }
0x1677   :  { %v6069_v25 = vadd.f32 %v2171_v22, %v5951_v2 }
0x1678   :  { %v2173_v26 = vpop.f32.mrf.mxu0 }
0x1679   :  { %v2174_v50 = vadd.f32 %v6065_v24, %v2173_v26  ;;  %v2205_v12 = vsel %vm152_vm2, %v6069_v25, 0.0  ;;  %v6112_v26 = vld [vmem:[%s6628_s7 + $0x8] ss:$0 sm:$0xff] }
0x167a   :  { %2206 = vadd.xlane.f32.xlu0 %v2205_v12  ;;  %v4883_v27 = vpop.f32.mrf.mxu0 }
0x167b   :  { %v6075_v28 = vadd.f32 %v2174_v50, %v5948_v0 }
0x167d   :  { %v2208_v54 = vsel %vm152_vm2, %v6075_v28, 0.0 }
0x167e   :  { %2209 = vadd.xlane.f32.xlu0 %v2208_v54 }
0x169e   :  { %v1885_v29 = vpop.xlane.xlu1 %1884 }
0x169f   :  { %v1890_v30 = vmul.f32 0.03125, %v1885_v29 }
0x16a1   :  { %v1895_v2 = vsub.f32 %v6053_v3, %v1890_v30 }
0x16a3   :  { %v1900_v55 = vmul.f32 %v1895_v2, %v1895_v2 }
0x16a5   :  { %v1913_v44 = vsel %vm165_vm3, %v1900_v55, 0.0 }
0x1701   :  { %v2178_v31 = vpop.f32.mrf.mxu0 }
0x1702   :  { %v2179_v32 = vadd.f32 %v6065_v24, %v2178_v31 }
0x1703   :  { %v2207_v33 = vpop.xlane.xlu0 %2206  ;;  %v4886_v34 = vpop.f32.mrf.mxu0 }
0x1704   :  { %v6082_v42 = vadd.f32 %v2179_v32, %v5966_v51  ;;  %v2220_v43 = vmul.f32 0.03125, %v2207_v33 }
0x1705   :  { %v2181_v45 = vpop.f32.mrf.mxu0 }
0x1706   :  { %v2225_v0 = vsub.f32 %v6069_v25, %v2220_v43  ;;  %v2182_v52 = vadd.f32 %v6065_v24, %v2181_v45  ;;  %v2211_v53 = vsel %vm152_vm2, %v6082_v42, 0.0 }
0x1707   :  { %v2210_v60 = vpop.xlane.xlu0 %2209  ;;  %2212 = vadd.xlane.f32.xlu1 %v2211_v53  ;;  %v4887_v61 = vpop.f32.mrf.mxu0 }
0x1708   :  { %v6089_v62 = vadd.f32 %v2182_v52, %v5973_v36  ;;  %v2221_v35 = vmul.f32 0.03125, %v2210_v60  ;;  %v2230_v14 = vmul.f32 %v2225_v0, %v2225_v0  ;;  %v5155_v36 = vld [vmem:[%s6624_s3 + $0x18] sm:$0xff]  }
0x1709   :  { %4893 = vmatpush3.bf16.msra.mxu1 %v5155_v36 }
0x170a   :  { %v2226_v51 = vsub.f32 %v6075_v28, %v2221_v35  ;;  %v2214_v37 = vsel %vm152_vm2, %v6089_v62, 0.0  ;;  %v2235_v5 = vsel %vm152_vm2, %v2230_v14, 0.0  ;;  %4894 = vmatprep.subr.bf16.mxu1 %v5449_v1 }
0x170b   :  { %1914 = vadd.xlane.f32.xlu1 %v1913_v44  ;;  %2215 = vadd.xlane.f32.xlu0 %v2214_v37 }
0x170c   :  { %v2231_v9 = vmul.f32 %v2226_v51, %v2226_v51 }
0x170d   :  { %4895 = vmatpush3.bf16.msra.mxu1 %v5156_v6 }
0x170e   :  { %v2238_v4 = vsel %vm152_vm2, %v2231_v9, 0.0 }
0x170f   :  { %2239 = vadd.xlane.f32.xlu1 %v2238_v4  ;;  %2236 = vadd.xlane.f32.xlu0 %v2235_v5 }
0x1790   :  { %v2213_v7 = vpop.xlane.xlu1 %2212 }
0x1791   :  { %v2222_v8 = vmul.f32 0.03125, %v2213_v7 }
0x1793   :  { %v2227_v48 = vsub.f32 %v6082_v42, %v2222_v8 }
0x1794   :  { %v1915_v10 = vpop.xlane.xlu1 %1914  ;;  %v2216_v11 = vpop.xlane.xlu0 %2215 }
0x1795   :  { %v1920_v63 = vmul.f32 0.03125, %v1915_v10  ;;  %v2223_v15 = vmul.f32 0.03125, %v2216_v11  ;;  %v2232_v16 = vmul.f32 %v2227_v48, %v2227_v48 }
0x1797   :  { %v1925_v21 = vadd.f32 1e-06, %v1920_v63  ;;  %v2228_v57 = vsub.f32 %v6089_v62, %v2223_v15  ;;  %v2241_v56 = vsel %vm152_vm2, %v2232_v16, 0.0  ;;  %v6141_v63 = vld [vmem:[%s6628_s7 + $0xa] ss:$0 sm:$0xff] }
0x1798   :  { %v2240_v59 = vpop.xlane.xlu1 %2239  ;;  %2242 = vadd.xlane.f32.xlu0 %v2241_v56  ;;  %v2237_v47 = vpop.xlane.xlu0 %2236 }
0x1799   :  { %5287 = vrsqrt.f32 %v1925_v21  ;;  %v2251_v46 = vmul.f32 0.03125, %v2240_v59  ;;  %v2250_v20 = vmul.f32 0.03125, %v2237_v47  ;;  %v2233_v38 = vmul.f32 %v2228_v57, %v2228_v57 }
0x179b   :  { %v2256_v39 = vadd.f32 1e-06, %v2251_v46  ;;  %v2255_v41 = vadd.f32 1e-06, %v2250_v20  ;;  %v2244_v40 = vsel %vm152_vm2, %v2233_v38, 0.0 }
0x179c   :  { %2245 = vadd.xlane.f32.xlu1 %v2244_v40 }
0x179d   :  { %5289 = vrsqrt.f32 %v2256_v39 }
0x179e   :  { %5291 = vrsqrt.f32 %v2255_v41 }
0x17a6   :  { %v5288_v17 = vpop.eup %5287 }
0x17a7   :  { %v1935_v18 = vmul.f32 %v5288_v17, %v1895_v2 }
0x17a9   :  { %v1944_v22 = vmul.f32 %v5993_v49, %v1935_v18  ;;  %v6120_v49 = vld [vmem:[%s6628_s7 + $0x9] ss:$0 sm:$0xff] }
0x17aa   :  { %v5290_v23 = vpop.eup %5289 }
0x17ab   :  { %v5292_v50 = vpop.eup %5291  ;;  %v2266_v12 = vmul.f32 %v5290_v23, %v2226_v51  ;;  %v1953_v27 = vadd.f32 %v6001_v58, %v1944_v22 }
0x17ac   :  { %v2265_v54 = vmul.f32 %v5292_v50, %v2225_v0 }
0x17ad   :  { %v2275_v29 = vmul.f32 %v6112_v26, %v2266_v12  ;;  %v1956_v30 = vpack.c.bf16 %v1953_v27, %v1953_v27 }
0x17ae   :  { %v2274_v31 = vmul.f32 %v6112_v26, %v2265_v54 }
0x17af   :  { %4869 = vmatmul.mubr.msk.bf16.gmra.mxu1 %vm152_vm2, %v1956_v30  ;;  %v2284_v58 = vadd.f32 %v6120_v49, %v2275_v29 }
0x17b0   :  { %4896 = vmatprep.mubr.msk.bf16.mxu1 %vm5450_vm0, %v5449_v1  ;;  %v2283_v2 = vadd.f32 %v6120_v49, %v2274_v31 }
0x17b2   :  { %v2288_v32 = vpack.c.bf16 %v2284_v58, %v2283_v2 }
0x17b7   :  { %4897 = vmatmul.mubr.msk.bf16.vlgmr.msra.gmra.mxu1 %vm152_vm2, %v2288_v32 }
0x17b8   :  { %4900 = vmatprep.mubr.msk.bf16.mxu1 %vm5450_vm0, %v5449_v1 }
0x1821   :  { %v2243_v33 = vpop.xlane.xlu0 %2242 }
0x1822   :  { %v2252_v34 = vmul.f32 0.03125, %v2243_v33 }
0x1824   :  { %v2257_v43 = vadd.f32 1e-06, %v2252_v34 }
0x1825   :  { %v2246_v45 = vpop.xlane.xlu1 %2245 }
0x1826   :  { %5293 = vrsqrt.f32 %v2257_v43  ;;  %v2253_v0 = vmul.f32 0.03125, %v2246_v45 }
0x1828   :  { %v2258_v52 = vadd.f32 1e-06, %v2253_v0 }
0x182a   :  { %5295 = vrsqrt.f32 %v2258_v52 }
0x1833   :  { %v5294_v53 = vpop.eup %5293 }
0x1834   :  { %v2267_v55 = vmul.f32 %v5294_v53, %v2227_v48 }
0x1836   :  { %v2276_v35 = vmul.f32 %v6112_v26, %v2267_v55 }
0x1837   :  { %v5296_v60 = vpop.eup %5295 }
0x1838   :  { %v2268_v61 = vmul.f32 %v5296_v60, %v2228_v57  ;;  %v2285_v44 = vadd.f32 %v6120_v49, %v2276_v35 }
0x183a   :  { %v2277_v51 = vmul.f32 %v6112_v26, %v2268_v61 }
0x183c   :  { %v2286_v37 = vadd.f32 %v6120_v49, %v2277_v51 }
0x183e   :  { %v2289_v14 = vpack.c.bf16 %v2286_v37, %v2285_v44 }
0x1840   :  { %4901 = vmatmul.mubr.msk.bf16.gmra.mxu1 %vm152_vm2, %v2289_v14 }
0x1841   :  { %4904 = vmatprep.mubr.msk.bf16.mxu1 %vm5450_vm0, %v5449_v1 }
0x186f   :  { %v2036_v9 = vpop.f32.mrf.mxu1 }
0x1870   :  { %v2037_v4 = vadd.f32 %v6044_v19, %v2036_v9 }
0x1871   :  { %v4870_v5 = vpop.f32.mrf.mxu1 }
0x1872   :  { %v2046_v36 = vmul.f32 %v2037_v4, %v2037_v4 }
0x1873   :  { %v2039_v6 = vpop.f32.mrf.mxu1 }
0x1874   :  { %v2051_v7 = vmul.f32 %v2046_v36, %v2037_v4 }
0x1875   :  { %v4871_v8 = vpop.f32.mrf.mxu1 }
0x1876   :  { %v2056_v48 = vmul.f32 0.044715, %v2051_v7 }
0x1877   :  { %v2355_v10 = vpop.f32.mrf.mxu1 }
0x1878   :  { %v2061_v11 = vadd.f32 %v2056_v48, %v2037_v4  ;;  %v2356_v57 = vadd.f32 %v6141_v63, %v2355_v10 }
0x1879   :  { %v4898_v15 = vpop.f32.mrf.mxu1 }
0x187a   :  { %v2066_v16 = vmul.f32 0.7978846, %v2061_v11 }
0x187b   :  { %v2358_v21 = vpop.f32.mrf.mxu1 }
0x187c   :  { %5297 = vtanh.f32 %v2066_v16  ;;  %v2359_v19 = vadd.f32 %v6141_v63, %v2358_v21 }
0x187d   :  { %v4899_v56 = vpop.f32.mrf.mxu1 }
0x187e   :  { %v6145_v59 = vpack.c.bf16 %v2359_v19, %v2356_v57 }
0x1880   :  { %2381 = vrot.lane.b32.xlu1 %v6145_v59, %s5451_s12 }
0x1889   :  { %v5298_v47 = vpop.eup %5297 }
0x188a   :  { %v2076_v46 = vadd.f32 1.0, %v5298_v47 }
0x188c   :  { %v2081_v20 = vmul.f32 0.5, %v2076_v46 }
0x188e   :  { %v2086_v38 = vmul.f32 %v2081_v20, %v2037_v4 }
0x1890   :  { %v2089_v39 = vpack.c.bf16 %v2086_v38, %v2086_v38 }
0x1892   :  { %4889 = vmatmul.mubr.msk.bf16.gmra.mxu0 %vm2126_vm1, %v2089_v39 }
0x1893   :  { %4912 = vmatprep.mubr.msk.bf16.mxu0 %vm334_vm4, %v6145_v59 }
0x18f2   :  { %v2382_v34 = vpop.permute.xlu1 %2381 }
0x1900   :  { %v2363_v41 = vpop.f32.mrf.mxu1 }
0x1901   :  { %v2364_v40 = vadd.f32 %v6141_v63, %v2363_v41 }
0x1902   :  { %v4902_v17 = vpop.f32.mrf.mxu1 }
0x1903   :  { %v6153_v18 = vpack.c.bf16 %v2364_v40, %v2364_v40 }
0x1904   :  { %v2366_v22 = vpop.f32.mrf.mxu1 }
0x1905   :  { %v2367_v23 = vadd.f32 %v6141_v63, %v2366_v22  ;;  %2551 = vrot.lane.b32.xlu1 %v6153_v18, %s5452_s13  ;;  %2383 = vrot.lane.b32.xlu0 %v6153_v18, %s5451_s12 }
0x1906   :  { %v4903_v50 = vpop.f32.mrf.mxu1 }
0x1907   :  { %v6160_v12 = vpack.c.bf16 %v2367_v23, %v2364_v40 }
0x1909   :  { %2549 = vrot.lane.b32.xlu1 %v6145_v59, %s5452_s13  ;;  %2545 = vrot.lane.b32.xlu0 %v6145_v59, %s5453_s14 }
0x190d   :  { %2547 = vrot.lane.b32.xlu1 %v6153_v18, %s5453_s14 }
0x1952   :  { %v2186_v27 = vpop.f32.mrf.mxu0 }
0x1953   :  { %v2187_v54 = vadd.f32 %v6065_v24, %v2186_v27  ;;  %v2392_v24 = vsel %vm334_vm4, %v2382_v34, 0 }
0x1954   :  { %v4890_v29 = vpop.f32.mrf.mxu0 }
0x1955   :  { %v6170_v30 = vadd.f32 %v2187_v54, %v6053_v3 }
0x1956   :  { %v2189_v31 = vpop.f32.mrf.mxu0 }
0x1957   :  { %v2217_v2 = vsel %vm165_vm3, %v6170_v30, 0.0 }
0x1958   :  { %2218 = vadd.xlane.f32.xlu0 %v2217_v2  ;;  %v4891_v58 = vpop.f32.mrf.mxu0 }
0x1977   :  { %v2384_v32 = vpop.permute.xlu0 %2383  ;;  %v2552_v43 = vpop.permute.xlu1 %2551 }
0x1978   :  { %5104 = vmatprep.subr.msk.bf16.mxu0 %vm334_vm4, %v2384_v32  ;;  %v2395_v33 = vsel %vm334_vm4, %v2384_v32, 0  ;;  %v2563_v45 = vsel %vm334_vm4, %v2552_v43, 0 }
0x1979   :  { %4909 = vmatpush3.bf16.xpose.msra.mxu0 %v2395_v33 }
0x197a   :  { %5105 = vmatprep.subr.msk.bf16.mxu0 %vm334_vm4, %v2382_v34 }
0x197b   :  { %v2546_v3 = vpop.permute.xlu0 %2545  ;;  %v2550_v0 = vpop.permute.xlu1 %2549 }
0x197c   :  { %v2560_v52 = vsel %vm334_vm4, %v2550_v0, 0 }
0x197f   :  { %v2548_v53 = vpop.permute.xlu1 %2547 }
0x1981   :  { %4911 = vmatpush3.bf16.xpose.msra.mxu0 %v2392_v24 }
0x1982   :  { %5106 = vmatprep.subr.msk.bf16.mxu0 %vm334_vm4, %v2552_v43 }
0x1988   :  { %4913 = vmatmul.mubr.msk.bf16.vlgmr.msra.gmra.mxu0 %vm334_vm4, %v6153_v18 }
0x1989   :  { %4925 = vmatpush3.bf16.xpose.msra.mxu0 %v2563_v45  ;;  %4928 = vmatprep.mubr.msk.bf16.mxu0 %vm334_vm4, %v2546_v3 }
0x198a   :  { %5107 = vmatprep.subr.msk.bf16.mxu0 %vm334_vm4, %v2550_v0 }
0x1991   :  { %4927 = vmatpush3.bf16.xpose.msra.mxu0 %v2560_v52 }
0x1998   :  { %4929 = vmatmul.mubr.msk.bf16.vlgmr.msra.gmra.mxu0 %vm334_vm4, %v2548_v53 }
0x19e1   :  { %v2219_v14 = vpop.xlane.xlu0 %2218 }
0x19e2   :  { %v2224_v9 = vmul.f32 0.03125, %v2219_v14 }
0x19e4   :  { %v2229_v36 = vsub.f32 %v6170_v30, %v2224_v9 }
0x19e6   :  { %v2234_v11 = vmul.f32 %v2229_v36, %v2229_v36 }
0x19e8   :  { %v2247_v15 = vsel %vm165_vm3, %v2234_v11, 0.0 }
0x1a48   :  { %v4914_v55 = vpop.f32.mrf.mxu0 }
0x1a49   :  { %v2451_v37 = vsel %vm402_vm7, %v4914_v55, -inf }
0x1a4a   :  { %v2431_v60 = vpop.f32.mrf.mxu0 }
0x1a4b   :  { %v2445_v61 = vsel %vm395_vm6, %v2431_v60, -inf }
0x1a4c   :  { %2446 = vmax.xlane.f32.xlu1 %v2445_v61  ;;  %v4915_v35 = vpop.f32.mrf.mxu0 }
0x1a4e   :  { %v2434_v51 = vpop.f32.mrf.mxu0 }
0x1a4f   :  { %v2448_v44 = vsel %vm395_vm6, %v2434_v51, -inf }
0x1a50   :  { %2449 = vmax.xlane.f32.xlu0 %v2448_v44 }
0x1a54   :  { %2452 = vmax.xlane.f32.xlu0 %v2451_v37 }
0x1a58   :  { %v4930_v4 = vpop.f32.mrf.mxu0 }
0x1a59   :  { %v2619_v10 = vsel %vm402_vm7, %v4930_v4, -inf }
0x1a5a   :  { %v2599_v5 = vpop.f32.mrf.mxu0 }
0x1a5b   :  { %v2613_v6 = vsel %vm395_vm6, %v2599_v5, -inf }
0x1a5c   :  { %v4931_v7 = vpop.f32.mrf.mxu0  ;;  %2614 = vmax.xlane.f32.xlu0 %v2613_v6 }
0x1a5e   :  { %v2602_v8 = vpop.f32.mrf.mxu0 }
0x1a5f   :  { %v2616_v48 = vsel %vm395_vm6, %v2602_v8, -inf }
0x1a60   :  { %2617 = vmax.xlane.f32.xlu1 %v2616_v48  ;;  %2620 = vmax.xlane.f32.xlu0 %v2619_v10 }
0x1a64   :  { %2248 = vadd.xlane.f32.xlu1 %v2247_v15 }
0x1a75   :  { %2480 = vrot.lane.b32.xlu1 %v6145_v59, %s5454_s2 }
0x1a79   :  { %2650 = vrot.lane.b32.xlu1 %v6153_v18, %s5455_s15 }
0x1ad5   :  { %v2447_v16 = vpop.xlane.xlu1 %2446 }
0x1ad6   :  { %v2454_v19 = vsub.f32 %v2431_v60, %v2447_v16 }
0x1ad8   :  { %v2457_v20 = vmul.f32 1.442695, %v2454_v19 }
0x1ad9   :  { %v2450_v21 = vpop.xlane.xlu0 %2449 }
0x1ada   :  { %v2455_v57 = vsub.f32 %v2434_v51, %v2450_v21 }
0x1adc   :  { %v2459_v56 = vmul.f32 1.442695, %v2455_v57 }
0x1add   :  { %v2453_v47 = vpop.xlane.xlu0 %2452 }
0x1ade   :  { %5299 = vpow2.f32 %v2459_v56  ;;  %v2456_v46 = vsub.f32 %v4914_v55, %v2453_v47 }
0x1ae0   :  { %v2461_v38 = vmul.f32 1.442695, %v2456_v46 }
0x1ae2   :  { %5301 = vpow2.f32 %v2461_v38 }
0x1ae3   :  { %5303 = vpow2.f32 %v2457_v20 }
0x1ae5   :  { %v2615_v39 = vpop.xlane.xlu0 %2614 }
0x1ae6   :  { %v2622_v41 = vsub.f32 %v2599_v5, %v2615_v39 }
0x1ae8   :  { %v2625_v54 = vmul.f32 1.442695, %v2622_v41 }
0x1ae9   :  { %v2618_v40 = vpop.xlane.xlu1 %2617  ;;  %v2621_v17 = vpop.xlane.xlu0 %2620 }
0x1aea   :  { %v2624_v22 = vsub.f32 %v4930_v4, %v2621_v17  ;;  %v2623_v61 = vsub.f32 %v2602_v8, %v2618_v40 }
0x1aeb   :  { %v6198_v23 = vpop.eup %5299 }
0x1aec   :  { %v2629_v50 = vmul.f32 1.442695, %v2624_v22  ;;  %v2466_v27 = vsel %vm395_vm6, %v6198_v23, 0.0  ;;  %v2627_v35 = vmul.f32 1.442695, %v2623_v61 }
0x1aed   :  { %v2249_v29 = vpop.xlane.xlu1 %2248  ;;  %2467 = vadd.xlane.f32.xlu1 %v2466_v27 }
0x1aee   :  { %v2254_v31 = vmul.f32 0.03125, %v2249_v29  ;;  %5305 = vpow2.f32 %v2629_v50 }
0x1aef   :  { %v5302_v2 = vpop.eup %5301  ;;  %5307 = vpow2.f32 %v2625_v54 }
0x1af0   :  { %v2259_v58 = vadd.f32 1e-06, %v2254_v31  ;;  %v2469_v32 = vsel %vm402_vm7, %v5302_v2, 0.0  ;;  %v5304_v33 = vpop.eup %5303 }
0x1af1   :  { %2470 = vadd.xlane.f32.xlu0 %v2469_v32  ;;  %v2463_v34 = vsel %vm395_vm6, %v5304_v33, 0.0  ;;  %v2481_v51 = vpop.permute.xlu1 %2480 }
0x1af2   :  { %5309 = vrsqrt.f32 %v2259_v58 }
0x1af3   :  { %5311 = vpow2.f32 %v2627_v35 }
0x1af5   :  { %2464 = vadd.xlane.f32.xlu0 %v2463_v34  ;;  %v2651_v44 = vpop.permute.xlu1 %2650  ;;  %v3088_v34 = vshrl.u32 %v6160_v12, 16 }
0x1af6   :  { %v2660_v7 = vand.u32 %v2651_v44, %v5684_v13 }
0x1afb   :  { %v6204_v24 = vpop.eup %5305 }
0x1afc   :  { %v2637_v43 = vsel %vm402_vm7, %v6204_v24, 0.0  ;;  %v6208_v3 = vpop.eup %5307 }
0x1afd   :  { %2638 = vadd.xlane.f32.xlu1 %v2637_v43  ;;  %v2631_v52 = vsel %vm395_vm6, %v6208_v3, 0.0 }
0x1aff   :  { %v5310_v45 = vpop.eup %5309 }
0x1b00   :  { %v2269_v0 = vmul.f32 %v5310_v45, %v2229_v36 }
0x1b01   :  { %2632 = vadd.xlane.f32.xlu1 %v2631_v52 }
0x1b02   :  { %v2278_v53 = vmul.f32 %v6112_v26, %v2269_v0  ;;  %v5312_v26 = vpop.eup %5311 }
0x1b04   :  { %v2287_v55 = vadd.f32 %v6120_v49, %v2278_v53  ;;  %v2634_v49 = vsel %vm395_vm6, %v5312_v26, 0.0 }
0x1b06   :  { %v2290_v60 = vpack.c.bf16 %v2287_v55, %v2287_v55 }
0x1b08   :  { %4905 = vmatmul.mubr.msk.bf16.gmra.mxu1 %vm152_vm2, %v2290_v60 }
0x1b0b   :  { %2482 = vrot.lane.b32.xlu0 %v6153_v18, %s5454_s2 }
0x1b12   :  { %2648 = vrot.lane.b32.xlu1 %v6145_v59, %s5455_s15 }
0x1b16   :  { %2729 = vrot.lane.b32.xlu1 %v6145_v59, %s5456_s16 }
0x1b1a   :  { %2727 = vrot.lane.b32.xlu1 %v6153_v18, %s5457_s17 }
0x1b2a   :  { %2635 = vadd.xlane.f32.xlu0 %v2634_v49 }
0x1b40   :  { %2731 = vrot.lane.b32.xlu0 %v6153_v18, %s5456_s16 }
0x1b44   :  { %2725 = vrot.lane.b32.xlu0 %v6145_v59, %s5457_s17 }
0x1b76   :  { %v2468_v37 = vpop.xlane.xlu1 %2467 }
0x1b7a   :  { %v2471_v14 = vpop.xlane.xlu0 %2470 }
0x1b7b   :  { %5313 = vrcp.f32 %v2471_v14 }
0x1b7c   :  { %5315 = vrcp.f32 %v2468_v37 }
0x1b7e   :  { %v2465_v9 = vpop.xlane.xlu0 %2464 }
0x1b7f   :  { %5317 = vrcp.f32 %v2465_v9 }
0x1b82   :  { %v2483_v4 = vpop.permute.xlu0 %2482 }
0x1b83   :  { %v2492_v5 = vand.u32 %v2483_v4, %v5684_v13 }
0x1b85   :  { %4916 = vmatprep.subr.bf16.mxu1 %v2492_v5 }
0x1b86   :  { %4917 = vmatpush3.bf16.msra.mxu1 %v2492_v5  ;;  %v2639_v36 = vpop.xlane.xlu1 %2638 }
0x1b87   :  { %4918 = vmatprep.subr.bf16.mxu1 %v2481_v51  ;;  %5319 = vrcp.f32 %v2639_v36 }
0x1b88   :  { %v5314_v6 = vpop.eup %5313 }
0x1b89   :  { %v5316_v8 = vpop.eup %5315  ;;  %v2477_v10 = vmul.f32 %v5314_v6, %v5302_v2 }
0x1b8a   :  { %4919 = vmatpush3.bf16.msra.mxu1 %v2481_v51  ;;  %v2633_v11 = vpop.xlane.xlu1 %2632  ;;  %v2476_v16 = vmul.f32 %v5316_v8, %v6198_v23  ;;  %v3090_v23 = vshll.u32 %v6160_v12, 16 }
0x1b8b   :  { %4932 = vmatprep.subr.bf16.mxu1 %v2660_v7  ;;  %v2479_v57 = vpack.c.bf16 %v2477_v10, %v2477_v10  ;;  %5321 = vrcp.f32 %v2633_v11 }
0x1b8c   :  { %v5318_v48 = vpop.eup %5317  ;;  %v3092_v58 = vrot.slane %v3090_v23, 1 }
0x1b8d   :  { %v2475_v15 = vmul.f32 %v5318_v48, %v5304_v33 }
0x1b8e   :  { %v2649_v19 = vpop.permute.xlu1 %2648 }
0x1b8f   :  { %v2478_v21 = vpack.c.bf16 %v2476_v16, %v2475_v15 }
0x1b91   :  { %4920 = vmatprep.mubr.msk.bf16.mxu1 %vm395_vm6, %v2478_v21 }
0x1b92   :  { %4921 = vmatmul.mubr.msk.bf16.vlgmr.msra.gmra.mxu1 %vm395_vm6, %v2479_v57  ;;  %v2730_v54 = vpop.permute.xlu1 %2729 }
0x1b93   :  { %4933 = vmatpush3.bf16.msra.mxu1 %v2660_v7  ;;  %v2740_v0 = vsel %vm334_vm4, %v2730_v54, 0 }
0x1b94   :  { %4934 = vmatprep.subr.bf16.mxu1 %v2649_v19  ;;  %v5320_v46 = vpop.eup %5319 }
0x1b95   :  { %v2645_v39 = vmul.f32 %v5320_v46, %v6204_v24 }
0x1b97   :  { %4935 = vmatpush3.bf16.msra.mxu1 %v2649_v19  ;;  %v2647_v22 = vpack.c.bf16 %v2645_v39, %v2645_v39 }
0x1b98   :  { %v5322_v20 = vpop.eup %5321 }
0x1b99   :  { %v2643_v41 = vmul.f32 %v5322_v20, %v6208_v3  ;;  %v3093_v3 = vor.u32 %v3092_v58, %v3088_v34 }
0x1bb3   :  { %v2636_v56 = vpop.xlane.xlu0 %2635 }
0x1bb4   :  { %5323 = vrcp.f32 %v2636_v56 }
0x1bb7   :  { %v2732_v47 = vpop.permute.xlu0 %2731 }
0x1bb8   :  { %5108 = vmatprep.subr.msk.bf16.mxu1 %vm334_vm4, %v2732_v47  ;;  %v2743_v27 = vsel %vm334_vm4, %v2732_v47, 0 }
0x1bbb   :  { %v2726_v50 = vpop.permute.xlu0 %2725 }
0x1bc1   :  { %v5324_v38 = vpop.eup %5323 }
0x1bc2   :  { %v2644_v40 = vmul.f32 %v5324_v38, %v5312_v26 }
0x1bc4   :  { %v2646_v17 = vpack.c.bf16 %v2644_v40, %v2643_v41 }
0x1bc6   :  { %4936 = vmatprep.mubr.msk.bf16.mxu1 %vm395_vm6, %v2646_v17 }
0x1bc7   :  { %4937 = vmatmul.mubr.msk.bf16.vlgmr.msra.gmra.mxu1 %vm395_vm6, %v2647_v22 }
0x1bc8   :  { %4941 = vmatpush3.bf16.xpose.msra.mxu1 %v2743_v27  ;;  %v2371_v29 = vpop.f32.mrf.mxu1  ;;  %4944 = vmatprep.mubr.msk.bf16.mxu1 %vm334_vm4, %v2726_v50 }
0x1bc9   :  { %v2372_v31 = vadd.f32 %v6141_v63, %v2371_v29  ;;  %5109 = vmatprep.subr.msk.bf16.mxu1 %vm334_vm4, %v2730_v54  ;;  %v2728_v63 = vpop.permute.xlu1 %2727 }
0x1bca   :  { %v4906_v2 = vpop.f32.mrf.mxu1 }
0x1bcb   :  { %v6243_v32 = vpack.c.bf16 %v2372_v31, %v2372_v31 }
0x1bcc   :  { %v2374_v33 = vpop.f32.mrf.mxu1 }
0x1bcd   :  { %v3095_v24 = vshll.u32 %v6243_v32, 16 }
0x1bce   :  { %v4907_v43 = vpop.f32.mrf.mxu1 }
0x1bcf   :  { %v3097_v45 = vrot.slane %v3095_v24, 1 }
0x1bd0   :  { %4943 = vmatpush3.bf16.xpose.msra.mxu1 %v2740_v0 }
0x1bd1   :  { %v6249_v52 = vsel %vm1049_vm5, %v3093_v3, %v3097_v45 }
0x1bd7   :  { %4945 = vmatmul.mubr.msk.bf16.vlgmr.msra.gmra.mxu1 %vm334_vm4, %v2728_v63 }
0x1c52   :  { %v4922_v53 = vpop.f32.mrf.mxu1 }
0x1c53   :  { %2544 = vst.msk [vmem:[#allocation2 + $0x10] sm:$0x1] %vm499_vm9, %v4922_v53 }
0x1c54   :  { %v2528_v55 = vpop.f32.mrf.mxu1 }
0x1c55   :  { %2542 = vst.msk [vmem:[#allocation2] sm:$0xff] %vm334_vm4, %v2528_v55 }
0x1c56   :  { %v4923_v12 = vpop.f32.mrf.mxu1 }
0x1c58   :  { %v2531_v60 = vpop.f32.mrf.mxu1 }
0x1c59   :  { %2543 = vst.msk [vmem:[#allocation2 + $0x8] sm:$0xff] %vm334_vm4, %v2531_v60 }
0x1c87   :  { %v6255_v61 = vpop.f32.mrf.mxu1 }
0x1c89   :  { %v6257_v35 = vpop.f32.mrf.mxu1 }
0x1c8b   :  { %v4939_v26 = vpop.f32.mrf.mxu1 }
0x1c8d   :  { %v6259_v49 = vpop.f32.mrf.mxu1 }
0x1c97   :  { %v4946_v51 = vpop.f32.mrf.mxu1 }
0x1c98   :  { %v2799_v4 = vsel %vm402_vm7, %v4946_v51, -inf }
0x1c99   :  { %v2779_v44 = vpop.f32.mrf.mxu1 }
0x1c9a   :  { %v2793_v37 = vsel %vm395_vm6, %v2779_v44, -inf }
0x1c9b   :  { %2794 = vmax.xlane.f32.xlu0 %v2793_v37  ;;  %v4947_v14 = vpop.f32.mrf.mxu1 }
0x1c9d   :  { %v2782_v9 = vpop.f32.mrf.mxu1 }
0x1c9e   :  { %v2796_v5 = vsel %vm395_vm6, %v2782_v9, -inf }
0x1c9f   :  { %2800 = vmax.xlane.f32.xlu0 %v2799_v4  ;;  %2797 = vmax.xlane.f32.xlu1 %v2796_v5 }
0x1d24   :  { %v2795_v36 = vpop.xlane.xlu0 %2794 }
0x1d25   :  { %v2802_v6 = vsub.f32 %v2779_v44, %v2795_v36 }
0x1d27   :  { %v2805_v7 = vmul.f32 1.442695, %v2802_v6 }
0x1d28   :  { %v2801_v8 = vpop.xlane.xlu0 %2800  ;;  %v2798_v48 = vpop.xlane.xlu1 %2797 }
0x1d29   :  { %5325 = vpow2.f32 %v2805_v7  ;;  %v2804_v10 = vsub.f32 %v4946_v51, %v2801_v8  ;;  %v2803_v11 = vsub.f32 %v2782_v9, %v2798_v48 }
0x1d2b   :  { %v2809_v15 = vmul.f32 1.442695, %v2804_v10  ;;  %v2807_v16 = vmul.f32 1.442695, %v2803_v11 }
0x1d2d   :  { %5327 = vpow2.f32 %v2809_v15 }
0x1d2e   :  { %5329 = vpow2.f32 %v2807_v16 }
0x1d36   :  { %v5326_v21 = vpop.eup %5325 }
0x1d37   :  { %v2811_v57 = vsel %vm395_vm6, %v5326_v21, 0.0 }
0x1d38   :  { %2812 = vadd.xlane.f32.xlu0 %v2811_v57 }
0x1d3a   :  { %v5328_v19 = vpop.eup %5327 }
0x1d3b   :  { %v5330_v56 = vpop.eup %5329  ;;  %v2817_v47 = vsel %vm402_vm7, %v5328_v19, 0.0 }
0x1d3c   :  { %2818 = vadd.xlane.f32.xlu1 %v2817_v47  ;;  %v2814_v46 = vsel %vm395_vm6, %v5330_v56, 0.0 }
0x1d3d   :  { %2815 = vadd.xlane.f32.xlu0 %v2814_v46 }
0x1d4d   :  { %2828 = vrot.lane.b32.xlu1 %v6145_v59, %s5459_s18 }
0x1d51   :  { %2911 = vrot.lane.b32.xlu1 %v6153_v18, %s5460_s19 }
0x1d53   :  { %2830 = vrot.lane.b32.xlu0 %v6153_v18, %s5459_s18 }
0x1d55   :  { %2909 = vrot.lane.b32.xlu1 %v6145_v59, %s5460_s19 }
0x1d57   :  { %2905 = vrot.lane.b32.xlu0 %v6145_v59, %s5461_s0 }
0x1d59   :  { %2907 = vrot.lane.b32.xlu1 %v6153_v18, %s5461_s0 }
0x1dc1   :  { %v2813_v20 = vpop.xlane.xlu0 %2812 }
0x1dc2   :  { %5331 = vrcp.f32 %v2813_v20 }
0x1dc5   :  { %v2819_v38 = vpop.xlane.xlu1 %2818 }
0x1dc6   :  { %v2816_v39 = vpop.xlane.xlu0 %2815  ;;  %5333 = vrcp.f32 %v2819_v38 }
0x1dc7   :  { %5335 = vrcp.f32 %v2816_v39 }
0x1dc9   :  { %v2829_v17 = vpop.permute.xlu1 %2828 }
0x1dca   :  { %v2831_v41 = vpop.permute.xlu0 %2830 }
0x1dcb   :  { %v2840_v40 = vand.u32 %v2831_v41, %v5684_v13 }
0x1dcd   :  { %4948 = vmatprep.subr.bf16.mxu0 %v2840_v40  ;;  %v2912_v23 = vpop.permute.xlu1 %2911 }
0x1dce   :  { %4949 = vmatpush3.bf16.msra.mxu0 %v2840_v40  ;;  %v2906_v33 = vpop.permute.xlu0 %2905  ;;  %v2923_v34 = vsel %vm334_vm4, %v2912_v23, 0 }
0x1dcf   :  { %4950 = vmatprep.subr.bf16.mxu0 %v2829_v17  ;;  %v5332_v22 = vpop.eup %5331 }
0x1dd0   :  { %v2823_v29 = vmul.f32 %v5332_v22, %v5326_v21 }
0x1dd1   :  { %v2910_v24 = vpop.permute.xlu1 %2909 }
0x1dd2   :  { %4951 = vmatpush3.bf16.msra.mxu0 %v2829_v17  ;;  %v2920_v43 = vsel %vm334_vm4, %v2910_v24, 0 }
0x1dd3   :  { %v5334_v50 = vpop.eup %5333  ;;  %5110 = vmatprep.subr.msk.bf16.mxu0 %vm334_vm4, %v2912_v23 }
0x1dd4   :  { %v5336_v27 = vpop.eup %5335  ;;  %v2825_v54 = vmul.f32 %v5334_v50, %v5328_v19  ;;  %v6303_v19 = vshrl.u32 %v6243_v32, 16 }
0x1dd5   :  { %v2824_v31 = vmul.f32 %v5336_v27, %v5330_v56  ;;  %v2908_v3 = vpop.permute.xlu1 %2907 }
0x1dd6   :  { %v2827_v2 = vpack.c.bf16 %v2825_v54, %v2825_v54 }
0x1dd7   :  { %v2826_v58 = vpack.c.bf16 %v2824_v31, %v2823_v29 }
0x1dd9   :  { %4952 = vmatprep.mubr.msk.bf16.mxu0 %vm395_vm6, %v2826_v58 }
0x1dda   :  { %4953 = vmatmul.mubr.msk.bf16.vlgmr.msra.gmra.mxu0 %vm395_vm6, %v2827_v2 }
0x1ddb   :  { %4957 = vmatpush3.bf16.xpose.msra.mxu0 %v2923_v34  ;;  %4960 = vmatprep.mubr.msk.bf16.mxu0 %vm334_vm4, %v2906_v33 }
0x1ddc   :  { %5111 = vmatprep.subr.msk.bf16.mxu0 %vm334_vm4, %v2910_v24 }
0x1de3   :  { %4959 = vmatpush3.bf16.xpose.msra.mxu0 %v2920_v43 }
0x1dea   :  { %4961 = vmatmul.mubr.msk.bf16.vlgmr.msra.gmra.mxu0 %vm334_vm4, %v2908_v3 }
0x1e9a   :  { %v6288_v45 = vpop.f32.mrf.mxu0 }
0x1e9c   :  { %v6290_v0 = vpop.f32.mrf.mxu0 }
0x1e9e   :  { %v4955_v63 = vpop.f32.mrf.mxu0 }
0x1ea0   :  { %v6292_v53 = vpop.f32.mrf.mxu0 }
0x1eaa   :  { %v4962_v55 = vpop.f32.mrf.mxu0 }
0x1eab   :  { %v2979_v44 = vsel %vm402_vm7, %v4962_v55, -inf }
0x1eac   :  { %v2959_v12 = vpop.f32.mrf.mxu0 }
0x1ead   :  { %v2973_v60 = vsel %vm395_vm6, %v2959_v12, -inf }
0x1eae   :  { %2974 = vmax.xlane.f32.xlu0 %v2973_v60  ;;  %v4963_v26 = vpop.f32.mrf.mxu0 }
0x1eb0   :  { %v2962_v51 = vpop.f32.mrf.mxu0 }
0x1eb1   :  { %v2976_v37 = vsel %vm395_vm6, %v2962_v51, -inf }
0x1eb2   :  { %2980 = vmax.xlane.f32.xlu0 %v2979_v44  ;;  %2977 = vmax.xlane.f32.xlu1 %v2976_v37 }
0x1f37   :  { %v2975_v14 = vpop.xlane.xlu0 %2974 }
0x1f38   :  { %v2982_v9 = vsub.f32 %v2959_v12, %v2975_v14 }
0x1f3a   :  { %v2985_v4 = vmul.f32 1.442695, %v2982_v9 }
0x1f3b   :  { %v2981_v5 = vpop.xlane.xlu0 %2980  ;;  %v2978_v36 = vpop.xlane.xlu1 %2977 }
0x1f3c   :  { %5337 = vpow2.f32 %v2985_v4  ;;  %v2984_v6 = vsub.f32 %v4962_v55, %v2981_v5  ;;  %v2983_v7 = vsub.f32 %v2962_v51, %v2978_v36 }
0x1f3e   :  { %v2989_v8 = vmul.f32 1.442695, %v2984_v6  ;;  %v2987_v48 = vmul.f32 1.442695, %v2983_v7 }
0x1f40   :  { %5339 = vpow2.f32 %v2989_v8 }
0x1f41   :  { %5341 = vpow2.f32 %v2987_v48 }
0x1f49   :  { %v5338_v10 = vpop.eup %5337 }
0x1f4a   :  { %v2991_v11 = vsel %vm395_vm6, %v5338_v10, 0.0 }
0x1f4b   :  { %2992 = vadd.xlane.f32.xlu0 %v2991_v11 }
0x1f4d   :  { %v5340_v15 = vpop.eup %5339 }
0x1f4e   :  { %v5342_v16 = vpop.eup %5341  ;;  %v2997_v21 = vsel %vm402_vm7, %v5340_v15, 0.0 }
0x1f4f   :  { %2998 = vadd.xlane.f32.xlu1 %v2997_v21  ;;  %v2994_v57 = vsel %vm395_vm6, %v5342_v16, 0.0 }
0x1f50   :  { %2995 = vadd.xlane.f32.xlu0 %v2994_v57 }
0x1f60   :  { %3008 = vrot.lane.b32.xlu1 %v6145_v59, %s5462_s20 }
0x1f64   :  { %3103 = vrot.lane.b32.xlu1 %v6303_v19, %s5451_s12 }
0x1f66   :  { %3010 = vrot.lane.b32.xlu0 %v6153_v18, %s5462_s20 }
0x1f68   :  { %3101 = vrot.lane.b32.xlu1 %v6249_v52, %s5451_s12 }
0x1fd4   :  { %v2993_v56 = vpop.xlane.xlu0 %2992 }
0x1fd5   :  { %5343 = vrcp.f32 %v2993_v56 }
0x1fd8   :  { %v2999_v47 = vpop.xlane.xlu1 %2998 }
0x1fd9   :  { %v2996_v46 = vpop.xlane.xlu0 %2995  ;;  %5345 = vrcp.f32 %v2999_v47 }
0x1fda   :  { %5347 = vrcp.f32 %v2996_v46 }
0x1fdc   :  { %v3009_v32 = vpop.permute.xlu1 %3008 }
0x1fdd   :  { %v3011_v20 = vpop.permute.xlu0 %3010 }
0x1fde   :  { %v3020_v59 = vand.u32 %v3011_v20, %v5684_v13 }
0x1fe0   :  { %4964 = vmatprep.subr.bf16.mxu1 %v3020_v59  ;;  %v3104_v39 = vpop.permute.xlu1 %3103 }
0x1fe1   :  { %4965 = vmatpush3.bf16.msra.mxu1 %v3020_v59  ;;  %v3115_v27 = vsel %vm334_vm4, %v3104_v39, 0 }
0x1fe2   :  { %4966 = vmatprep.subr.bf16.mxu1 %v3009_v32  ;;  %v5344_v38 = vpop.eup %5343 }
0x1fe3   :  { %v3003_v17 = vmul.f32 %v5344_v38, %v5338_v10 }
0x1fe4   :  { %v3102_v54 = vpop.permute.xlu1 %3101 }
0x1fe5   :  { %4967 = vmatpush3.bf16.msra.mxu1 %v3009_v32  ;;  %v3112_v29 = vsel %vm334_vm4, %v3102_v54, 0 }
0x1fe6   :  { %v5346_v18 = vpop.eup %5345  ;;  %5112 = vmatprep.subr.msk.bf16.mxu1 %vm334_vm4, %v3104_v39 }
0x1fe7   :  { %v5348_v41 = vpop.eup %5347  ;;  %v3005_v40 = vmul.f32 %v5346_v18, %v5340_v15 }
0x1fe8   :  { %v3004_v22 = vmul.f32 %v5348_v41, %v5342_v16 }
0x1fe9   :  { %v3007_v23 = vpack.c.bf16 %v3005_v40, %v3005_v40 }
0x1fea   :  { %v3006_v50 = vpack.c.bf16 %v3004_v22, %v3003_v17 }
0x1fec   :  { %4968 = vmatprep.mubr.msk.bf16.mxu1 %vm395_vm6, %v3006_v50 }
0x1fed   :  { %4969 = vmatmul.mubr.msk.bf16.vlgmr.msra.gmra.mxu1 %vm395_vm6, %v3007_v23 }
0x1fee   :  { %4973 = vmatpush3.bf16.xpose.msra.mxu1 %v3115_v27  ;;  %4976 = vmatprep.mubr.msk.bf16.mxu1 %vm334_vm4, %v6249_v52 }
0x1fef   :  { %5113 = vmatprep.subr.msk.bf16.mxu1 %vm334_vm4, %v3102_v54 }
0x1ff6   :  { %4975 = vmatpush3.bf16.xpose.msra.mxu1 %v3112_v29 }
0x1ffd   :  { %4977 = vmatmul.mubr.msk.bf16.vlgmr.msra.gmra.mxu1 %vm334_vm4, %v6303_v19 }
0x20ad   :  { %v6322_v31 = vpop.f32.mrf.mxu1 }
0x20af   :  { %v6324_v2 = vpop.f32.mrf.mxu1 }
0x20b1   :  { %v4971_v58 = vpop.f32.mrf.mxu1 }
0x20b3   :  { %v6326_v33 = vpop.f32.mrf.mxu1 }
0x20bd   :  { %v4978_v34 = vpop.f32.mrf.mxu1 }
0x20be   :  { %v3171_v55 = vsel %vm402_vm7, %v4978_v34, -inf }
0x20bf   :  { %v3151_v24 = vpop.f32.mrf.mxu1 }
0x20c0   :  { %v3165_v43 = vsel %vm395_vm6, %v3151_v24, -inf }
0x20c1   :  { %3166 = vmax.xlane.f32.xlu0 %v3165_v43  ;;  %v4979_v3 = vpop.f32.mrf.mxu1 }
0x20c3   :  { %v3154_v63 = vpop.f32.mrf.mxu1 }
0x20c4   :  { %v3168_v12 = vsel %vm395_vm6, %v3154_v63, -inf }
0x20c5   :  { %3172 = vmax.xlane.f32.xlu0 %v3171_v55  ;;  %3169 = vmax.xlane.f32.xlu1 %v3168_v12 }
0x214a   :  { %v3167_v60 = vpop.xlane.xlu0 %3166 }
0x214b   :  { %v3174_v26 = vsub.f32 %v3151_v24, %v3167_v60 }
0x214d   :  { %v3177_v51 = vmul.f32 1.442695, %v3174_v26 }
0x214e   :  { %v3173_v44 = vpop.xlane.xlu0 %3172  ;;  %v3170_v37 = vpop.xlane.xlu1 %3169 }
0x214f   :  { %5349 = vpow2.f32 %v3177_v51  ;;  %v3176_v14 = vsub.f32 %v4978_v34, %v3173_v44  ;;  %v3175_v9 = vsub.f32 %v3154_v63, %v3170_v37 }
0x2151   :  { %v3181_v4 = vmul.f32 1.442695, %v3176_v14  ;;  %v3179_v5 = vmul.f32 1.442695, %v3175_v9 }
0x2153   :  { %5351 = vpow2.f32 %v3181_v4 }
0x2154   :  { %5353 = vpow2.f32 %v3179_v5 }
0x215c   :  { %v5350_v36 = vpop.eup %5349 }
0x215d   :  { %v3183_v6 = vsel %vm395_vm6, %v5350_v36, 0.0 }
0x215e   :  { %3184 = vadd.xlane.f32.xlu0 %v3183_v6 }
0x2160   :  { %v5352_v7 = vpop.eup %5351 }
0x2161   :  { %v5354_v8 = vpop.eup %5353  ;;  %v3189_v48 = vsel %vm402_vm7, %v5352_v7, 0.0 }
0x2162   :  { %3190 = vadd.xlane.f32.xlu1 %v3189_v48  ;;  %v3186_v10 = vsel %vm395_vm6, %v5354_v8, 0.0 }
0x2163   :  { %3187 = vadd.xlane.f32.xlu0 %v3186_v10 }
0x2173   :  { %3200 = vrot.lane.b32.xlu1 %v6249_v52, %s5454_s2 }
0x2177   :  { %3271 = vrot.lane.b32.xlu1 %v6303_v19, %s5452_s13 }
0x2179   :  { %3202 = vrot.lane.b32.xlu0 %v6303_v19, %s5454_s2 }
0x217b   :  { %3269 = vrot.lane.b32.xlu1 %v6249_v52, %s5452_s13 }
0x217d   :  { %3265 = vrot.lane.b32.xlu0 %v6249_v52, %s5453_s14 }
0x217f   :  { %3267 = vrot.lane.b32.xlu1 %v6303_v19, %s5453_s14 }
0x21e7   :  { %v3185_v11 = vpop.xlane.xlu0 %3184 }
0x21e8   :  { %5355 = vrcp.f32 %v3185_v11 }
0x21eb   :  { %v3191_v15 = vpop.xlane.xlu1 %3190 }
0x21ec   :  { %v3188_v16 = vpop.xlane.xlu0 %3187  ;;  %5357 = vrcp.f32 %v3191_v15 }
0x21ed   :  { %5359 = vrcp.f32 %v3188_v16 }
0x21ef   :  { %v3201_v56 = vpop.permute.xlu1 %3200 }
0x21f0   :  { %v3203_v21 = vpop.permute.xlu0 %3202 }
0x21f1   :  { %v3212_v57 = vand.u32 %v3203_v21, %v5684_v13 }
0x21f3   :  { %4980 = vmatprep.subr.bf16.mxu0 %v3212_v57  ;;  %v3272_v46 = vpop.permute.xlu1 %3271 }
0x21f4   :  { %4981 = vmatpush3.bf16.msra.mxu0 %v3212_v57  ;;  %v3266_v40 = vpop.permute.xlu0 %3265  ;;  %v3283_v17 = vsel %vm334_vm4, %v3272_v46, 0 }
0x21f5   :  { %4982 = vmatprep.subr.bf16.mxu0 %v3201_v56  ;;  %v5356_v47 = vpop.eup %5355 }
0x21f6   :  { %v3195_v38 = vmul.f32 %v5356_v47, %v5350_v36 }
0x21f7   :  { %v3270_v22 = vpop.permute.xlu1 %3269 }
0x21f8   :  { %4983 = vmatpush3.bf16.msra.mxu0 %v3201_v56  ;;  %v3280_v23 = vsel %vm334_vm4, %v3270_v22, 0 }
0x21f9   :  { %v5358_v20 = vpop.eup %5357  ;;  %5114 = vmatprep.subr.msk.bf16.mxu0 %vm334_vm4, %v3272_v46 }
0x21fa   :  { %v5360_v59 = vpop.eup %5359  ;;  %v3197_v32 = vmul.f32 %v5358_v20, %v5352_v7 }
0x21fb   :  { %v3196_v39 = vmul.f32 %v5360_v59, %v5354_v8  ;;  %v3268_v50 = vpop.permute.xlu1 %3267 }
0x21fc   :  { %v3199_v18 = vpack.c.bf16 %v3197_v32, %v3197_v32 }
0x21fd   :  { %v3198_v41 = vpack.c.bf16 %v3196_v39, %v3195_v38 }
0x21ff   :  { %4984 = vmatprep.mubr.msk.bf16.mxu0 %vm395_vm6, %v3198_v41 }
0x2200   :  { %4985 = vmatmul.mubr.msk.bf16.vlgmr.msra.gmra.mxu0 %vm395_vm6, %v3199_v18 }
0x2201   :  { %4989 = vmatpush3.bf16.xpose.msra.mxu0 %v3283_v17  ;;  %4992 = vmatprep.mubr.msk.bf16.mxu0 %vm334_vm4, %v3266_v40 }
0x2202   :  { %5115 = vmatprep.subr.msk.bf16.mxu0 %vm334_vm4, %v3270_v22 }
0x2209   :  { %4991 = vmatpush3.bf16.xpose.msra.mxu0 %v3280_v23 }
0x2210   :  { %4993 = vmatmul.mubr.msk.bf16.vlgmr.msra.gmra.mxu0 %vm334_vm4, %v3268_v50 }
0x22c0   :  { %v4986_v27 = vpop.f32.mrf.mxu0 }
0x22c1   :  { %3264 = vst.msk [vmem:[#allocation2 + $0x21] sm:$0x1] %vm499_vm9, %v4986_v27 }
0x22c2   :  { %v3248_v54 = vpop.f32.mrf.mxu0 }
0x22c3   :  { %3262 = vst.msk [vmem:[#allocation2 + $0x11] sm:$0xff] %vm334_vm4, %v3248_v54 }
0x22c4   :  { %v4987_v29 = vpop.f32.mrf.mxu0 }
0x22c6   :  { %v3251_v58 = vpop.f32.mrf.mxu0 }
0x22c7   :  { %3263 = vst.msk [vmem:[#allocation2 + $0x19] sm:$0xff] %vm334_vm4, %v3251_v58 }
0x22d0   :  { %v4994_v34 = vpop.f32.mrf.mxu0 }
0x22d1   :  { %v3339_v55 = vsel %vm402_vm7, %v4994_v34, -inf }
0x22d2   :  { %v3319_v24 = vpop.f32.mrf.mxu0 }
0x22d3   :  { %v3333_v43 = vsel %vm395_vm6, %v3319_v24, -inf }
0x22d4   :  { %3334 = vmax.xlane.f32.xlu0 %v3333_v43  ;;  %v4995_v3 = vpop.f32.mrf.mxu0 }
0x22d6   :  { %v3322_v63 = vpop.f32.mrf.mxu0 }
0x22d7   :  { %v3336_v12 = vsel %vm395_vm6, %v3322_v63, -inf }
0x22d8   :  { %3340 = vmax.xlane.f32.xlu0 %v3339_v55  ;;  %3337 = vmax.xlane.f32.xlu1 %v3336_v12 }
0x235d   :  { %v3335_v60 = vpop.xlane.xlu0 %3334 }
0x235e   :  { %v3342_v26 = vsub.f32 %v3319_v24, %v3335_v60 }
0x2360   :  { %v3345_v51 = vmul.f32 1.442695, %v3342_v26 }
0x2361   :  { %v3341_v44 = vpop.xlane.xlu0 %3340  ;;  %v3338_v37 = vpop.xlane.xlu1 %3337 }
0x2362   :  { %5361 = vpow2.f32 %v3345_v51  ;;  %v3344_v14 = vsub.f32 %v4994_v34, %v3341_v44  ;;  %v3343_v9 = vsub.f32 %v3322_v63, %v3338_v37 }
0x2364   :  { %v3349_v4 = vmul.f32 1.442695, %v3344_v14  ;;  %v3347_v5 = vmul.f32 1.442695, %v3343_v9 }
0x2366   :  { %5363 = vpow2.f32 %v3349_v4 }
0x2367   :  { %5365 = vpow2.f32 %v3347_v5 }
0x236f   :  { %v5362_v36 = vpop.eup %5361 }
0x2370   :  { %v3351_v6 = vsel %vm395_vm6, %v5362_v36, 0.0 }
0x2371   :  { %3352 = vadd.xlane.f32.xlu0 %v3351_v6 }
0x2373   :  { %v5364_v7 = vpop.eup %5363 }
0x2374   :  { %v5366_v8 = vpop.eup %5365  ;;  %v3357_v48 = vsel %vm402_vm7, %v5364_v7, 0.0 }
0x2375   :  { %3358 = vadd.xlane.f32.xlu1 %v3357_v48  ;;  %v3354_v10 = vsel %vm395_vm6, %v5366_v8, 0.0 }
0x2376   :  { %3355 = vadd.xlane.f32.xlu0 %v3354_v10 }
0x2386   :  { %3368 = vrot.lane.b32.xlu1 %v6249_v52, %s5455_s15 }
0x238a   :  { %3451 = vrot.lane.b32.xlu1 %v6303_v19, %s5456_s16 }
0x238c   :  { %3370 = vrot.lane.b32.xlu0 %v6303_v19, %s5455_s15 }
0x238e   :  { %3449 = vrot.lane.b32.xlu1 %v6249_v52, %s5456_s16 }
0x2390   :  { %3445 = vrot.lane.b32.xlu0 %v6249_v52, %s5457_s17 }
0x2392   :  { %3447 = vrot.lane.b32.xlu1 %v6303_v19, %s5457_s17 }
0x23fa   :  { %v3353_v11 = vpop.xlane.xlu0 %3352 }
0x23fb   :  { %5367 = vrcp.f32 %v3353_v11 }
0x23fe   :  { %v3359_v15 = vpop.xlane.xlu1 %3358 }
0x23ff   :  { %v3356_v16 = vpop.xlane.xlu0 %3355  ;;  %5369 = vrcp.f32 %v3359_v15 }
0x2400   :  { %5371 = vrcp.f32 %v3356_v16 }
0x2402   :  { %v3369_v56 = vpop.permute.xlu1 %3368 }
0x2403   :  { %v3371_v21 = vpop.permute.xlu0 %3370 }
0x2404   :  { %v3380_v57 = vand.u32 %v3371_v21, %v5684_v13 }
0x2406   :  { %4996 = vmatprep.subr.bf16.mxu1 %v3380_v57  ;;  %v3452_v46 = vpop.permute.xlu1 %3451 }
0x2407   :  { %4997 = vmatpush3.bf16.msra.mxu1 %v3380_v57  ;;  %v3446_v40 = vpop.permute.xlu0 %3445  ;;  %v3463_v17 = vsel %vm334_vm4, %v3452_v46, 0 }
0x2408   :  { %4998 = vmatprep.subr.bf16.mxu1 %v3369_v56  ;;  %v5368_v47 = vpop.eup %5367 }
0x2409   :  { %v3363_v38 = vmul.f32 %v5368_v47, %v5362_v36 }
0x240a   :  { %v3450_v22 = vpop.permute.xlu1 %3449 }
0x240b   :  { %4999 = vmatpush3.bf16.msra.mxu1 %v3369_v56  ;;  %v3460_v23 = vsel %vm334_vm4, %v3450_v22, 0 }
0x240c   :  { %v5370_v20 = vpop.eup %5369  ;;  %5116 = vmatprep.subr.msk.bf16.mxu1 %vm334_vm4, %v3452_v46 }
0x240d   :  { %v5372_v59 = vpop.eup %5371  ;;  %v3365_v32 = vmul.f32 %v5370_v20, %v5364_v7 }
0x240e   :  { %v3364_v39 = vmul.f32 %v5372_v59, %v5366_v8  ;;  %v3448_v50 = vpop.permute.xlu1 %3447 }
0x240f   :  { %v3367_v18 = vpack.c.bf16 %v3365_v32, %v3365_v32 }
0x2410   :  { %v3366_v41 = vpack.c.bf16 %v3364_v39, %v3363_v38 }
0x2412   :  { %5000 = vmatprep.mubr.msk.bf16.mxu1 %vm395_vm6, %v3366_v41 }
0x2413   :  { %5001 = vmatmul.mubr.msk.bf16.vlgmr.msra.gmra.mxu1 %vm395_vm6, %v3367_v18 }
0x2414   :  { %5005 = vmatpush3.bf16.xpose.msra.mxu1 %v3463_v17  ;;  %5008 = vmatprep.mubr.msk.bf16.mxu1 %vm334_vm4, %v3446_v40 }
0x2415   :  { %5117 = vmatprep.subr.msk.bf16.mxu1 %vm334_vm4, %v3450_v22 }
0x241c   :  { %5007 = vmatpush3.bf16.xpose.msra.mxu1 %v3460_v23 }
0x2423   :  { %5009 = vmatmul.mubr.msk.bf16.vlgmr.msra.gmra.mxu1 %vm334_vm4, %v3448_v50 }
0x24d3   :  { %v6385_v27 = vpop.f32.mrf.mxu1 }
0x24d5   :  { %v6387_v54 = vpop.f32.mrf.mxu1 }
0x24d7   :  { %v5003_v29 = vpop.f32.mrf.mxu1 }
0x24d9   :  { %v6389_v58 = vpop.f32.mrf.mxu1 }
0x24e3   :  { %v5010_v34 = vpop.f32.mrf.mxu1 }
0x24e4   :  { %v3519_v55 = vsel %vm402_vm7, %v5010_v34, -inf }
0x24e5   :  { %v3499_v24 = vpop.f32.mrf.mxu1 }
0x24e6   :  { %v3513_v43 = vsel %vm395_vm6, %v3499_v24, -inf }
0x24e7   :  { %3514 = vmax.xlane.f32.xlu0 %v3513_v43  ;;  %v5011_v3 = vpop.f32.mrf.mxu1 }
0x24e9   :  { %v3502_v63 = vpop.f32.mrf.mxu1 }
0x24ea   :  { %v3516_v12 = vsel %vm395_vm6, %v3502_v63, -inf }
0x24eb   :  { %3520 = vmax.xlane.f32.xlu0 %v3519_v55  ;;  %3517 = vmax.xlane.f32.xlu1 %v3516_v12 }
0x2570   :  { %v3515_v60 = vpop.xlane.xlu0 %3514 }
0x2571   :  { %v3522_v26 = vsub.f32 %v3499_v24, %v3515_v60 }
0x2573   :  { %v3525_v51 = vmul.f32 1.442695, %v3522_v26 }
0x2574   :  { %v3521_v44 = vpop.xlane.xlu0 %3520  ;;  %v3518_v37 = vpop.xlane.xlu1 %3517 }
0x2575   :  { %5373 = vpow2.f32 %v3525_v51  ;;  %v3524_v14 = vsub.f32 %v5010_v34, %v3521_v44  ;;  %v3523_v9 = vsub.f32 %v3502_v63, %v3518_v37 }
0x2577   :  { %v3529_v4 = vmul.f32 1.442695, %v3524_v14  ;;  %v3527_v5 = vmul.f32 1.442695, %v3523_v9 }
0x2579   :  { %5375 = vpow2.f32 %v3529_v4 }
0x257a   :  { %5377 = vpow2.f32 %v3527_v5 }
0x2582   :  { %v5374_v36 = vpop.eup %5373 }
0x2583   :  { %v3531_v6 = vsel %vm395_vm6, %v5374_v36, 0.0 }
0x2584   :  { %3532 = vadd.xlane.f32.xlu0 %v3531_v6 }
0x2586   :  { %v5376_v7 = vpop.eup %5375 }
0x2587   :  { %v5378_v8 = vpop.eup %5377  ;;  %v3537_v48 = vsel %vm402_vm7, %v5376_v7, 0.0 }
0x2588   :  { %3538 = vadd.xlane.f32.xlu1 %v3537_v48  ;;  %v3534_v10 = vsel %vm395_vm6, %v5378_v8, 0.0 }
0x2589   :  { %3535 = vadd.xlane.f32.xlu0 %v3534_v10 }
0x2599   :  { %3548 = vrot.lane.b32.xlu1 %v6249_v52, %s5459_s18 }
0x259d   :  { %3631 = vrot.lane.b32.xlu1 %v6303_v19, %s5460_s19 }
0x259f   :  { %3550 = vrot.lane.b32.xlu0 %v6303_v19, %s5459_s18 }
0x25a1   :  { %3629 = vrot.lane.b32.xlu1 %v6249_v52, %s5460_s19 }
0x25a3   :  { %3625 = vrot.lane.b32.xlu0 %v6249_v52, %s5461_s0 }
0x25a5   :  { %3627 = vrot.lane.b32.xlu1 %v6303_v19, %s5461_s0 }
0x260d   :  { %v3533_v11 = vpop.xlane.xlu0 %3532 }
0x260e   :  { %5379 = vrcp.f32 %v3533_v11 }
0x2611   :  { %v3539_v15 = vpop.xlane.xlu1 %3538 }
0x2612   :  { %v3536_v16 = vpop.xlane.xlu0 %3535  ;;  %5381 = vrcp.f32 %v3539_v15 }
0x2613   :  { %5383 = vrcp.f32 %v3536_v16 }
0x2615   :  { %v3549_v56 = vpop.permute.xlu1 %3548 }
0x2616   :  { %v3551_v21 = vpop.permute.xlu0 %3550 }
0x2617   :  { %v3560_v57 = vand.u32 %v3551_v21, %v5684_v13 }
0x2619   :  { %5012 = vmatprep.subr.bf16.mxu0 %v3560_v57  ;;  %v3632_v46 = vpop.permute.xlu1 %3631 }
0x261a   :  { %5013 = vmatpush3.bf16.msra.mxu0 %v3560_v57  ;;  %v3626_v40 = vpop.permute.xlu0 %3625  ;;  %v3643_v17 = vsel %vm334_vm4, %v3632_v46, 0 }
0x261b   :  { %5014 = vmatprep.subr.bf16.mxu0 %v3549_v56  ;;  %v5380_v47 = vpop.eup %5379 }
0x261c   :  { %v3543_v38 = vmul.f32 %v5380_v47, %v5374_v36 }
0x261d   :  { %v3630_v22 = vpop.permute.xlu1 %3629 }
0x261e   :  { %5015 = vmatpush3.bf16.msra.mxu0 %v3549_v56  ;;  %v3640_v23 = vsel %vm334_vm4, %v3630_v22, 0 }
0x261f   :  { %v5382_v20 = vpop.eup %5381  ;;  %5118 = vmatprep.subr.msk.bf16.mxu0 %vm334_vm4, %v3632_v46 }
0x2620   :  { %v5384_v59 = vpop.eup %5383  ;;  %v3545_v32 = vmul.f32 %v5382_v20, %v5376_v7 }
0x2621   :  { %v3544_v39 = vmul.f32 %v5384_v59, %v5378_v8  ;;  %v3628_v50 = vpop.permute.xlu1 %3627  ;;  %v5157_v59 = vld [vmem:[%s6625_s4 + $0x18] sm:$0xff]  }
0x2622   :  { %v3547_v18 = vpack.c.bf16 %v3545_v32, %v3545_v32 }
0x2623   :  { %v3546_v41 = vpack.c.bf16 %v3544_v39, %v3543_v38  ;;  %v5158_v39 = vld [vmem:[%s6625_s4 + $0x10] sm:$0xff]  }
0x2625   :  { %5016 = vmatprep.mubr.msk.bf16.mxu0 %vm395_vm6, %v3546_v41 }
0x2626   :  { %5017 = vmatmul.mubr.msk.bf16.vlgmr.msra.gmra.mxu0 %vm395_vm6, %v3547_v18 }
0x2627   :  { %5021 = vmatpush3.bf16.xpose.msra.mxu0 %v3643_v17  ;;  %5024 = vmatprep.mubr.msk.bf16.mxu0 %vm334_vm4, %v3626_v40 }
0x2628   :  { %5119 = vmatprep.subr.msk.bf16.mxu0 %vm334_vm4, %v3630_v22 }
0x262f   :  { %5023 = vmatpush3.bf16.xpose.msra.mxu0 %v3640_v23 }
0x2630   :  { %5052 = vmatprep.subr.bf16.mxu0 %v5449_v1 }
0x2636   :  { %5025 = vmatmul.mubr.msk.bf16.vlgmr.msra.gmra.mxu0 %vm334_vm4, %v3628_v50 }
0x2637   :  { %5056 = vmatprep.mubr.msk.bf16.mxu0 %vm5450_vm0, %v5449_v1 }
0x26e6   :  { %v6421_v29 = vpop.f32.mrf.mxu0 }
0x26e8   :  { %v3596_v34 = vpop.f32.mrf.mxu0 }
0x26ea   :  { %v5019_v24 = vpop.f32.mrf.mxu0 }
0x26ec   :  { %v3599_v43 = vpop.f32.mrf.mxu0 }
0x26f6   :  { %v5026_v3 = vpop.f32.mrf.mxu0 }
0x26f7   :  { %v3699_v26 = vsel %vm402_vm7, %v5026_v3, -inf }
0x26f8   :  { %v3679_v63 = vpop.f32.mrf.mxu0 }
0x26f9   :  { %v3693_v55 = vsel %vm395_vm6, %v3679_v63, -inf }
0x26fa   :  { %3694 = vmax.xlane.f32.xlu0 %v3693_v55  ;;  %v5027_v12 = vpop.f32.mrf.mxu0 }
0x26fc   :  { %v3682_v60 = vpop.f32.mrf.mxu0 }
0x26fd   :  { %v3696_v51 = vsel %vm395_vm6, %v3682_v60, -inf }
0x26fe   :  { %3700 = vmax.xlane.f32.xlu0 %v3699_v26  ;;  %3697 = vmax.xlane.f32.xlu1 %v3696_v51 }
0x2783   :  { %v3695_v44 = vpop.xlane.xlu0 %3694 }
0x2784   :  { %v3702_v37 = vsub.f32 %v3679_v63, %v3695_v44  ;;  %v4469_v44 = vld [vmem:[%s6628_s7 + $0xb] ss:$0 sm:$0xff] }
0x2786   :  { %v3705_v14 = vmul.f32 1.442695, %v3702_v37 }
0x2787   :  { %v3701_v9 = vpop.xlane.xlu0 %3700  ;;  %v3698_v4 = vpop.xlane.xlu1 %3697 }
0x2788   :  { %5385 = vpow2.f32 %v3705_v14  ;;  %v3704_v5 = vsub.f32 %v5026_v3, %v3701_v9  ;;  %v3703_v36 = vsub.f32 %v3682_v60, %v3698_v4 }
0x278a   :  { %v3709_v6 = vmul.f32 1.442695, %v3704_v5  ;;  %v3707_v7 = vmul.f32 1.442695, %v3703_v36 }
0x278c   :  { %5387 = vpow2.f32 %v3709_v6 }
0x278d   :  { %5389 = vpow2.f32 %v3707_v7 }
0x2795   :  { %v5386_v8 = vpop.eup %5385 }
0x2796   :  { %v3711_v48 = vsel %vm395_vm6, %v5386_v8, 0.0 }
0x2797   :  { %3712 = vadd.xlane.f32.xlu0 %v3711_v48 }
0x2799   :  { %v5388_v10 = vpop.eup %5387 }
0x279a   :  { %v5390_v11 = vpop.eup %5389  ;;  %v3717_v15 = vsel %vm402_vm7, %v5388_v10, 0.0 }
0x279b   :  { %3718 = vadd.xlane.f32.xlu1 %v3717_v15  ;;  %v3714_v16 = vsel %vm395_vm6, %v5390_v11, 0.0 }
0x279c   :  { %3715 = vadd.xlane.f32.xlu0 %v3714_v16 }
0x27ac   :  { %3728 = vrot.lane.b32.xlu1 %v6249_v52, %s5462_s20 }
0x27b0   :  { %2713 = vrot.lane.b32.xlu1 %v6257_v35, %s5463_s21 }
0x27b2   :  { %3730 = vrot.lane.b32.xlu0 %v6303_v19, %s5462_s20 }
0x27b4   :  { %2715 = vrot.lane.b32.xlu1 %v6259_v49, %s5463_s21 }
0x27b6   :  { %2893 = vrot.lane.b32.xlu0 %v6290_v0, %s5464_s22 }
0x27b8   :  { %2895 = vrot.lane.b32.xlu1 %v6292_v53, %s5464_s22 }
0x27ba   :  { %3073 = vrot.lane.b32.xlu0 %v6324_v2, %s5465_s23 }
0x27bc   :  { %3075 = vrot.lane.b32.xlu1 %v6326_v33, %s5465_s23 }
0x27be   :  { %2717 = vrot.lane.b32.xlu0 %v6255_v61, %s5463_s21 }
0x27c0   :  { %3433 = vrot.lane.b32.xlu1 %v6387_v54, %s5463_s21 }
0x27c2   :  { %3435 = vrot.lane.b32.xlu0 %v6389_v58, %s5463_s21 }
0x27c4   :  { %2897 = vrot.lane.b32.xlu1 %v6288_v45, %s5464_s22 }
0x27c6   :  { %3613 = vrot.lane.b32.xlu0 %v3596_v34, %s5464_s22 }
0x27c8   :  { %3615 = vrot.lane.b32.xlu1 %v3599_v43, %s5464_s22 }
0x27ca   :  { %3077 = vrot.lane.b32.xlu0 %v6322_v31, %s5465_s23 }
0x2820   :  { %v3713_v52 = vpop.xlane.xlu0 %3712 }
0x2821   :  { %5391 = vrcp.f32 %v3713_v52 }
0x2824   :  { %v3719_v35 = vpop.xlane.xlu1 %3718 }
0x2825   :  { %v3716_v61 = vpop.xlane.xlu0 %3715  ;;  %5393 = vrcp.f32 %v3719_v35 }
0x2826   :  { %5395 = vrcp.f32 %v3716_v61 }
0x2828   :  { %v3729_v49 = vpop.permute.xlu1 %3728 }
0x2829   :  { %v3731_v0 = vpop.permute.xlu0 %3730 }
0x282a   :  { %v3740_v53 = vand.u32 %v3731_v0, %v5684_v13 }
0x282c   :  { %5028 = vmatprep.subr.bf16.mxu1 %v3740_v53  ;;  %v2714_v19 = vpop.permute.xlu1 %2713 }
0x282d   :  { %5029 = vmatpush3.bf16.msra.mxu1 %v3740_v53  ;;  %v2894_v45 = vpop.permute.xlu0 %2893  ;;  %2722 = vst.msk [vmem:[#allocation2] sm:$0xff] %vm678_vm10, %v2714_v19 }
0x282e   :  { %2902 = vst.msk [vmem:[#allocation2] sm:$0xff] %vm860_vm11, %v2894_v45  ;;  %5030 = vmatprep.subr.bf16.mxu1 %v3729_v49  ;;  %v5392_v2 = vpop.eup %5391 }
0x282f   :  { %v3723_v57 = vmul.f32 %v5392_v2, %v5386_v8 }
0x2830   :  { %v2716_v31 = vpop.permute.xlu1 %2715 }
0x2831   :  { %v3074_v33 = vpop.permute.xlu0 %3073  ;;  %5031 = vmatpush3.bf16.msra.mxu1 %v3729_v49  ;;  %2723 = vst.msk [vmem:[#allocation2 + $0x8] sm:$0xff] %vm678_vm10, %v2716_v31 }
0x2832   :  { %v5394_v54 = vpop.eup %5393  ;;  %3082 = vst.msk [vmem:[#allocation2] sm:$0xff] %vm1042_vm12, %v3074_v33  ;;  %5036 = vmatprep.subr.bf16.mxu1 %v5449_v1 }
0x2833   :  { %v5396_v13 = vpop.eup %5395  ;;  %v3725_v58 = vmul.f32 %v5394_v54, %v5388_v10 }
0x2834   :  { %v2896_v21 = vpop.permute.xlu1 %2895  ;;  %v3724_v56 = vmul.f32 %v5396_v13, %v5390_v11 }
0x2835   :  { %v2718_v47 = vpop.permute.xlu0 %2717  ;;  %2903 = vst.msk [vmem:[#allocation2 + $0x8] sm:$0xff] %vm860_vm11, %v2896_v21  ;;  %v3727_v46 = vpack.c.bf16 %v3725_v58, %v3725_v58 }
0x2836   :  { %2724 = vst.msk [vmem:[#allocation2 + $0x10] sm:$0x1] %vm681_vm13, %v2718_v47  ;;  %v3726_v20 = vpack.c.bf16 %v3724_v56, %v3723_v57 }
0x2838   :  { %5032 = vmatprep.mubr.msk.bf16.mxu1 %vm395_vm6, %v3726_v20  ;;  %v3076_v32 = vpop.permute.xlu1 %3075 }
0x2839   :  { %v3436_v38 = vpop.permute.xlu0 %3435  ;;  %5033 = vmatmul.mubr.msk.bf16.vlgmr.msra.gmra.mxu1 %vm395_vm6, %v3727_v46  ;;  %3083 = vst.msk [vmem:[#allocation2 + $0x8] sm:$0xff] %vm1042_vm12, %v3076_v32  ;;  %v3805_v17 = vld [vmem:[#allocation2] sm:$0xff] }
0x283a   :  { %3443 = vst.msk [vmem:[#allocation2 + $0x19] sm:$0xff] %vm678_vm10, %v3436_v38  ;;  %5037 = vmatpush3.bf16.msra.mxu1 %v5157_v59  ;;  %5040 = vmatprep.mubr.msk.bf16.mxu1 %vm5450_vm0, %v5449_v1  ;;  %v5160_v38 = vld [vmem:[%s6626_s5 + $0x10] sm:$0xff]  }
0x283b   :  { %5038 = vmatprep.subr.bf16.mxu1 %v5449_v1 }
0x283c   :  { %v3434_v18 = vpop.permute.xlu1 %3433 }
0x283d   :  { %v3614_v41 = vpop.permute.xlu0 %3613  ;;  %3442 = vst.msk [vmem:[#allocation2 + $0x11] sm:$0xff] %vm678_vm10, %v3434_v18 }
0x283e   :  { %3622 = vst.msk [vmem:[#allocation2 + $0x11] sm:$0xff] %vm860_vm11, %v3614_v41  ;;  %5039 = vmatpush3.bf16.msra.mxu1 %v5158_v39 }
0x283f   :  { %5068 = vmatprep.subr.bf16.mxu1 %v5449_v1 }
0x2840   :  { %v2898_v40 = vpop.permute.xlu1 %2897  ;;  %v3806_v22 = vld [vmem:[#allocation2 + $0x8] sm:$0xff] }
0x2841   :  { %v3078_v23 = vpop.permute.xlu0 %3077  ;;  %2904 = vst.msk [vmem:[#allocation2 + $0x10] sm:$0x1] %vm863_vm14, %v2898_v40  ;;  %v3810_v50 = vpack.c.bf16 %v3806_v22, %v3805_v17 }
0x2842   :  { %3084 = vst.msk [vmem:[#allocation2 + $0x10] sm:$0x1] %vm1045_vm15, %v3078_v23 }
0x2843   :  { %5041 = vmatmul.mubr.msk.bf16.vlgmr.msra.gmra.mxu1 %vm152_vm2, %v3810_v50 }
0x2844   :  { %v3616_v34 = vpop.permute.xlu1 %3615  ;;  %5044 = vmatprep.mubr.msk.bf16.mxu1 %vm5450_vm0, %v5449_v1 }
0x2845   :  { %3623 = vst.msk [vmem:[#allocation2 + $0x19] sm:$0xff] %vm860_vm11, %v3616_v34 }
0x28f9   :  { %v5034_v24 = vpop.f32.mrf.mxu1 }
0x28fb   :  { %v3776_v43 = vpop.f32.mrf.mxu1 }
0x28fc   :  { %3793 = vrot.lane.b32.xlu1 %v3776_v43, %s5465_s23 }
0x28fd   :  { %v5035_v3 = vpop.f32.mrf.mxu1 }
0x28ff   :  { %v3779_v63 = vpop.f32.mrf.mxu1 }
0x2900   :  { %3437 = vrot.lane.b32.xlu1 %v6385_v27, %s5463_s21  ;;  %3795 = vrot.lane.b32.xlu0 %v3779_v63, %s5465_s23 }
0x2903   :  { %v3873_v55 = vpop.f32.mrf.mxu1 }
0x2904   :  { %3797 = vrot.lane.b32.xlu1 %v5034_v24, %s5465_s23  ;;  %3617 = vrot.lane.b32.xlu0 %v6421_v29, %s5464_s22  ;;  %v3895_v51 = vadd.f32 %v3873_v55, %v6069_v25 }
0x2905   :  { %v5042_v12 = vpop.f32.mrf.mxu1 }
0x2906   :  { %v6498_v37 = vadd.f32 %v4469_v44, %v3895_v51 }
0x2907   :  { %v3876_v60 = vpop.f32.mrf.mxu1 }
0x2908   :  { %v3896_v27 = vadd.f32 %v3876_v60, %v6075_v28  ;;  %v3909_v14 = vsel %vm152_vm2, %v6498_v37, 0.0 }
0x2909   :  { %v5043_v26 = vpop.f32.mrf.mxu1 }
0x290a   :  { %v6503_v9 = vadd.f32 %v4469_v44, %v3896_v27 }
0x290c   :  { %v3912_v29 = vsel %vm152_vm2, %v6503_v9, 0.0 }
0x2923   :  { %3910 = vadd.xlane.f32.xlu0 %v3909_v14 }
0x2928   :  { %3913 = vadd.xlane.f32.xlu1 %v3912_v29 }
0x296e   :  { %v3794_v4 = vpop.permute.xlu1 %3793 }
0x296f   :  { %3802 = vst.msk [vmem:[#allocation2 + $0x11] sm:$0xff] %vm1042_vm12, %v3794_v4 }
0x2972   :  { %v3796_v25 = vpop.permute.xlu0 %3795  ;;  %v3438_v5 = vpop.permute.xlu1 %3437 }
0x2973   :  { %3803 = vst.msk [vmem:[#allocation2 + $0x19] sm:$0xff] %vm1042_vm12, %v3796_v25  ;;  %v4470_v25 = vld [vmem:[%s6628_s7 + $0xc] ss:$0 sm:$0xff] }
0x2974   :  { %3444 = vst.msk [vmem:[#allocation2 + $0x21] sm:$0x1] %vm681_vm13, %v3438_v5 }
0x2976   :  { %v3618_v28 = vpop.permute.xlu0 %3617  ;;  %v3798_v36 = vpop.permute.xlu1 %3797  ;;  %v3807_v6 = vld [vmem:[#allocation2 + $0x10] sm:$0xff] }
0x2977   :  { %3624 = vst.msk [vmem:[#allocation2 + $0x21] sm:$0x1] %vm863_vm14, %v3618_v28 }
0x2978   :  { %3804 = vst.msk [vmem:[#allocation2 + $0x21] sm:$0x1] %vm1045_vm15, %v3798_v36 }
0x297a   :  { %v3808_v7 = vld [vmem:[#allocation2 + $0x18] sm:$0xff] }
0x297b   :  { %v3811_v8 = vpack.c.bf16 %v3808_v7, %v3807_v6  ;;  %v4471_v6 = vld [vmem:[%s6628_s7 + $0xd] ss:$0 sm:$0xff] }
0x297d   :  { %5045 = vmatmul.mubr.msk.bf16.gmra.mxu1 %vm152_vm2, %v3811_v8 }
0x297e   :  { %5048 = vmatprep.mubr.msk.bf16.mxu1 %vm5450_vm0, %v5449_v1 }
0x297f   :  { %v3809_v48 = vld [vmem:[#allocation2 + $0x20] sm:$0x3] }
0x2980   :  { %v3812_v10 = vpack.c.bf16 %v3809_v48, %v3809_v48 }
0x2985   :  { %5049 = vmatmul.mubr.msk.bf16.gmra.mxu1 %vm152_vm2, %v3812_v10 }
0x2986   :  { %5076 = vmatprep.mubr.msk.bf16.mxu1 %vm5450_vm0, %v5449_v1 }
0x29ac   :  { %v3911_v11 = vpop.xlane.xlu0 %3910 }
0x29ad   :  { %v3924_v15 = vmul.f32 0.03125, %v3911_v11  ;;  %v5161_v11 = vld [vmem:[%s6627_s6 + $0x38] sm:$0xff]  }
0x29ae   :  { %5069 = vmatpush3.bf16.msra.mxu1 %v5161_v11 }
0x29af   :  { %v3929_v16 = vsub.f32 %v6498_v37, %v3924_v15  ;;  %5070 = vmatprep.subr.bf16.mxu1 %v5449_v1  ;;  %v5162_v15 = vld [vmem:[%s6627_s6 + $0x30] sm:$0xff]  }
0x29b1   :  { %v3934_v52 = vmul.f32 %v3929_v16, %v3929_v16  ;;  %v3914_v0 = vpop.xlane.xlu1 %3913 }
0x29b2   :  { %v3925_v31 = vmul.f32 0.03125, %v3914_v0  ;;  %5071 = vmatpush3.bf16.msra.mxu1 %v5162_v15 }
0x29b3   :  { %v3939_v35 = vsel %vm152_vm2, %v3934_v52, 0.0  ;;  %5072 = vmatprep.subr.bf16.mxu1 %v5449_v1  ;;  %v5164_v52 = vld [vmem:[%s6627_s6 + $0x20] sm:$0xff]  }
0x29b4   :  { %3940 = vadd.xlane.f32.xlu1 %v3939_v35  ;;  %v3930_v21 = vsub.f32 %v6503_v9, %v3925_v31 }
0x29b6   :  { %v3935_v20 = vmul.f32 %v3930_v21, %v3930_v21 }
0x29b8   :  { %v3942_v32 = vsel %vm152_vm2, %v3935_v20, 0.0 }
0x2a3d   :  { %v3881_v61 = vpop.f32.mrf.mxu1  ;;  %v3941_v39 = vpop.xlane.xlu1 %3940 }
0x2a3e   :  { %v3897_v49 = vadd.f32 %v3881_v61, %v6082_v42  ;;  %v3954_v40 = vmul.f32 0.03125, %v3941_v39 }
0x2a3f   :  { %v5046_v53 = vpop.f32.mrf.mxu1 }
0x2a40   :  { %v6521_v19 = vadd.f32 %v4469_v44, %v3897_v49  ;;  %v3959_v34 = vadd.f32 1e-06, %v3954_v40 }
0x2a41   :  { %v3884_v45 = vpop.f32.mrf.mxu1 }
0x2a42   :  { %v3898_v2 = vadd.f32 %v3884_v45, %v6089_v62  ;;  %v3915_v33 = vsel %vm152_vm2, %v6521_v19, 0.0  ;;  %5397 = vrsqrt.f32 %v3959_v34 }
0x2a43   :  { %3916 = vadd.xlane.f32.xlu0 %v3915_v33  ;;  %v5047_v54 = vpop.f32.mrf.mxu1 }
0x2a44   :  { %v6526_v13 = vadd.f32 %v4469_v44, %v3898_v2 }
0x2a45   :  { %v3889_v58 = vpop.f32.mrf.mxu1 }
0x2a46   :  { %v3899_v42 = vadd.f32 %v3889_v58, %v6170_v30  ;;  %v3918_v57 = vsel %vm152_vm2, %v6526_v13, 0.0  ;;  %v5159_v30 = vld [vmem:[%s6626_s5 + $0x18] sm:$0xff]  }
0x2a47   :  { %3919 = vadd.xlane.f32.xlu0 %v3918_v57  ;;  %v5050_v56 = vpop.f32.mrf.mxu1  ;;  %5053 = vmatpush3.bf16.msra.mxu0 %v5159_v30 }
0x2a48   :  { %v6532_v47 = vadd.f32 %v4469_v44, %v3899_v42  ;;  %5054 = vmatprep.subr.bf16.mxu0 %v5449_v1 }
0x2a49   :  { %v3892_v62 = vpop.f32.mrf.mxu1 }
0x2a4a   :  { %v3921_v46 = vsel %vm165_vm3, %v6532_v47, 0.0 }
0x2a4b   :  { %3922 = vadd.xlane.f32.xlu0 %v3921_v46  ;;  %v5051_v59 = vpop.f32.mrf.mxu1  ;;  %5055 = vmatpush3.bf16.msra.mxu0 %v5160_v38 }
0x2a4f   :  { %3943 = vadd.xlane.f32.xlu0 %v3942_v32  ;;  %v5398_v29 = vpop.eup %5397 }
0x2a50   :  { %v3969_v4 = vmul.f32 %v5398_v29, %v3929_v16  ;;  %v5163_v16 = vld [vmem:[%s6627_s6 + $0x28] sm:$0xff]  }
0x2a51   :  { %5073 = vmatpush3.bf16.msra.mxu1 %v5163_v16 }
0x2a52   :  { %v3978_v36 = vmul.f32 %v4470_v25, %v3969_v4  ;;  %5074 = vmatprep.subr.bf16.mxu1 %v5449_v1 }
0x2a54   :  { %v3987_v8 = vadd.f32 %v4471_v6, %v3978_v36 }
0x2a55   :  { %5075 = vmatpush3.bf16.msra.mxu1 %v5164_v52 }
0x2acc   :  { %v3917_v18 = vpop.xlane.xlu0 %3916 }
0x2acd   :  { %v3926_v41 = vmul.f32 0.03125, %v3917_v18  ;;  %v4476_v18 = vld [vmem:[%s6628_s7 + $0xe] ss:$0 sm:$0xff] }
0x2acf   :  { %v3931_v17 = vsub.f32 %v6521_v19, %v3926_v41 }
0x2ad0   :  { %v3920_v22 = vpop.xlane.xlu0 %3919 }
0x2ad1   :  { %v3927_v23 = vmul.f32 0.03125, %v3920_v22  ;;  %v3936_v50 = vmul.f32 %v3931_v17, %v3931_v17 }
0x2ad3   :  { %v3932_v24 = vsub.f32 %v6526_v13, %v3927_v23  ;;  %v3945_v43 = vsel %vm152_vm2, %v3936_v50, 0.0 }
0x2ad4   :  { %3946 = vadd.xlane.f32.xlu1 %v3945_v43  ;;  %v3923_v3 = vpop.xlane.xlu0 %3922 }
0x2ad5   :  { %v3928_v63 = vmul.f32 0.03125, %v3923_v3  ;;  %v3937_v55 = vmul.f32 %v3932_v24, %v3932_v24 }
0x2ad7   :  { %v3933_v12 = vsub.f32 %v6532_v47, %v3928_v63  ;;  %v3948_v60 = vsel %vm152_vm2, %v3937_v55, 0.0 }
0x2ad8   :  { %3949 = vadd.xlane.f32.xlu0 %v3948_v60  ;;  %v3944_v26 = vpop.xlane.xlu0 %3943 }
0x2ad9   :  { %v3955_v51 = vmul.f32 0.03125, %v3944_v26  ;;  %v3938_v44 = vmul.f32 %v3933_v12, %v3933_v12 }
0x2adb   :  { %v3960_v27 = vadd.f32 1e-06, %v3955_v51  ;;  %v3951_v14 = vsel %vm165_vm3, %v3938_v44, 0.0  ;;  %vm4285_vm3 = vcmask 253952  }
0x2adc   :  { %3952 = vadd.xlane.f32.xlu1 %v3951_v14 }
0x2add   :  { %5399 = vrsqrt.f32 %v3960_v27 }
0x2aea   :  { %v5400_v5 = vpop.eup %5399 }
0x2aeb   :  { %v3970_v28 = vmul.f32 %v5400_v5, %v3930_v21 }
0x2aed   :  { %v3979_v7 = vmul.f32 %v4470_v25, %v3970_v28 }
0x2aef   :  { %v3988_v48 = vadd.f32 %v4471_v6, %v3979_v7 }
0x2af1   :  { %v3992_v10 = vpack.c.bf16 %v3988_v48, %v3987_v8 }
0x2af3   :  { %5057 = vmatmul.mubr.msk.bf16.vlgmr.msra.gmra.mxu0 %vm152_vm2, %v3992_v10 }
0x2af4   :  { %5060 = vmatprep.mubr.msk.bf16.mxu0 %vm5450_vm0, %v5449_v1 }
0x2b5d   :  { %v3947_v35 = vpop.xlane.xlu1 %3946 }
0x2b5e   :  { %v3956_v61 = vmul.f32 0.03125, %v3947_v35 }
0x2b60   :  { %v3961_v49 = vadd.f32 1e-06, %v3956_v61 }
0x2b61   :  { %v3950_v0 = vpop.xlane.xlu0 %3949 }
0x2b62   :  { %5401 = vrsqrt.f32 %v3961_v49  ;;  %v3957_v53 = vmul.f32 0.03125, %v3950_v0 }
0x2b64   :  { %v3962_v45 = vadd.f32 1e-06, %v3957_v53 }
0x2b65   :  { %v3953_v31 = vpop.xlane.xlu1 %3952 }
0x2b66   :  { %5403 = vrsqrt.f32 %v3962_v45  ;;  %v3958_v2 = vmul.f32 0.03125, %v3953_v31 }
0x2b68   :  { %v3963_v33 = vadd.f32 1e-06, %v3958_v2 }
0x2b6a   :  { %5405 = vrsqrt.f32 %v3963_v33 }
0x2b6f   :  { %v5402_v54 = vpop.eup %5401 }
0x2b70   :  { %v3971_v58 = vmul.f32 %v5402_v54, %v3931_v17 }
0x2b72   :  { %v3980_v57 = vmul.f32 %v4470_v25, %v3971_v58 }
0x2b73   :  { %v5404_v21 = vpop.eup %5403 }
0x2b74   :  { %v3972_v42 = vmul.f32 %v5404_v21, %v3932_v24  ;;  %v3989_v20 = vadd.f32 %v4471_v6, %v3980_v57 }
0x2b76   :  { %v3981_v56 = vmul.f32 %v4470_v25, %v3972_v42 }
0x2b77   :  { %v5406_v62 = vpop.eup %5405 }
0x2b78   :  { %v3973_v46 = vmul.f32 %v5406_v62, %v3933_v12  ;;  %v3990_v59 = vadd.f32 %v4471_v6, %v3981_v56 }
0x2b7a   :  { %v3993_v32 = vpack.c.bf16 %v3990_v59, %v3989_v20  ;;  %v3982_v30 = vmul.f32 %v4470_v25, %v3973_v46 }
0x2b7c   :  { %5061 = vmatmul.mubr.msk.bf16.gmra.mxu0 %vm152_vm2, %v3993_v32  ;;  %v3991_v38 = vadd.f32 %v4471_v6, %v3982_v30 }
0x2b7d   :  { %5064 = vmatprep.mubr.msk.bf16.mxu0 %vm5450_vm0, %v5449_v1 }
0x2b7e   :  { %v3994_v39 = vpack.c.bf16 %v3991_v38, %v3991_v38 }
0x2b84   :  { %5065 = vmatmul.mubr.msk.bf16.gmra.mxu0 %vm152_vm2, %v3994_v39 }
0x2bb3   :  { %v4059_v41 = vpop.f32.mrf.mxu0 }
0x2bb4   :  { %v4060_v40 = vadd.f32 %v4476_v18, %v4059_v41 }
0x2bb5   :  { %v5058_v17 = vpop.f32.mrf.mxu0 }
0x2bb6   :  { %v4081_v22 = vmul.f32 %v4060_v40, %v4060_v40 }
0x2bb7   :  { %v4062_v23 = vpop.f32.mrf.mxu0 }
0x2bb8   :  { %v4086_v50 = vmul.f32 %v4081_v22, %v4060_v40  ;;  %v4063_v34 = vadd.f32 %v4476_v18, %v4062_v23 }
0x2bb9   :  { %v5059_v24 = vpop.f32.mrf.mxu0 }
0x2bba   :  { %v4091_v43 = vmul.f32 0.044715, %v4086_v50  ;;  %v4082_v3 = vmul.f32 %v4063_v34, %v4063_v34  ;;  %v4490_v24 = vld [vmem:[%s6628_s7 + $0xf] ss:$0 sm:$0xff] }
0x2bbc   :  { %v4096_v63 = vadd.f32 %v4091_v43, %v4060_v40  ;;  %v4087_v55 = vmul.f32 %v4082_v3, %v4063_v34 }
0x2bbe   :  { %v4101_v12 = vmul.f32 0.7978846, %v4096_v63  ;;  %v4092_v60 = vmul.f32 0.044715, %v4087_v55 }
0x2bc0   :  { %5407 = vtanh.f32 %v4101_v12  ;;  %v4097_v26 = vadd.f32 %v4092_v60, %v4063_v34 }
0x2bc2   :  { %v4102_v51 = vmul.f32 0.7978846, %v4097_v26 }
0x2bc4   :  { %5409 = vtanh.f32 %v4102_v51 }
0x2bcd   :  { %v5408_v44 = vpop.eup %5407 }
0x2bce   :  { %v4111_v27 = vadd.f32 1.0, %v5408_v44 }
0x2bd0   :  { %v4116_v29 = vmul.f32 0.5, %v4111_v27 }
0x2bd1   :  { %v5410_v14 = vpop.eup %5409 }
0x2bd2   :  { %v4112_v4 = vadd.f32 1.0, %v5410_v14  ;;  %v4121_v5 = vmul.f32 %v4116_v29, %v4060_v40 }
0x2bd4   :  { %v4117_v25 = vmul.f32 0.5, %v4112_v4 }
0x2bd6   :  { %v4122_v28 = vmul.f32 %v4117_v25, %v4063_v34 }
0x2bd8   :  { %v4126_v36 = vpack.c.bf16 %v4122_v28, %v4121_v5 }
0x2bda   :  { %5077 = vmatmul.mubr.msk.bf16.vlgmr.msra.gmra.mxu1 %vm2126_vm1, %v4126_v36 }
0x2bdb   :  { %5080 = vmatprep.mubr.msk.bf16.mxu1 %vm5450_vm0, %v5449_v1 }
0x2c3c   :  { %v4067_v6 = vpop.f32.mrf.mxu0 }
0x2c3d   :  { %v4068_v7 = vadd.f32 %v4476_v18, %v4067_v6 }
0x2c3e   :  { %v5062_v8 = vpop.f32.mrf.mxu0 }
0x2c3f   :  { %v4083_v48 = vmul.f32 %v4068_v7, %v4068_v7 }
0x2c40   :  { %v4070_v10 = vpop.f32.mrf.mxu0 }
0x2c41   :  { %v4088_v11 = vmul.f32 %v4083_v48, %v4068_v7  ;;  %v4071_v15 = vadd.f32 %v4476_v18, %v4070_v10 }
0x2c42   :  { %v5063_v16 = vpop.f32.mrf.mxu0 }
0x2c43   :  { %v4093_v52 = vmul.f32 0.044715, %v4088_v11  ;;  %v4084_v35 = vmul.f32 %v4071_v15, %v4071_v15 }
0x2c44   :  { %v4075_v61 = vpop.f32.mrf.mxu0 }
0x2c45   :  { %v4098_v49 = vadd.f32 %v4093_v52, %v4068_v7  ;;  %v4089_v0 = vmul.f32 %v4084_v35, %v4071_v15  ;;  %v4076_v53 = vadd.f32 %v4476_v18, %v4075_v61 }
0x2c46   :  { %v5066_v45 = vpop.f32.mrf.mxu0 }
0x2c47   :  { %v4103_v31 = vmul.f32 0.7978846, %v4098_v49  ;;  %v4094_v2 = vmul.f32 0.044715, %v4089_v0  ;;  %v4085_v33 = vmul.f32 %v4076_v53, %v4076_v53 }
0x2c48   :  { %v4078_v54 = vpop.f32.mrf.mxu0 }
0x2c49   :  { %5411 = vtanh.f32 %v4103_v31  ;;  %v4099_v58 = vadd.f32 %v4094_v2, %v4071_v15  ;;  %v4090_v21 = vmul.f32 %v4085_v33, %v4076_v53 }
0x2c4a   :  { %v5067_v42 = vpop.f32.mrf.mxu0 }
0x2c4b   :  { %v4104_v57 = vmul.f32 0.7978846, %v4099_v58  ;;  %v4095_v56 = vmul.f32 0.044715, %v4090_v21 }
0x2c4d   :  { %5413 = vtanh.f32 %v4104_v57  ;;  %v4100_v62 = vadd.f32 %v4095_v56, %v4076_v53 }
0x2c4f   :  { %v4105_v46 = vmul.f32 0.7978846, %v4100_v62 }
0x2c51   :  { %5415 = vtanh.f32 %v4105_v46 }
0x2c56   :  { %v5412_v20 = vpop.eup %5411 }
0x2c57   :  { %v4113_v59 = vadd.f32 1.0, %v5412_v20 }
0x2c59   :  { %v4118_v30 = vmul.f32 0.5, %v4113_v59 }
0x2c5a   :  { %v5414_v32 = vpop.eup %5413 }
0x2c5b   :  { %v4114_v38 = vadd.f32 1.0, %v5414_v32  ;;  %v4123_v41 = vmul.f32 %v4118_v30, %v4068_v7 }
0x2c5d   :  { %v4119_v39 = vmul.f32 0.5, %v4114_v38 }
0x2c5e   :  { %v5416_v18 = vpop.eup %5415 }
0x2c5f   :  { %v4124_v40 = vmul.f32 %v4119_v39, %v4071_v15  ;;  %v4115_v17 = vadd.f32 1.0, %v5416_v18 }
0x2c61   :  { %v4127_v22 = vpack.c.bf16 %v4124_v40, %v4123_v41  ;;  %v4120_v23 = vmul.f32 0.5, %v4115_v17 }
0x2c63   :  { %5081 = vmatmul.mubr.msk.bf16.gmra.mxu1 %vm2126_vm1, %v4127_v22  ;;  %v4125_v50 = vmul.f32 %v4120_v23, %v4076_v53  ;;  %v4498_v22 = vld [vmem:[%s6628_s7 + $0x10] ss:$0 sm:$0xff] }
0x2c64   :  { %5084 = vmatprep.mubr.msk.bf16.mxu1 %vm5450_vm0, %v5449_v1  ;;  %vm4278_vm0 = vcmask 261121  }
0x2c65   :  { %v4128_v34 = vpack.c.bf16 %v4125_v50, %v4125_v50  ;;  %v4499_v50 = vld [vmem:[%s6628_s7 + $0x11] ss:$0 sm:$0xff]  ;;  %s5466_s7 = smov [#allocation3]  }
0x2c66   :  { %s4334_s14 = sshll.u32 %s5466_s7, 4  ;;  %s4335_s14 = int_to_ptr.vmem [resolvable:$true] %s4334_s14 }
0x2c67   :  { %s5427_s2 = scalar_lea.vmem %s4335_s14, 512  ;;  %p5432_p1 = scmp.lt.s32.totalorder %s4335_s14, %s4335_s14 }
0x2c68   :  { %p5428_p0 = scmp.ne.s32.totalorder %s4335_s14, %s5427_s2  ;;  %p5433_p2 = scmp.lt.s32.totalorder %s5427_s2, %s5427_s2 }
0x2c6a   :  { %p5434_p3 = por %p5433_p2, %p5432_p1 }
0x2c6b   :  { %5085 = vmatmul.mubr.msk.bf16.gmra.mxu1 %vm2126_vm1, %v4128_v34 }
0x2c6c   :  { %p5435_p4 = pnand %p5434_p3, %p5428_p0 }
0x2c9a   :  { %v4209_v43 = vpop.f32.mrf.mxu1 }
0x2c9b   :  { %v4210_v3 = vadd.f32 %v4490_v24, %v4209_v43 }
0x2c9c   :  { %v5078_v63 = vpop.f32.mrf.mxu1 }
0x2c9d   :  { %v4231_v55 = vadd.f32 %v4210_v3, %v6498_v37 }
0x2c9e   :  { %v4212_v12 = vpop.f32.mrf.mxu1 }
0x2c9f   :  { %v4213_v60 = vadd.f32 %v4490_v24, %v4212_v12  ;;  %v4238_v26 = vsel %vm152_vm2, %v4231_v55, 0.0 }
0x2ca0   :  { %4239 = vadd.xlane.f32.xlu0 %v4238_v26  ;;  %v5079_v51 = vpop.f32.mrf.mxu1 }
0x2ca1   :  { %v4232_v1 = vadd.f32 %v4213_v60, %v6503_v9 }
0x2ca3   :  { %v4241_v44 = vsel %vm152_vm2, %v4232_v1, 0.0 }
0x2ca4   :  { %4242 = vadd.xlane.f32.xlu1 %v4241_v44 }
0x2d23   :  { %v4217_v27 = vpop.f32.mrf.mxu1 }
0x2d24   :  { %v4218_v14 = vadd.f32 %v4490_v24, %v4217_v27 }
0x2d25   :  { %v5082_v29 = vpop.f32.mrf.mxu1 }
0x2d26   :  { %v4233_v4 = vadd.f32 %v4218_v14, %v6521_v19 }
0x2d27   :  { %v4220_v25 = vpop.f32.mrf.mxu1 }
0x2d28   :  { %v4221_v5 = vadd.f32 %v4490_v24, %v4220_v25  ;;  %v4279_v37 = vsel %vm4278_vm0, %v4233_v4, 0.0 }
0x2d29   :  { %v4240_v28 = vpop.xlane.xlu0 %4239  ;;  %4280 = vadd.xlane.f32.xlu0 %v4279_v37  ;;  %v5083_v36 = vpop.f32.mrf.mxu1 }
0x2d2a   :  { %v4234_v6 = vadd.f32 %v4221_v5, %v6526_v13  ;;  %v4244_v7 = vmul.f32 0.03125, %v4240_v28 }
0x2d2b   :  { %v4225_v9 = vpop.f32.mrf.mxu1 }
0x2d2c   :  { %v4246_v8 = vsub.f32 %v4231_v55, %v4244_v7  ;;  %v4226_v48 = vadd.f32 %v4490_v24, %v4225_v9  ;;  %v4282_v10 = vsel %vm152_vm2, %v4234_v6, 0.0 }
0x2d2d   :  { %4283 = vadd.xlane.f32.xlu1 %v4282_v10  ;;  %v5086_v11 = vpop.f32.mrf.mxu1  ;;  %v4243_v15 = vpop.xlane.xlu1 %4242 }
0x2d2e   :  { %v4235_v19 = vadd.f32 %v4226_v48, %v6532_v47  ;;  %v4245_v16 = vmul.f32 0.03125, %v4243_v15  ;;  %v4248_v52 = vmul.f32 %v4246_v8, %v4246_v8 }
0x2d2f   :  { %v4228_v35 = vpop.f32.mrf.mxu1 }
0x2d30   :  { %v4247_v61 = vsub.f32 %v4232_v1, %v4245_v16  ;;  %v4250_v49 = vsel %vm152_vm2, %v4248_v52, 0.0  ;;  %v4286_v13 = vsel %vm4285_vm3, %v4235_v19, 0.0 }
0x2d31   :  { %4251 = vadd.xlane.f32.xlu1 %v4250_v49  ;;  %4287 = vadd.xlane.f32.xlu0 %v4286_v13  ;;  %v5087_v0 = vpop.f32.mrf.mxu1 }
0x2d32   :  { %v4249_v53 = vmul.f32 %v4247_v61, %v4247_v61 }
0x2d34   :  { %v4253_v45 = vsel %vm152_vm2, %v4249_v53, 0.0 }
0x2d35   :  { %4254 = vadd.xlane.f32.xlu0 %v4253_v45 }
0x2db2   :  { %v4281_v31 = vpop.xlane.xlu0 %4280 }
0x2db3   :  { %v4289_v2 = vmul.f32 0.03125, %v4281_v31 }
0x2db5   :  { %v4292_v33 = vsub.f32 %v4233_v4, %v4289_v2 }
0x2db6   :  { %v4284_v54 = vpop.xlane.xlu1 %4283 }
0x2db7   :  { %v4290_v47 = vmul.f32 0.03125, %v4284_v54  ;;  %v4295_v58 = vmul.f32 %v4292_v33, %v4292_v33 }
0x2db9   :  { %v4293_v21 = vsub.f32 %v4234_v6, %v4290_v47  ;;  %v4298_v42 = vsel %vm4278_vm0, %v4295_v58, 0.0 }
0x2dba   :  { %4299 = vadd.xlane.f32.xlu1 %v4298_v42  ;;  %v4288_v57 = vpop.xlane.xlu0 %4287  ;;  %v4252_v56 = vpop.xlane.xlu1 %4251 }
0x2dbb   :  { %v4291_v62 = vmul.f32 0.03125, %v4288_v57  ;;  %v4256_v46 = vmul.f32 0.03125, %v4252_v56  ;;  %v4296_v20 = vmul.f32 %v4293_v21, %v4293_v21 }
0x2dbd   :  { %v4294_v59 = vsub.f32 %v4235_v19, %v4291_v62  ;;  %v4258_v32 = vadd.f32 1e-06, %v4256_v46  ;;  %v4301_v30 = vsel %vm152_vm2, %v4296_v20, 0.0 }
0x2dbe   :  { %v4255_v38 = vpop.xlane.xlu0 %4254  ;;  %4302 = vadd.xlane.f32.xlu0 %v4301_v30 }
0x2dbf   :  { %5417 = vrsqrt.f32 %v4258_v32  ;;  %v4257_v39 = vmul.f32 0.03125, %v4255_v38  ;;  %v4297_v18 = vmul.f32 %v4294_v59, %v4294_v59 }
0x2dc1   :  { %v4259_v41 = vadd.f32 1e-06, %v4257_v39  ;;  %v4304_v40 = vsel %vm4285_vm3, %v4297_v18, 0.0 }
0x2dc2   :  { %4305 = vadd.xlane.f32.xlu1 %v4304_v40 }
0x2dc3   :  { %5419 = vrsqrt.f32 %v4259_v41 }
0x2dcc   :  { %v5418_v17 = vpop.eup %5417 }
0x2dcd   :  { %v4262_v23 = vmul.f32 %v5418_v17, %v4246_v8 }
0x2dcf   :  { %v4268_v34 = vmul.f32 %v4498_v22, %v4262_v23 }
0x2dd0   :  { %v5420_v24 = vpop.eup %5419 }
0x2dd1   :  { %v4274_v43 = vadd.f32 %v4499_v50, %v4268_v34  ;;  %v4263_v3 = vmul.f32 %v5420_v24, %v4247_v61 }
0x2dd3   :  { %4276 = vst.msk [vmem:[#allocation3] sm:$0xff] %vm152_vm2, %v4274_v43  ;;  %v4269_v63 = vmul.f32 %v4498_v22, %v4263_v3 }
0x2dd5   :  { %v4275_v55 = vadd.f32 %v4499_v50, %v4269_v63 }
0x2dd7   :  { %4277 = vst.msk [vmem:[#allocation3 + $0x8] sm:$0xff] %vm152_vm2, %v4275_v55 }
0x2e43   :  { %v4300_v12 = vpop.xlane.xlu1 %4299 }
0x2e44   :  { %v4307_v60 = vmul.f32 0.03125, %v4300_v12 }
0x2e46   :  { %v4310_v26 = vadd.f32 1e-06, %v4307_v60 }
0x2e47   :  { %v4303_v51 = vpop.xlane.xlu0 %4302 }
0x2e48   :  { %5421 = vrsqrt.f32 %v4310_v26  ;;  %v4308_v1 = vmul.f32 0.03125, %v4303_v51 }
0x2e4a   :  { %v4311_v44 = vadd.f32 1e-06, %v4308_v1 }
0x2e4b   :  { %v4306_v27 = vpop.xlane.xlu1 %4305 }
0x2e4c   :  { %5423 = vrsqrt.f32 %v4311_v44  ;;  %v4309_v14 = vmul.f32 0.03125, %v4306_v27 }
0x2e4e   :  { %v4312_v29 = vadd.f32 1e-06, %v4309_v14 }
0x2e50   :  { %5425 = vrsqrt.f32 %v4312_v29 }
0x2e55   :  { %v5422_v4 = vpop.eup %5421 }
0x2e56   :  { %v4316_v25 = vmul.f32 %v5422_v4, %v4292_v33 }
0x2e58   :  { %v4319_v5 = vmul.f32 %v4498_v22, %v4316_v25 }
0x2e59   :  { %v5424_v37 = vpop.eup %5423 }
0x2e5a   :  { %v4322_v28 = vadd.f32 %v4499_v50, %v4319_v5  ;;  %v4317_v36 = vmul.f32 %v5424_v37, %v4293_v21 }
0x2e5c   :  { %4326 = vst.msk [vmem:[#allocation3 + $0xf] sm:$0xfe] %vm4278_vm0, %v4322_v28  ;;  %v4320_v6 = vmul.f32 %v4498_v22, %v4317_v36 }
0x2e5d   :  { %v5426_v7 = vpop.eup %5425 }
0x2e5e   :  { %v4323_v9 = vadd.f32 %v4499_v50, %v4320_v6  ;;  %v4318_v8 = vmul.f32 %v5426_v7, %v4294_v59 }
0x2e60   :  { %4327 = vst.msk [vmem:[#allocation3 + $0x17] sm:$0xff] %vm152_vm2, %v4323_v9  ;;  %v4321_v48 = vmul.f32 %v4498_v22, %v4318_v8 }
0x2e62   :  { %v4324_v10 = vadd.f32 %v4499_v50, %v4321_v48 }
0x2e64   :  { %4328 = vst.msk [vmem:[#allocation3 + $0x1f] sm:$0x1] %vm4285_vm3, %v4324_v10 }
0x2e65   :  { %5438 = shalt.err (!%p5435_p4)
}
0x2e66   :  { %s5467_s4 = smov 128  }
0x2e67   :  { %4340 = dma.vmem_to_hbm [thread:$0]  %s4335_s14, 512, %s6629_s8, [#allocation4], %s5467_s4, %s5467_s4, %s5463_s21  }
0x2e68   :  { %5447 = dma.done.wait [#allocation4], 512  }
0x2e69   :  { %5448 = vsyncadd [#allocation4], 4294966784 }
0x2e6a   :  { %4344 = vsyncpa [#allocation4], 1 }

</bundles_post_ra>
